<compile_context>
chip_gen: v6e
topology: v6e:2x2x1
jax: 0.10.0
libtpu: 0.0.40
codegen_flags: <defaults>
</compile_context>

<pallas_src>
import math

import jax
import jax.numpy as jnp
from jax.experimental import pallas as pl
from jax.experimental.pallas import tpu as pltpu

D_EMB = 8
D_MODEL = 4 * D_EMB          # required by forward()'s view()/LayerNorm arithmetic
BATCH = 8                    # forward() hard-codes view(8, ...)
SEQ = 8 * D_EMB              # required so LayerNorm(d_model) sees last dim == d_model
N_WEEKDAY, N_HOUR, N_LOC = 7, 24, 50
LN_EPS = 1e-5

# combined lookup table layout: [pos | hour | weekday | location] along rows
HOUR_OFF = SEQ
WDAY_OFF = SEQ + N_HOUR
LOC_OFF = SEQ + N_HOUR + N_WEEKDAY
N_TBL = SEQ + N_HOUR + N_WEEKDAY + N_LOC          # 145
N_TBL_PAD = ((N_TBL + 7) // 8) * 8                # 152 (sublane aligned; extra rows are zero)

PAIRS_PER_BATCH = SEQ // 2                        # 32 output rows per batch (power of two)
N_BLOCKS = 2                                      # grid steps; "parallel" -> one per v7x core


# ----------------------------------------------------------------------------- fused kernel
def fused_embedding_kernel(seq_ref, idx_ref, tok8_ref, wlin_ref, vecs_ref,
                           tbl_ref, wbig_ref, out_ref):
    """Whole CustomEmbedding.forward for one block of R paired (b, q) output rows."""
    f32 = jnp.float32
    R = out_ref.shape[0]

    w_tok = tok8_ref[0:1, :]                      # (1, 8)  nn.Linear(1, d_e) weight
    b_tok = tok8_ref[1:2, :]                      # (1, 8)
    b_lin = vecs_ref[0:1, :]                      # (1, 32)
    b_cat4 = vecs_ref[1:2, :]                     # (1, 32) = tile(b_cat, 4)
    ln_g = vecs_ref[2:3, :]                       # (1, 32)
    ln_b = vecs_ref[3:4, :]                       # (1, 32)
    w_lin = wlin_ref[...]                         # (8, 32)
    tbl = tbl_ref[...]                            # (152, 32) block-diag lookup table

    # ---- token path: Linear(1, d_e) as a VPU broadcast, Linear(d_e, d_model) on the MXU ----
    seq_e = seq_ref[:, 0:1]                       # sequence value at position 2q    (R, 1)
    seq_o = seq_ref[:, 1:2]                       # sequence value at position 2q+1  (R, 1)
    tok_e = seq_e * w_tok + b_tok                 # (R, 8)
    tok_o = seq_o * w_tok + b_tok
    te = jnp.dot(tok_e, w_lin, preferred_element_type=f32) + b_lin       # (R, 32)
    to = jnp.dot(tok_o, w_lin, preferred_element_type=f32) + b_lin       # (R, 32)

    # ---- pos/hour/weekday/location lookups: one one-hot MXU matmul per (even|odd) slot ----
    # local row l -> q = l % PAIRS_PER_BATCH  (R and the block offset are multiples of it)
    q = jax.lax.broadcasted_iota(jnp.int32, (R, 1), 0) & (PAIRS_PER_BATCH - 1)
    col = jax.lax.broadcasted_iota(jnp.int32, (R, N_TBL_PAD), 1)

    def concat4(s_idx, hr_idx, wk_idx, lc_idx):
        hot = ((col == s_idx) | (col == HOUR_OFF + hr_idx) |
               (col == WDAY_OFF + wk_idx) | (col == LOC_OFF + lc_idx))
        # [pos | hour | weekday | location] land in lanes 0:8 / 8:16 / 16:24 / 24:32
        return jnp.dot(hot.astype(f32), tbl, preferred_element_type=f32)  # (R, 32)

    c4_e = concat4(2 * q,     idx_ref[:, 0:1], idx_ref[:, 2:3], idx_ref[:, 4:5])
    c4_o = concat4(2 * q + 1, idx_ref[:, 1:2], idx_ref[:, 3:4], idx_ref[:, 5:6])

    # ---- cat + view(8,-1,32) + concat_linear + view(8,32,-1) fused as banded matmuls ----
    x = (jnp.dot(te,   wbig_ref[0:32, :],   preferred_element_type=f32) +
         jnp.dot(c4_e, wbig_ref[32:64, :],  preferred_element_type=f32) +
         jnp.dot(to,   wbig_ref[64:96, :],  preferred_element_type=f32) +
         jnp.dot(c4_o, wbig_ref[96:128, :], preferred_element_type=f32) + b_cat4)

    # ---- LayerNorm(d_model), torch default eps, biased variance ----
    mu = jnp.mean(x, axis=-1, keepdims=True)
    xc = x - mu
    var = jnp.mean(xc * xc, axis=-1, keepdims=True)
    out_ref[...] = xc * jax.lax.rsqrt(var + LN_EPS) * ln_g + ln_b


# ----------------------------------------------------------------------------- wrapper
def custom_embedding_forward(sequence, weekday, hour, location, params):
    B, S = sequence.shape
    de, dm = D_EMB, D_MODEL
    assert B == BATCH and dm == 4 * de and S == 8 * de, "forward()'s view()/LayerNorm constraints"

    n_pairs = B * S // 2                                  # 256 output rows p = b*32 + q
    assert n_pairs % N_BLOCKS == 0
    rows = n_pairs // N_BLOCKS                            # rows per grid step (128)
    assert rows % PAIRS_PER_BATCH == 0                    # kernel recovers q with a bitmask

    # pair per-position inputs: row p = (b, q) holds sequence positions (2q, 2q+1)
    seq_pairs = sequence.astype(jnp.float32).reshape(n_pairs, 2)
    idx_pairs = jnp.concatenate(
        [hour.reshape(n_pairs, 2), weekday.reshape(n_pairs, 2),
         location.reshape(n_pairs, 2)], axis=1).astype(jnp.int32)       # (256, 6)

    # small weight stacks (one DMA each instead of six tiny ones)
    tok8 = jnp.concatenate([params["w_tok"], params["b_tok"]], axis=0)              # (2, 8)
    vecs = jnp.concatenate([params["b_lin"], jnp.tile(params["b_cat"], (1, 4)),
                            params["ln_gamma"], params["ln_beta"]], axis=0)         # (4, 32)
    # combined lookup table: block-diag so each lookup lands in its own 8-lane band
    tbl = jax.scipy.linalg.block_diag(params["pos_table"], params["hour_table"],
                                      params["weekday_table"], params["loc_table"])  # (145, 32)
    tbl = jnp.pad(tbl, ((0, N_TBL_PAD - N_TBL), (0, 0)))                             # (152, 32)
    # concat_linear weight replicated on the block diagonal: output band j = chunk j @ w_cat
    wbig = jax.scipy.linalg.block_diag(*([params["w_cat"]] * 4))                     # (128, 32)

    x_flat = pl.pallas_call(
        fused_embedding_kernel,
        out_shape=jax.ShapeDtypeStruct((n_pairs, dm), jnp.float32),
        grid=(N_BLOCKS,),
        in_specs=[
            pl.BlockSpec((rows, 2), lambda i: (i, 0)),          # paired sequence values
            pl.BlockSpec((rows, 6), lambda i: (i, 0)),          # paired hr/wk/loc indices
            pl.BlockSpec((2, de), lambda i: (0, 0)),            # [w_tok; b_tok]
            pl.BlockSpec((de, dm), lambda i: (0, 0)),           # w_lin
            pl.BlockSpec((4, dm), lambda i: (0, 0)),            # [b_lin; b_cat*4; ln_g; ln_b]
            pl.BlockSpec((N_TBL_PAD, dm), lambda i: (0, 0)),    # combined lookup table
            pl.BlockSpec((4 * dm, dm), lambda i: (0, 0)),       # block-diag concat_linear W
        ],
        out_specs=pl.BlockSpec((rows, dm), lambda i: (i, 0)),
        compiler_params=pltpu.CompilerParams(dimension_semantics=("parallel",)),
    )(seq_pairs, idx_pairs, tok8, params["w_lin"], vecs, tbl, wbig)

    return x_flat.reshape(B, dm, dm)     # trivial leading-dim split, no relayout


# ----------------------------------------------------------------------------- pure-JAX reference
def custom_embedding_reference(sequence, weekday, hour, location, params):
    """Direct translation of the torch forward, used only as a correctness check."""
    B, S = sequence.shape
    de = D_EMB
    seq3 = sequence.astype(jnp.float32)[:, :, None]
    tok = seq3 * params["w_tok"] + params["b_tok"]                              # (B,S,de)
    token_emb = jnp.einsum("bse,ed->bsd", tok, params["w_lin"]) + params["b_lin"]
    pos_emb = jnp.broadcast_to(params["pos_table"], (B, S, de))
    hr_emb = jnp.take(params["hour_table"], hour, axis=0)
    wk_emb = jnp.take(params["weekday_table"], weekday, axis=0)
    loc_emb = jnp.take(params["loc_table"], location, axis=0)
    emb_cat = jnp.concatenate([token_emb, pos_emb, hr_emb, wk_emb, loc_emb], axis=2)
    emb_cat = emb_cat.reshape(8, -1, 4 * de)
    y = jnp.einsum("brk,kd->brd", emb_cat, params["w_cat"]) + params["b_cat"]
    x = y.reshape(8, 4 * de, -1)
    mu = jnp.mean(x, axis=-1, keepdims=True)
    var = jnp.mean((x - mu) ** 2, axis=-1, keepdims=True)
    return (x - mu) * jax.lax.rsqrt(var + LN_EPS) * params["ln_gamma"] + params["ln_beta"]


# ----------------------------------------------------------------------------- params
def init_params(key):
    de, dm = D_EMB, D_MODEL
    ks = jax.random.split(key, 9)

    def linear_init(kw, kb, fan_in, fan_out):
        bound = 1.0 / math.sqrt(fan_in)
        w = jax.random.uniform(kw, (fan_in, fan_out), jnp.float32, -bound, bound)
        b = jax.random.uniform(kb, (1, fan_out), jnp.float32, -bound, bound)
        return w, b

    w_tok, b_tok = linear_init(ks[0], ks[1], 1, de)          # nn.Linear(1, d_embedding)
    w_lin, b_lin = linear_init(ks[2], ks[3], de, dm)         # nn.Linear(d_embedding, d_model)
    w_cat, b_cat = linear_init(ks[4], ks[5], 4 * de, de)     # nn.Linear(4*d_embedding, d_embedding)

    weekday_table = 0.02 * jax.random.normal(ks[6], (N_WEEKDAY, de), jnp.float32)
    hour_table = 0.02 * jax.random.normal(ks[7], (N_HOUR, de), jnp.float32)
    loc_table = 0.02 * jax.random.normal(ks[8], (N_LOC, de), jnp.float32)

    # deterministic sinusoidal positional table (SEQ, d_embedding)
    pos = jnp.arange(SEQ, dtype=jnp.float32)[:, None]
    i = jnp.arange(de, dtype=jnp.float32)[None, :]
    angle = pos / jnp.power(10000.0, (2.0 * jnp.floor(i / 2.0)) / de)
    pos_table = jnp.where((jnp.arange(de)[None, :] % 2) == 0, jnp.sin(angle), jnp.cos(angle))

    return dict(
        w_tok=w_tok, b_tok=b_tok, w_lin=w_lin, b_lin=b_lin, w_cat=w_cat, b_cat=b_cat,
        weekday_table=weekday_table, hour_table=hour_table, loc_table=loc_table,
        pos_table=pos_table.astype(jnp.float32),
        ln_gamma=jnp.ones((1, dm), jnp.float32), ln_beta=jnp.zeros((1, dm), jnp.float32),
    )


if __name__ == "__main__":
    key = jax.random.PRNGKey(0)
    kp, kseq, kw, kh, kl = jax.random.split(key, 5)
    params = init_params(kp)

    sequence = jax.random.normal(kseq, (BATCH, SEQ), jnp.float32)
    weekday = jax.random.randint(kw, (BATCH, SEQ), 0, N_WEEKDAY, dtype=jnp.int32)
    hour = jax.random.randint(kh, (BATCH, SEQ), 0, N_HOUR, dtype=jnp.int32)
    location = jax.random.randint(kl, (BATCH, SEQ), 0, N_LOC, dtype=jnp.int32)

    fwd = jax.jit(custom_embedding_forward)
    out = jax.block_until_ready(fwd(sequence, weekday, hour, location, params))

    assert out.shape == (BATCH, D_MODEL, D_MODEL)
    assert bool(jnp.all(jnp.isfinite(out)))

    # structural correctness check against the straight-line JAX reference
    ref = jax.block_until_ready(
        jax.jit(custom_embedding_reference)(sequence, weekday, hour, location, params))
    assert bool(jnp.allclose(out, ref, atol=5e-2, rtol=5e-2)), \
        float(jnp.max(jnp.abs(out - ref)))

    print("KERNEL_OK")
</pallas_src>

<mosaic_0001>
module attributes {stable_mosaic.version = 11 : i64} {
  func.func @fused_embedding_kernel(%arg0: i32, %arg1: memref<128x2xf32, #tpu.memory_space<vmem>>, %arg2: memref<128x6xi32, #tpu.memory_space<vmem>>, %arg3: memref<2x8xf32, #tpu.memory_space<vmem>>, %arg4: memref<8x32xf32, #tpu.memory_space<vmem>>, %arg5: memref<4x32xf32, #tpu.memory_space<vmem>>, %arg6: memref<152x32xf32, #tpu.memory_space<vmem>>, %arg7: memref<128x32xf32, #tpu.memory_space<vmem>>, %arg8: memref<128x32xf32, #tpu.memory_space<vmem>>) attributes {dimension_semantics = [#tpu.dimension_semantics<parallel>], iteration_bounds = array<i64: 2>, scalar_prefetch = 0 : i64, scratch_operands = 0 : i64, tpu.core_type = #tpu.core_type<tc>, window_params = [{transform_indices = @transform_0, window_bounds = array<i64: 128, 2>}, {transform_indices = @transform_1, window_bounds = array<i64: 128, 6>}, {pipeline_mode = #tpu.pipeline_mode<synchronous>, transform_indices = @transform_2, window_bounds = array<i64: 2, 8>}, {pipeline_mode = #tpu.pipeline_mode<synchronous>, transform_indices = @transform_3, window_bounds = array<i64: 8, 32>}, {pipeline_mode = #tpu.pipeline_mode<synchronous>, transform_indices = @transform_4, window_bounds = array<i64: 4, 32>}, {pipeline_mode = #tpu.pipeline_mode<synchronous>, transform_indices = @transform_5, window_bounds = array<i64: 152, 32>}, {pipeline_mode = #tpu.pipeline_mode<synchronous>, transform_indices = @transform_6, window_bounds = array<i64: 128, 32>}, {transform_indices = @transform_7, window_bounds = array<i64: 128, 32>}]} {
    %c0 = arith.constant 0 : index
    %c0_0 = arith.constant 0 : index
    %0 = vector.load %arg3[%c0, %c0_0] : memref<2x8xf32, #tpu.memory_space<vmem>>, vector<1x8xf32>
    %c1 = arith.constant 1 : index
    %c0_1 = arith.constant 0 : index
    %1 = vector.load %arg3[%c1, %c0_1] : memref<2x8xf32, #tpu.memory_space<vmem>>, vector<1x8xf32>
    %c0_2 = arith.constant 0 : index
    %c0_3 = arith.constant 0 : index
    %2 = vector.load %arg5[%c0_2, %c0_3] : memref<4x32xf32, #tpu.memory_space<vmem>>, vector<1x32xf32>
    %c1_4 = arith.constant 1 : index
    %c0_5 = arith.constant 0 : index
    %3 = vector.load %arg5[%c1_4, %c0_5] : memref<4x32xf32, #tpu.memory_space<vmem>>, vector<1x32xf32>
    %c2 = arith.constant 2 : index
    %c0_6 = arith.constant 0 : index
    %4 = vector.load %arg5[%c2, %c0_6] : memref<4x32xf32, #tpu.memory_space<vmem>>, vector<1x32xf32>
    %c3 = arith.constant 3 : index
    %c0_7 = arith.constant 0 : index
    %5 = vector.load %arg5[%c3, %c0_7] : memref<4x32xf32, #tpu.memory_space<vmem>>, vector<1x32xf32>
    %c0_8 = arith.constant 0 : index
    %c0_9 = arith.constant 0 : index
    %6 = vector.load %arg4[%c0_8, %c0_9] : memref<8x32xf32, #tpu.memory_space<vmem>>, vector<8x32xf32>
    %c0_10 = arith.constant 0 : index
    %c0_11 = arith.constant 0 : index
    %7 = vector.load %arg6[%c0_10, %c0_11] : memref<152x32xf32, #tpu.memory_space<vmem>>, vector<152x32xf32>
    %c0_12 = arith.constant 0 : index
    %c0_13 = arith.constant 0 : index
    %8 = vector.load %arg1[%c0_12, %c0_13] : memref<128x2xf32, #tpu.memory_space<vmem>>, vector<128x1xf32>
    %c0_14 = arith.constant 0 : index
    %c1_15 = arith.constant 1 : index
    %9 = vector.load %arg1[%c0_14, %c1_15] : memref<128x2xf32, #tpu.memory_space<vmem>>, vector<128x1xf32>
    %10 = vector.broadcast %8 : vector<128x1xf32> to vector<128x8xf32>
    %11 = vector.broadcast %0 : vector<1x8xf32> to vector<128x8xf32>
    %12 = arith.mulf %10, %11 : vector<128x8xf32>
    %13 = vector.broadcast %1 : vector<1x8xf32> to vector<128x8xf32>
    %14 = arith.addf %12, %13 : vector<128x8xf32>
    %15 = vector.broadcast %9 : vector<128x1xf32> to vector<128x8xf32>
    %16 = vector.broadcast %0 : vector<1x8xf32> to vector<128x8xf32>
    %17 = arith.mulf %15, %16 : vector<128x8xf32>
    %18 = vector.broadcast %1 : vector<1x8xf32> to vector<128x8xf32>
    %19 = arith.addf %17, %18 : vector<128x8xf32>
    %cst = arith.constant dense<0.000000e+00> : vector<128x32xf32>
    %20 = tpu.matmul %14, %6, %cst {dimension_numbers = #tpu.dot_dimension_numbers<[1], [0], [0], [1], [0, 0, 1, 1], [], []>} : vector<128x8xf32>, vector<8x32xf32>, vector<128x32xf32> -> vector<128x32xf32>
    %21 = vector.broadcast %2 : vector<1x32xf32> to vector<128x32xf32>
    %22 = arith.addf %20, %21 : vector<128x32xf32>
    %cst_16 = arith.constant dense<0.000000e+00> : vector<128x32xf32>
    %23 = tpu.matmul %19, %6, %cst_16 {dimension_numbers = #tpu.dot_dimension_numbers<[1], [0], [0], [1], [0, 0, 1, 1], [], []>} : vector<128x8xf32>, vector<8x32xf32>, vector<128x32xf32> -> vector<128x32xf32>
    %24 = vector.broadcast %2 : vector<1x32xf32> to vector<128x32xf32>
    %25 = arith.addf %23, %24 : vector<128x32xf32>
    %26 = tpu.iota {dimensions = array<i32: 0>} : vector<128x1xi32>
    %c31_i32 = arith.constant 31 : i32
    %27 = vector.broadcast %c31_i32 : i32 to vector<128x1xi32>
    %28 = arith.andi %26, %27 : vector<128x1xi32>
    %29 = tpu.iota {dimensions = array<i32: 1>} : vector<128x152xi32>
    %c2_i32 = arith.constant 2 : i32
    %30 = vector.broadcast %c2_i32 : i32 to vector<128x1xi32>
    %31 = arith.muli %30, %28 : vector<128x1xi32>
    %c0_17 = arith.constant 0 : index
    %c0_18 = arith.constant 0 : index
    %32 = vector.load %arg2[%c0_17, %c0_18] : memref<128x6xi32, #tpu.memory_space<vmem>>, vector<128x1xi32>
    %c0_19 = arith.constant 0 : index
    %c2_20 = arith.constant 2 : index
    %33 = vector.load %arg2[%c0_19, %c2_20] : memref<128x6xi32, #tpu.memory_space<vmem>>, vector<128x1xi32>
    %c0_21 = arith.constant 0 : index
    %c4 = arith.constant 4 : index
    %34 = vector.load %arg2[%c0_21, %c4] : memref<128x6xi32, #tpu.memory_space<vmem>>, vector<128x1xi32>
    %35 = vector.broadcast %31 : vector<128x1xi32> to vector<128x152xi32>
    %36 = arith.cmpi eq, %29, %35 : vector<128x152xi32>
    %c64_i32 = arith.constant 64 : i32
    %37 = vector.broadcast %c64_i32 : i32 to vector<128x1xi32>
    %38 = arith.addi %37, %32 : vector<128x1xi32>
    %39 = vector.broadcast %38 : vector<128x1xi32> to vector<128x152xi32>
    %40 = arith.cmpi eq, %29, %39 : vector<128x152xi32>
    %41 = arith.ori %36, %40 : vector<128x152xi1>
    %c88_i32 = arith.constant 88 : i32
    %42 = vector.broadcast %c88_i32 : i32 to vector<128x1xi32>
    %43 = arith.addi %42, %33 : vector<128x1xi32>
    %44 = vector.broadcast %43 : vector<128x1xi32> to vector<128x152xi32>
    %45 = arith.cmpi eq, %29, %44 : vector<128x152xi32>
    %46 = arith.ori %41, %45 : vector<128x152xi1>
    %c95_i32 = arith.constant 95 : i32
    %47 = vector.broadcast %c95_i32 : i32 to vector<128x1xi32>
    %48 = arith.addi %47, %34 : vector<128x1xi32>
    %49 = vector.broadcast %48 : vector<128x1xi32> to vector<128x152xi32>
    %50 = arith.cmpi eq, %29, %49 : vector<128x152xi32>
    %51 = arith.ori %46, %50 : vector<128x152xi1>
    %52 = arith.extui %51 : vector<128x152xi1> to vector<128x152xi32>
    %53 = arith.sitofp %52 : vector<128x152xi32> to vector<128x152xf32>
    %cst_22 = arith.constant dense<0.000000e+00> : vector<128x32xf32>
    %54 = tpu.matmul %53, %7, %cst_22 {dimension_numbers = #tpu.dot_dimension_numbers<[1], [0], [0], [1], [0, 0, 1, 1], [], []>} : vector<128x152xf32>, vector<152x32xf32>, vector<128x32xf32> -> vector<128x32xf32>
    %c2_i32_23 = arith.constant 2 : i32
    %55 = vector.broadcast %c2_i32_23 : i32 to vector<128x1xi32>
    %56 = arith.muli %55, %28 : vector<128x1xi32>
    %c1_i32 = arith.constant 1 : i32
    %57 = vector.broadcast %c1_i32 : i32 to vector<128x1xi32>
    %58 = arith.addi %56, %57 : vector<128x1xi32>
    %c0_24 = arith.constant 0 : index
    %c1_25 = arith.constant 1 : index
    %59 = vector.load %arg2[%c0_24, %c1_25] : memref<128x6xi32, #tpu.memory_space<vmem>>, vector<128x1xi32>
    %c0_26 = arith.constant 0 : index
    %c3_27 = arith.constant 3 : index
    %60 = vector.load %arg2[%c0_26, %c3_27] : memref<128x6xi32, #tpu.memory_space<vmem>>, vector<128x1xi32>
    %c0_28 = arith.constant 0 : index
    %c5 = arith.constant 5 : index
    %61 = vector.load %arg2[%c0_28, %c5] : memref<128x6xi32, #tpu.memory_space<vmem>>, vector<128x1xi32>
    %62 = vector.broadcast %58 : vector<128x1xi32> to vector<128x152xi32>
    %63 = arith.cmpi eq, %29, %62 : vector<128x152xi32>
    %c64_i32_29 = arith.constant 64 : i32
    %64 = vector.broadcast %c64_i32_29 : i32 to vector<128x1xi32>
    %65 = arith.addi %64, %59 : vector<128x1xi32>
    %66 = vector.broadcast %65 : vector<128x1xi32> to vector<128x152xi32>
    %67 = arith.cmpi eq, %29, %66 : vector<128x152xi32>
    %68 = arith.ori %63, %67 : vector<128x152xi1>
    %c88_i32_30 = arith.constant 88 : i32
    %69 = vector.broadcast %c88_i32_30 : i32 to vector<128x1xi32>
    %70 = arith.addi %69, %60 : vector<128x1xi32>
    %71 = vector.broadcast %70 : vector<128x1xi32> to vector<128x152xi32>
    %72 = arith.cmpi eq, %29, %71 : vector<128x152xi32>
    %73 = arith.ori %68, %72 : vector<128x152xi1>
    %c95_i32_31 = arith.constant 95 : i32
    %74 = vector.broadcast %c95_i32_31 : i32 to vector<128x1xi32>
    %75 = arith.addi %74, %61 : vector<128x1xi32>
    %76 = vector.broadcast %75 : vector<128x1xi32> to vector<128x152xi32>
    %77 = arith.cmpi eq, %29, %76 : vector<128x152xi32>
    %78 = arith.ori %73, %77 : vector<128x152xi1>
    %79 = arith.extui %78 : vector<128x152xi1> to vector<128x152xi32>
    %80 = arith.sitofp %79 : vector<128x152xi32> to vector<128x152xf32>
    %cst_32 = arith.constant dense<0.000000e+00> : vector<128x32xf32>
    %81 = tpu.matmul %80, %7, %cst_32 {dimension_numbers = #tpu.dot_dimension_numbers<[1], [0], [0], [1], [0, 0, 1, 1], [], []>} : vector<128x152xf32>, vector<152x32xf32>, vector<128x32xf32> -> vector<128x32xf32>
    %c0_33 = arith.constant 0 : index
    %c0_34 = arith.constant 0 : index
    %82 = vector.load %arg7[%c0_33, %c0_34] : memref<128x32xf32, #tpu.memory_space<vmem>>, vector<32x32xf32>
    %cst_35 = arith.constant dense<0.000000e+00> : vector<128x32xf32>
    %83 = tpu.matmul %22, %82, %cst_35 {dimension_numbers = #tpu.dot_dimension_numbers<[1], [0], [0], [1], [0, 0, 1, 1], [], []>} : vector<128x32xf32>, vector<32x32xf32>, vector<128x32xf32> -> vector<128x32xf32>
    %c32 = arith.constant 32 : index
    %c0_36 = arith.constant 0 : index
    %84 = vector.load %arg7[%c32, %c0_36] : memref<128x32xf32, #tpu.memory_space<vmem>>, vector<32x32xf32>
    %cst_37 = arith.constant dense<0.000000e+00> : vector<128x32xf32>
    %85 = tpu.matmul %54, %84, %cst_37 {dimension_numbers = #tpu.dot_dimension_numbers<[1], [0], [0], [1], [0, 0, 1, 1], [], []>} : vector<128x32xf32>, vector<32x32xf32>, vector<128x32xf32> -> vector<128x32xf32>
    %86 = arith.addf %83, %85 : vector<128x32xf32>
    %c64 = arith.constant 64 : index
    %c0_38 = arith.constant 0 : index
    %87 = vector.load %arg7[%c64, %c0_38] : memref<128x32xf32, #tpu.memory_space<vmem>>, vector<32x32xf32>
    %cst_39 = arith.constant dense<0.000000e+00> : vector<128x32xf32>
    %88 = tpu.matmul %25, %87, %cst_39 {dimension_numbers = #tpu.dot_dimension_numbers<[1], [0], [0], [1], [0, 0, 1, 1], [], []>} : vector<128x32xf32>, vector<32x32xf32>, vector<128x32xf32> -> vector<128x32xf32>
    %89 = arith.addf %86, %88 : vector<128x32xf32>
    %c96 = arith.constant 96 : index
    %c0_40 = arith.constant 0 : index
    %90 = vector.load %arg7[%c96, %c0_40] : memref<128x32xf32, #tpu.memory_space<vmem>>, vector<32x32xf32>
    %cst_41 = arith.constant dense<0.000000e+00> : vector<128x32xf32>
    %91 = tpu.matmul %81, %90, %cst_41 {dimension_numbers = #tpu.dot_dimension_numbers<[1], [0], [0], [1], [0, 0, 1, 1], [], []>} : vector<128x32xf32>, vector<32x32xf32>, vector<128x32xf32> -> vector<128x32xf32>
    %92 = arith.addf %89, %91 : vector<128x32xf32>
    %93 = vector.broadcast %3 : vector<1x32xf32> to vector<128x32xf32>
    %94 = arith.addf %92, %93 : vector<128x32xf32>
    %cst_42 = arith.constant dense<0.000000e+00> : vector<128xf32>
    %95 = vector.multi_reduction <add>, %94, %cst_42 [1] : vector<128x32xf32> to vector<128xf32>
    %96 = vector.shape_cast %95 : vector<128xf32> to vector<128x1xf32>
    %cst_43 = arith.constant 3.200000e+01 : f32
    %97 = vector.broadcast %cst_43 : f32 to vector<128x1xf32>
    %98 = arith.divf %96, %97 : vector<128x1xf32>
    %99 = vector.broadcast %98 : vector<128x1xf32> to vector<128x32xf32>
    %100 = arith.subf %94, %99 : vector<128x32xf32>
    %101 = arith.mulf %100, %100 : vector<128x32xf32>
    %cst_44 = arith.constant dense<0.000000e+00> : vector<128xf32>
    %102 = vector.multi_reduction <add>, %101, %cst_44 [1] : vector<128x32xf32> to vector<128xf32>
    %103 = vector.shape_cast %102 : vector<128xf32> to vector<128x1xf32>
    %cst_45 = arith.constant 3.200000e+01 : f32
    %104 = vector.broadcast %cst_45 : f32 to vector<128x1xf32>
    %105 = arith.divf %103, %104 : vector<128x1xf32>
    %cst_46 = arith.constant 9.99999974E-6 : f32
    %106 = vector.broadcast %cst_46 : f32 to vector<128x1xf32>
    %107 = arith.addf %105, %106 : vector<128x1xf32>
    %108 = math.rsqrt %107 : vector<128x1xf32>
    %109 = vector.broadcast %108 : vector<128x1xf32> to vector<128x32xf32>
    %110 = arith.mulf %100, %109 : vector<128x32xf32>
    %111 = vector.broadcast %4 : vector<1x32xf32> to vector<128x32xf32>
    %112 = arith.mulf %110, %111 : vector<128x32xf32>
    %113 = vector.broadcast %5 : vector<1x32xf32> to vector<128x32xf32>
    %114 = arith.addf %112, %113 : vector<128x32xf32>
    %c0_47 = arith.constant 0 : index
    %c0_48 = arith.constant 0 : index
    %115 = vector.load %arg8[%c0_47, %c0_48] : memref<128x32xf32, #tpu.memory_space<vmem>>, vector<128x32xf32>
    tpu.vector_store %arg8[%c0_47, %c0_48], %114 {strides = array<i32>} : memref<128x32xf32, #tpu.memory_space<vmem>>, vector<128x32xf32>,
    return
  }
  func.func @transform_0(%arg0: i32) -> (i32, i32) {
    %c0_i32 = arith.constant 0 : i32
    %c0_i32_0 = arith.constant 0 : i32
    return %arg0, %c0_i32 : i32, i32
  }
  func.func @transform_1(%arg0: i32) -> (i32, i32) {
    %c0_i32 = arith.constant 0 : i32
    %c0_i32_0 = arith.constant 0 : i32
    return %arg0, %c0_i32 : i32, i32
  }
  func.func @transform_2(%arg0: i32) -> (i32, i32) {
    %c0_i32 = arith.constant 0 : i32
    %c0_i32_0 = arith.constant 0 : i32
    %c0_i32_1 = arith.constant 0 : i32
    return %c0_i32, %c0_i32_0 : i32, i32
  }
  func.func @transform_3(%arg0: i32) -> (i32, i32) {
    %c0_i32 = arith.constant 0 : i32
    %c0_i32_0 = arith.constant 0 : i32
    %c0_i32_1 = arith.constant 0 : i32
    return %c0_i32, %c0_i32_0 : i32, i32
  }
  func.func @transform_4(%arg0: i32) -> (i32, i32) {
    %c0_i32 = arith.constant 0 : i32
    %c0_i32_0 = arith.constant 0 : i32
    %c0_i32_1 = arith.constant 0 : i32
    return %c0_i32, %c0_i32_0 : i32, i32
  }
  func.func @transform_5(%arg0: i32) -> (i32, i32) {
    %c0_i32 = arith.constant 0 : i32
    %c0_i32_0 = arith.constant 0 : i32
    %c0_i32_1 = arith.constant 0 : i32
    return %c0_i32, %c0_i32_0 : i32, i32
  }
  func.func @transform_6(%arg0: i32) -> (i32, i32) {
    %c0_i32 = arith.constant 0 : i32
    %c0_i32_0 = arith.constant 0 : i32
    %c0_i32_1 = arith.constant 0 : i32
    return %c0_i32, %c0_i32_0 : i32, i32
  }
  func.func @transform_7(%arg0: i32) -> (i32, i32) {
    %c0_i32 = arith.constant 0 : i32
    %c0_i32_0 = arith.constant 0 : i32
    return %arg0, %c0_i32 : i32, i32
  }
}

</mosaic_0001>

<bundles_post_ra>
// kernel: custom_embedding_forward.1
= control target key start
LH: loop header
LB: loop body
LE: loop exit
PB: predicated region body
PF: predicated region fallthrough
CT: control target
= control target key end

     0   :  { %12 = vsyncpa [#allocation3], 0  ;;  %s6454_s0 = inlined_call_operand.vmem [shape: f32[256,2], index: 0, kind: input, shape index: {}]   ;;  %s6455_s1 = inlined_call_operand.vmem [shape: s32[256,6], index: 1, kind: input, shape index: {}]   ;;  %s6456_s2 = inlined_call_operand.vmem [shape: f32[2,8], index: 2, kind: input, shape index: {}]   ;;  %s6457_s3 = inlined_call_operand.vmem [shape: f32[8,32], index: 3, kind: input, shape index: {}]   ;;  %s6458_s4 = inlined_call_operand.vmem [shape: f32[4,32], index: 4, kind: input, shape index: {}]   ;;  %s6459_s5 = inlined_call_operand.vmem [shape: f32[152,32], index: 5, kind: input, shape index: {}]   ;;  %s6460_s6 = inlined_call_operand.vmem [shape: f32[128,32], index: 6, kind: input, shape index: {}]   ;;  %s6461_s7 = inlined_call_operand.hbm [shape: f32[256,32], index: 7, kind: output, shape index: {}]  }
   0x1   :  { %14 = vsyncpa [#allocation3 + $0x1], 0  ;;  %s4343_s24 = smov 0   ;;  %s4345_s25 = smov 0  }
   0x2   :  { %s4347_s26 = smov 0   ;;  %s4349_s27 = smov 0  }
   0x3 LB: > { %s4364_s28 = sadd.s32 4294967295, %s4290_s27   ;;  %s3528_s29 = sadd.s32 4294967294, %s4290_s27   ;;  %s4290_s27 = sphi %s4349_s27, %s6668_s27   ;;  %s4286_s26 = sphi %s4347_s26, %s6667_s26   ;;  %s4282_s25 = sphi %s4345_s25, %s6666_s25   ;;  %s4278_s24 = sphi %s4343_s24, %s6665_s24  }
   0x4   : > { %s4368_s30 = sadd.s32 1, %s4290_s27   ;;  %s184_s8 = sadd.s32 1, %s4286_s26 }
   0x5   : > { %s181_s9 = ssub.s32 %s4290_s27, %s4368_s30  ;;  %p194_p0 = scmp.ne.s32.totalorder %s4286_s26, %s4282_s25 }
   0x6   : > { %p182_p1 = scmp.eq.s32.totalorder %s181_s9, 0  ;;  %p195_p2 = scmp.eq.s32.totalorder %s4364_s28, 1 }
   0x7   : > { %p200_p3 = scmp.ne.s32.totalorder %s4282_s25, %s4278_s24  ;;  %p201_p4 = scmp.eq.s32.totalorder %s3528_s29, 1 }
   0x8   : > { %s4379_s10 = scalar_select %p182_p1, %s4286_s26, %s184_s8  }
   0x9   : > { %p4381_p5 = por %p195_p2, %p194_p0  ;;  %p4385_p6 = por %p201_p4, %p200_p3 }
   0xa   : > { %p3531_p7 = scmp.ge.s32.totalorder %s4290_s27, 1  ;;  %p252_p8 = scmp.lt.s32.totalorder %s4290_s27, 3 }
   0xc   : > { %p253_p9 = pnand %p3531_p7, %p252_p8 }
   0xe   : > { %256 = sbr.rel (%p253_p9) target bundleno = 1257 (0x4e9), region = 48 }
  0x13   : > { %s3533_s13 = sshll.u32 %s4364_s28, 4  ;;  %v6466_v0 = vmov 0   ;;  %v6468_v1 = vmov 4   ;;  %v308_v12 = vld [vmem:[%s6457_s3] sm:$0xff]  ;;  %v6464_v22 = vmov 1   ;;  %v6472_v30 = vmov 0.0  }
  0x14   : > { %4116 = vset.pattern.permute.xlu1 %v6466_v0  ;;  %p290_p10 = scmp.lt.s32.totalorder %s3533_s13, 31  ;;  %4129 = vset.pattern.permute.xlu0 %v6468_v1  ;;  %v4296_v40 = vmov 2   ;;  %vm564_vm0 = vcmask 64512   ;;  %s286_s19 = sand.u32 1, %s4282_s25  }
  0x15   : > { %3887 = vmatprep.subr.mxu0 %v308_v12  ;;  %3913 = vmatprep.subr.mxu1 %v308_v12  ;;  %s3532_s23 = sshll.u32 %s286_s19, 7  ;;  %s3772_s9 = sshll.u32 %s4364_s28, 11 }
  0x16   : > { %s6670_s13 = smov (!%p290_p10, %s3533_s13), 31  ;;  %3888 = vmatpush3.msra.mxu0 %v308_v12  ;;  %3914 = vmatpush3.msra.mxu1 %v308_v12  ;;  %s6403_s16 = scalar_lea.hbm %s6461_s7, %s3772_s9 }
  0x17   : > { %s3534_s14 = sshll.u32 %s6670_s13, 3  ;;  %1548 = vmatprep.subr.mxu0 %v6472_v30  ;;  %2189 = vmatprep.subr.mxu1 %v6472_v30  ;;  %s6414_s28 = scalar_lea.sflag [#allocation3], %s286_s19 }
  0x18   : > { %s4397_s17 = scalar_lea.vmem %s6454_s0, %s3534_s14  ;;  %s4402_s20 = scalar_lea.vmem %s6455_s1, %s3534_s14 }
  0x19   : > { %v4405_v2 = vld [vmem:[%s4397_s17 + $0x10] sm:$0xff]  ;;  %v4408_v3 = vld [vmem:[%s4402_s20 + $0x18] sm:$0xff]  ;;  %v4426_v8 = vld [vmem:[%s4397_s17 + $0x28] sm:$0xff]  ;;  %s4300_s18 = smov [#allocation2]  }
  0x1a   : > { %356 = vperm.xlu1 %4116, %v4405_v2   ;;  %v4412_v4 = vadd.s32 95, %v4408_v3  ;;  %v4415_v5 = vld [vmem:[%s4402_s20 + $0x30] sm:$0xff]  ;;  %v4418_v6 = vld [vmem:[%s4397_s17 + $0x18] sm:$0xff]  ;;  %v328_v9 = vld [vmem:[%s4397_s17] sm:$0xff]  ;;  %v4521_v39 = vadd.s32 64, %v4408_v3  ;;  %v4530_v42 = vadd.s32 88, %v4408_v3 }
  0x1b   : > { %v4422_v7 = vadd.s32 95, %v4415_v5  ;;  %v4432_v10 = vld [vmem:[%s4397_s17 + $0x38] sm:$0xff]  ;;  %v329_v11 = vld [vmem:[%s4397_s17 + $0x8] sm:$0xff]  ;;  %v332_v14 = vld [vmem:[%s4397_s17 + $0x20] sm:$0xff]  ;;  %v4633_v12 = vadd.s32 88, %v4415_v5  ;;  %s4234_s21 = sshll.u32 %s4300_s18, 4  ;;  %s4235_s21 = int_to_ptr.vmem [resolvable:$false] %s4234_s21 }
  0x1c   : > { %1333 = vperm.xlu0 %4129, %v4412_v4   ;;  %v4441_v13 = vld [vmem:[%s4397_s17 + $0x48] sm:$0xff]  ;;  %v339_v15 = vld [vmem:[%s4397_s17 + $0x58] sm:$0xff]  ;;  %v4447_v16 = vld [vmem:[%s4397_s17 + $0x30] sm:$0xff]  ;;  %s4236_s22 = scalar_lea.vmem %s4235_s21, 4096 }
  0x1d   : > { %6491 = vst [vmem:[#allocation5_spill] sm:$0xff] %v4422_v7  ;;  %v4450_v17 = vld [vmem:[%s4397_s17 + $0x68] sm:$0xff]  ;;  %v336_v18 = vld [vmem:[%s4397_s17 + $0x40] sm:$0xff]  ;;  %v4456_v19 = vld [vmem:[%s4397_s17 + $0x78] sm:$0xff] }
  0x1e   : > { %361 = vperm.xlu1 %4116, %v4418_v6   ;;  %v4460_v20 = vld [vmem:[%s4397_s17 + $0x50] sm:$0xff]  ;;  %v1003_v21 = vld [vmem:[%s4402_s20] sm:$0xff]  ;;  %v4483_v29 = vld [vmem:[%s4402_s20 + $0x38] sm:$0xff] }
  0x1f   : > { %v4466_v23 = vld [vmem:[%s4397_s17 + $0x60] sm:$0xff]  ;;  %v4468_v24 = vadd.s32 64, %v1003_v21  ;;  %v342_v25 = vld [vmem:[%s4397_s17 + $0x70] sm:$0xff]  ;;  %v4477_v27 = vadd.s32 95, %v1003_v21  ;;  %v1004_v31 = vld [vmem:[%s4402_s20 + $0x8] sm:$0xff]  ;;  %v4492_v32 = vadd.s32 64, %v4483_v29 }
  0x20   : > { %1342 = vperm.xlu0 %4129, %v4422_v7   ;;  %v4473_v26 = vld [vmem:[%s4402_s20 + $0x20] sm:$0xff]  ;;  %v4494_v33 = vadd.s32 64, %v1004_v31  ;;  %v4499_v34 = vadd.s32 95, %v1004_v31  ;;  %v1005_v35 = vld [vmem:[%s4402_s20 + $0x10] sm:$0xff]  ;;  %v4518_v38 = vadd.s32 88, %v1003_v21  ;;  %v4526_v41 = vadd.s32 88, %v1004_v31 }
  0x21   : > { %v4480_v28 = vadd.s32 64, %v4473_v26  ;;  %6492 = vst [vmem:[#allocation6_spill] sm:$0xff] %v4492_v32  ;;  %v4508_v36 = vadd.s32 64, %v1005_v35  ;;  %v4513_v37 = vadd.s32 95, %v1005_v35  ;;  %v4533_v43 = vadd.s32 88, %v1005_v35  ;;  %v1008_v44 = vld [vmem:[%s4402_s20 + $0x28] sm:$0xff] }
  0x22   : > { %371 = vperm.xlu1 %4116, %v4426_v8   ;;  %v4539_v45 = vadd.s32 88, %v1008_v44  ;;  %v4542_v46 = vld [vmem:[%s4402_s20 + $0x40] sm:$0xff]  ;;  %v4551_v48 = vld [vmem:[%s4402_s20 + $0x48] sm:$0xff]  ;;  %v4555_v49 = vadd.s32 88, %v4473_v26  ;;  %v4562_v51 = vld [vmem:[%s4402_s20 + $0x50] sm:$0xff]  ;;  %v4571_v53 = vadd.s32 95, %v4473_v26 }
  0x23   : > { %v4548_v47 = vadd.s32 88, %v4542_v46  ;;  %v4559_v50 = vadd.s32 88, %v4551_v48  ;;  %v4568_v52 = vadd.s32 88, %v4562_v51  ;;  %v4574_v54 = vld [vmem:[%s4402_s20 + $0x58] sm:$0xff]  ;;  %v4583_v56 = vld [vmem:[%s4402_s20 + $0x60] sm:$0xff]  ;;  %v4591_v58 = vld [vmem:[%s4402_s20 + $0x68] sm:$0xff] }
  0x24   : > { %4138 = vset.pattern.permute.xlu0 %v6466_v0  ;;  %v4579_v55 = vadd.s32 88, %v4574_v54  ;;  %v4587_v57 = vadd.s32 88, %v4583_v56  ;;  %v4594_v59 = vadd.s32 64, %v1008_v44  ;;  %v4598_v60 = vadd.s32 88, %v4591_v58  ;;  %v4601_v61 = vld [vmem:[%s4402_s20 + $0x70] sm:$0xff] }
  0x25   : > { %346 = vperm.xlu0 %4138, %v328_v9   ;;  %6493 = vst [vmem:[#allocation7_spill] sm:$0xff] %v4559_v50  ;;  %6494 = vst [vmem:[#allocation8_spill] sm:$0xff] %v4568_v52  ;;  %v4605_v62 = vadd.s32 95, %v1008_v44  ;;  %v4609_v63 = vadd.s32 88, %v4601_v61 }
  0x26   : > { %381 = vperm.xlu1 %4116, %v4432_v10   ;;  %6495 = vst [vmem:[#allocation9_spill] sm:$0xff] %v4579_v55  ;;  %6496 = vst [vmem:[#allocation10_spill] sm:$0xff] %v4594_v59 }
  0x27   : > { %6497 = vst [vmem:[#allocation11_spill] sm:$0xff] %v4605_v62  ;;  %6498 = vst [vmem:[#allocation12_spill] sm:$0xff] %v4609_v63 }
  0x29   : > { %351 = vperm.xlu0 %4138, %v329_v11  }
  0x2a   : > { %391 = vperm.xlu1 %4116, %v4441_v13  }
  0x2d   : > { %366 = vperm.xlu0 %4138, %v332_v14  }
  0x2e   : > { %401 = vperm.xlu1 %4116, %v339_v15  }
  0x31   : > { %376 = vperm.xlu0 %4138, %v4447_v16  }
  0x32   : > { %411 = vperm.xlu1 %4116, %v4450_v17  }
  0x35   : > { %386 = vperm.xlu0 %4138, %v336_v18  }
  0x36   : > { %421 = vperm.xlu1 %4116, %v4456_v19  }
  0x39   : > { %396 = vperm.xlu0 %4138, %v4460_v20  }
  0x3a   : > { %4117 = vset.pattern.permute.xlu1 %v6464_v22 }
  0x3b   : > { %469 = vperm.xlu1 %4117, %v329_v11  }
  0x3d   : > { %406 = vperm.xlu0 %4138, %v4466_v23  }
  0x3f   : > { %4118 = vset.pattern.permute.xlu1 %v6466_v0 }
  0x40   : > { %1068 = vperm.xlu1 %4118, %v4468_v24  }
  0x41   : > { %416 = vperm.xlu0 %4138, %v342_v25  }
  0x44   : > { %4119 = vset.pattern.permute.xlu1 %v6468_v1 }
  0x45   : > { %1324 = vperm.xlu1 %4119, %v4477_v27   ;;  %1080 = vperm.xlu0 %4138, %v4480_v28  }
  0x49   : > { %4120 = vset.pattern.permute.xlu1 %v6466_v0  ;;  %1089 = vperm.xlu0 %4138, %v4492_v32  }
  0x4a   : > { %1071 = vperm.xlu1 %4120, %v4494_v33  }
  0x4d   : > { %4140 = vset.pattern.permute.xlu0 %v6464_v22 }
  0x4e   : > { %4121 = vset.pattern.permute.xlu1 %v6468_v1  ;;  %465 = vperm.xlu0 %4140, %v328_v9  }
  0x4f   : > { %1327 = vperm.xlu1 %4121, %v4499_v34  }
  0x52   : > { %473 = vperm.xlu0 %4140, %v4405_v2   ;;  %v4612_v2 = vld [vmem:[%s4402_s20 + $0x78] sm:$0xff] }
  0x53   : > { %4122 = vset.pattern.permute.xlu1 %v6464_v22  ;;  %v4618_v3 = vadd.s32 88, %v4612_v2 }
  0x54   : > { %477 = vperm.xlu1 %4122, %v4418_v6  }
  0x55   : > { %6499 = vst [vmem:[#allocation13_spill] sm:$0xff] %v4618_v3 }
  0x56   : > { %485 = vperm.xlu0 %4140, %v4426_v8   ;;  %v4624_v8 = vadd.s32 64, %v4415_v5 }
  0x58   : > { %4123 = vset.pattern.permute.xlu1 %v6466_v0  ;;  %6500 = vst [vmem:[#allocation14_spill] sm:$0xff] %v4624_v8 }
  0x59   : > { %1074 = vperm.xlu1 %4123, %v4508_v36  }
  0x5a   : > { %497 = vperm.xlu0 %4140, %v336_v18  }
  0x5d   : > { %4124 = vset.pattern.permute.xlu1 %v6468_v1 }
  0x5e   : > { %1330 = vperm.xlu1 %4124, %v4513_v37   ;;  %509 = vperm.xlu0 %4140, %v339_v15   ;;  %v4643_v15 = vld [vmem:[%s6456_s2] ss:$0 sm:$0xff] }
  0x62   : > { %4125 = vset.pattern.permute.xlu1 %v6464_v22  ;;  %521 = vperm.xlu0 %4140, %v342_v25  }
  0x63   : > { %481 = vperm.xlu1 %4125, %v332_v14  }
  0x66   : > { %4143 = vset.pattern.permute.xlu0 %v4296_v40 }
  0x67   : > { %4126 = vset.pattern.permute.xlu1 %v6466_v0  ;;  %1196 = vperm.xlu0 %4143, %v4518_v38  }
  0x68   : > { %1077 = vperm.xlu1 %4126, %v4521_v39  }
  0x6b   : > { %1199 = vperm.xlu0 %4143, %v4526_v41  }
  0x6c   : > { %4127 = vset.pattern.permute.xlu1 %v4296_v40 }
  0x6d   : > { %1205 = vperm.xlu1 %4127, %v4530_v42  }
  0x6f   : > { %1202 = vperm.xlu0 %4143, %v4533_v43  }
  0x71   : > { %4128 = vset.pattern.permute.xlu1 %v6464_v22 }
  0x72   : > { %489 = vperm.xlu1 %4128, %v4447_v16  }
  0x73   : > { %1211 = vperm.xlu0 %4143, %v4539_v45  }
  0x76   : > { %493 = vperm.xlu1 %4128, %v4432_v10   ;;  %v6462_v10 = vmov 3  }
  0x77   : > { %1220 = vperm.xlu0 %4143, %v4548_v47  }
  0x7a   : > { %4130 = vset.pattern.permute.xlu1 %v4296_v40 }
  0x7b   : > { %1208 = vperm.xlu1 %4130, %v4555_v49   ;;  %1223 = vperm.xlu0 %4143, %v4559_v50   ;;  %v6507_v50 = vmov 1  }
  0x7f   : > { %4131 = vset.pattern.permute.xlu1 %v6468_v1  ;;  %1226 = vperm.xlu0 %4143, %v4568_v52  }
  0x80   : > { %1336 = vperm.xlu1 %4131, %v4571_v53  }
  0x83   : > { %1229 = vperm.xlu0 %4143, %v4579_v55  }
  0x84   : > { %4132 = vset.pattern.permute.xlu1 %v6464_v22 }
  0x85   : > { %501 = vperm.xlu1 %4132, %v4441_v13  }
  0x87   : > { %1232 = vperm.xlu0 %4143, %v4587_v57  }
  0x89   : > { %4133 = vset.pattern.permute.xlu1 %v6466_v0 }
  0x8a   : > { %1083 = vperm.xlu1 %4133, %v4594_v59   ;;  %v4941_v59 = vadd.s32 95, %v4574_v54 }
  0x8b   : > { %1235 = vperm.xlu0 %4143, %v4598_v60  }
  0x8e   : > { %4134 = vset.pattern.permute.xlu1 %v6468_v1 }
  0x8f   : > { %1339 = vperm.xlu1 %4134, %v4605_v62   ;;  %1238 = vperm.xlu0 %4143, %v4609_v63  }
  0x93   : > { %4135 = vset.pattern.permute.xlu1 %v6464_v22  ;;  %1241 = vperm.xlu0 %4143, %v4618_v3   ;;  %v6475_v3 = vmov 5  }
  0x94   : > { %505 = vperm.xlu1 %4135, %v4460_v20   ;;  %v4650_v20 = vld [vmem:[%s6456_s2 + $0x1] ss:$0 sm:$0xff] }
  0x95   : > { %v357_v6 = vpop.permute.xlu1 %356 }
  0x96   : > { %v430_v25 = vmul.f32 %v4643_v15, %v357_v6 }
  0x97   : > { %v4626_v9 = vpop.permute.xlu0 %1333  ;;  %4174 = vset.pattern.permute.xlu0 %v6462_v10 }
  0x98   : > { %4136 = vset.pattern.permute.xlu1 %v6466_v0  ;;  %1854 = vperm.xlu0 %4174, %v4518_v38  }
  0x99   : > { %v362_v11 = vpop.permute.xlu1 %361  ;;  %1086 = vperm.xlu1 %4136, %v4624_v8  }
  0x9a   : > { %v431_v38 = vmul.f32 %v4643_v15, %v362_v11 }
  0x9b   : > { %v4635_v13 = vpop.permute.xlu0 %1342 }
  0x9c   : > { %1857 = vperm.xlu0 %4174, %v4526_v41  }
  0x9d   : > { %v372_v14 = vpop.permute.xlu1 %371  ;;  %4137 = vset.pattern.permute.xlu1 %v4296_v40 }
  0x9e   : > { %1214 = vperm.xlu1 %4137, %v4633_v12  }
  0xa0   : > { %v347_v16 = vpop.permute.xlu0 %346  ;;  %1860 = vperm.xlu0 %4174, %v4533_v43   ;;  %v450_v43 = vadd.f32 %v4650_v20, %v430_v25 }
  0xa1   : > { %v428_v5 = vmul.f32 %v4643_v15, %v347_v16  ;;  %v382_v18 = vpop.permute.xlu1 %381  ;;  %v451_v16 = vadd.f32 %v4650_v20, %v431_v38 }
  0xa2   : > { %4139 = vset.pattern.permute.xlu1 %v6464_v22 }
  0xa3   : > { %513 = vperm.xlu1 %4139, %v4466_v23   ;;  %v448_v21 = vadd.f32 %v4650_v20, %v428_v5  ;;  %v4665_v23 = vld [vmem:[%s6459_s5 + $0x78] sm:$0xff]  ;;  %v433_v5 = vmul.f32 %v4643_v15, %v372_v14 }
  0xa4   : > { %v352_v26 = vpop.permute.xlu0 %351  ;;  %1863 = vperm.xlu0 %4174, %v4530_v42   ;;  %v1186_v42 = vadd.s32 88, %v4483_v29 }
  0xa5   : > { %v429_v31 = vmul.f32 %v4643_v15, %v352_v26  ;;  %v392_v35 = vpop.permute.xlu1 %391  ;;  %3889 = vmatprep.mubr.msk.f32.mxu0 %vm564_vm0, %v448_v21  ;;  %v4687_v21 = vld [vmem:[%s6459_s5 + $0x68] sm:$0xff]  ;;  %v453_v38 = vadd.f32 %v4650_v20, %v433_v5 }
  0xa7   : > { %v449_v41 = vadd.f32 %v4650_v20, %v429_v31  ;;  %517 = vperm.xlu1 %4139, %v4450_v17   ;;  %v4675_v17 = vld [vmem:[%s6459_s5 + $0x70] sm:$0xff]  ;;  %v4693_v31 = vadd.s32 95, %v4483_v29 }
  0xa8   : > { %v367_v44 = vpop.permute.xlu0 %366  ;;  %1866 = vperm.xlu0 %4174, %v4555_v49  }
  0xa9   : > { %v402_v6 = vpop.permute.xlu1 %401  ;;  %3890 = vmatmul.mubr.msk.f32.vlgmr.msra.gmra.mxu0 %vm564_vm0, %v449_v41  ;;  %v432_v11 = vmul.f32 %v4643_v15, %v367_v44  ;;  %6501 = vst [vmem:[#allocation15_spill] sm:$0xff] %v4693_v31  ;;  %v435_v41 = vmul.f32 %v4643_v15, %v382_v18  ;;  %v4713_v44 = vld [vmem:[%s6459_s5 + $0x58] sm:$0xff] }
  0xaa   : > { %3892 = vmatprep.mubr.msk.f32.mxu0 %vm564_vm0, %v450_v43  ;;  %1549 = vmatpush1.msra.mxu0 %v4665_v23 }
  0xab   : > { %v452_v49 = vadd.f32 %v4650_v20, %v432_v11  ;;  %4141 = vset.pattern.permute.xlu1 %v4296_v40  ;;  %1550 = vmatprep.subr.mxu0 %v6472_v30  ;;  %v4699_v40 = vld [vmem:[%s6459_s5 + $0x60] sm:$0xff] }
  0xac   : > { %1217 = vperm.xlu1 %4141, %v1186_v42   ;;  %v377_v25 = vpop.permute.xlu0 %376  ;;  %1551 = vmatpush1.msra.mxu0 %v4675_v17 }
  0xad   : > { %v412_v26 = vpop.permute.xlu1 %411  ;;  %3893 = vmatmul.mubr.msk.f32.gmra.mxu0 %vm564_vm0, %v451_v16  ;;  %v434_v14 = vmul.f32 %v4643_v15, %v377_v25  ;;  %1552 = vmatprep.subr.mxu0 %v6472_v30  ;;  %v437_v16 = vmul.f32 %v4643_v15, %v392_v35  ;;  %v4729_v25 = vld [vmem:[%s6459_s5 + $0x50] sm:$0xff] }
  0xae   : > { %3895 = vmatprep.mubr.msk.f32.mxu0 %vm564_vm0, %v452_v49  ;;  %1553 = vmatpush1.msra.mxu0 %v4687_v21 }
  0xaf   : > { %v454_v43 = vadd.f32 %v4650_v20, %v434_v14  ;;  %1554 = vmatprep.subr.mxu0 %v6472_v30  ;;  %1869 = vperm.xlu0 %4174, %v4539_v45   ;;  %v455_v45 = vadd.f32 %v4650_v20, %v435_v41 }
  0xb0   : > { %4142 = vset.pattern.permute.xlu1 %v6468_v1  ;;  %v387_v29 = vpop.permute.xlu0 %386  ;;  %1555 = vmatpush1.msra.mxu0 %v4699_v40 }
  0xb1   : > { %v422_v11 = vpop.permute.xlu1 %421  ;;  %1345 = vperm.xlu1 %4142, %v4693_v31   ;;  %3896 = vmatmul.mubr.msk.f32.gmra.mxu0 %vm564_vm0, %v453_v38  ;;  %v436_v18 = vmul.f32 %v4643_v15, %v387_v29  ;;  %v439_v38 = vmul.f32 %v4643_v15, %v402_v6 }
  0xb2   : > { %3898 = vmatprep.mubr.msk.f32.mxu0 %vm564_vm0, %v454_v43  ;;  %1556 = vmatprep.subr.mxu0 %v6472_v30  ;;  %v4740_v43 = vadd.s32 64, %v4542_v46 }
  0xb3   : > { %v456_v5 = vadd.f32 %v4650_v20, %v436_v18  ;;  %1557 = vmatpush1.msra.mxu0 %v4713_v44  ;;  %1872 = vperm.xlu0 %4174, %v4633_v12   ;;  %v457_v12 = vadd.f32 %v4650_v20, %v437_v16  ;;  %v459_v18 = vadd.f32 %v4650_v20, %v439_v38 }
  0xb4   : > { %v397_v49 = vpop.permute.xlu0 %396  ;;  %1558 = vmatprep.subr.mxu0 %v6472_v30  ;;  %6502 = vst [vmem:[#allocation16_spill] sm:$0xff] %v4740_v43  ;;  %v443_v38 = vmul.f32 %v4643_v15, %v422_v11 }
  0xb5   : > { %4144 = vset.pattern.permute.xlu1 %v6464_v22  ;;  %3899 = vmatmul.mubr.msk.f32.gmra.mxu0 %vm564_vm0, %v455_v45  ;;  %v438_v35 = vmul.f32 %v4643_v15, %v397_v49 }
  0xb6   : > { %525 = vperm.xlu1 %4144, %v4456_v19   ;;  %v470_v14 = vpop.permute.xlu1 %469  ;;  %3901 = vmatprep.mubr.msk.f32.mxu0 %vm564_vm0, %v456_v5  ;;  %v4747_v19 = vld [vmem:[%s6459_s5 + $0x48] sm:$0xff]  ;;  %v4763_v5 = vld [vmem:[%s6459_s5 + $0x40] sm:$0xff]  ;;  %v463_v11 = vadd.f32 %v4650_v20, %v443_v38 }
  0xb7   : > { %v458_v41 = vadd.f32 %v4650_v20, %v438_v35  ;;  %1559 = vmatpush1.msra.mxu0 %v4729_v25  ;;  %1875 = vperm.xlu0 %4174, %v1186_v42   ;;  %v441_v42 = vmul.f32 %v4643_v15, %v412_v26  ;;  %v4766_v35 = vadd.s32 95, %v4542_v46 }
  0xb8   : > { %v407_v29 = vpop.permute.xlu0 %406  ;;  %1560 = vmatprep.subr.mxu0 %v6472_v30 }
  0xb9   : > { %3902 = vmatmul.mubr.msk.f32.gmra.mxu0 %vm564_vm0, %v457_v12  ;;  %v440_v6 = vmul.f32 %v4643_v15, %v407_v29  ;;  %6503 = vst [vmem:[#allocation17_spill] sm:$0xff] %v4766_v35  ;;  %v4775_v12 = vld [vmem:[%s6459_s5 + $0x38] sm:$0xff]  ;;  %v461_v46 = vadd.f32 %v4650_v20, %v441_v42 }
  0xba   : > { %4145 = vset.pattern.permute.xlu1 %v6466_v0  ;;  %3904 = vmatprep.mubr.msk.f32.mxu0 %vm564_vm0, %v458_v41 }
  0xbb   : > { %v460_v45 = vadd.f32 %v4650_v20, %v440_v6  ;;  %1092 = vperm.xlu1 %4145, %v4740_v43   ;;  %v4757_v16 = vpop.permute.xlu1 %1068  ;;  %1561 = vmatpush1.msra.mxu0 %v4747_v19  ;;  %v4793_v6 = vld [vmem:[%s6459_s5 + $0x30] sm:$0xff] }
  0xbc   : > { %v417_v49 = vpop.permute.xlu0 %416  ;;  %1562 = vmatprep.subr.mxu0 %v6472_v30  ;;  %1878 = vperm.xlu0 %4174, %v4548_v47  }
  0xbd   : > { %3905 = vmatmul.mubr.msk.f32.gmra.mxu0 %vm564_vm0, %v459_v18  ;;  %v442_v26 = vmul.f32 %v4643_v15, %v417_v49  ;;  %v4803_v18 = vld [vmem:[%s6459_s5 + $0x28] sm:$0xff] }
  0xbe   : > { %3907 = vmatprep.mubr.msk.f32.mxu0 %vm564_vm0, %v460_v45  ;;  %1563 = vmatpush1.msra.mxu0 %v4763_v5  ;;  %v1060_v45 = vadd.s32 64, %v4551_v48 }
  0xbf   : > { %v462_v41 = vadd.f32 %v4650_v20, %v442_v26  ;;  %4146 = vset.pattern.permute.xlu1 %v6468_v1  ;;  %1564 = vmatprep.subr.mxu0 %v6472_v30  ;;  %v4818_v26 = vld [vmem:[%s6459_s5 + $0x20] sm:$0xff] }
  0xc0   : > { %1348 = vperm.xlu1 %4146, %v4766_v35   ;;  %v4785_v47 = vpop.permute.xlu1 %1324  ;;  %v4787_v29 = vpop.permute.xlu0 %1080  ;;  %1565 = vmatpush1.msra.mxu0 %v4775_v12 }
  0xc1   : > { %3908 = vmatmul.mubr.msk.f32.gmra.mxu0 %vm564_vm0, %v461_v46  ;;  %1566 = vmatprep.subr.mxu0 %v6472_v30  ;;  %v4825_v46 = vld [vmem:[%s6459_s5 + $0x18] sm:$0xff] }
  0xc2   : > { %3910 = vmatprep.mubr.msk.f32.mxu0 %vm564_vm0, %v462_v41  ;;  %1567 = vmatpush1.msra.mxu0 %v4793_v6  ;;  %v4834_v41 = vld [vmem:[%s6459_s5 + $0x10] sm:$0xff] }
  0xc3   : > { %4180 = vset.pattern.permute.xlu0 %v6464_v22  ;;  %1568 = vmatprep.subr.mxu0 %v6472_v30 }
  0xc4   : > { %4147 = vset.pattern.permute.xlu1 %v6464_v22  ;;  %v4807_v42 = vpop.permute.xlu0 %1089  ;;  %1569 = vmatpush1.msra.mxu0 %v4803_v18  ;;  %v4841_v22 = vadd.s32 64, %v4562_v51 }
  0xc5   : > { %1742 = vperm.xlu1 %4147, %v4468_v24   ;;  %v4812_v49 = vpop.permute.xlu1 %1071  ;;  %3911 = vmatmul.mubr.msk.f32.gmra.mxu0 %vm564_vm0, %v463_v11  ;;  %v529_v24 = vmul.f32 %v4643_v15, %v470_v14 }
  0xc6   : > { %1769 = vperm.xlu0 %4180, %v1060_v45   ;;  %1570 = vmatprep.subr.mxu0 %v6472_v30 }
  0xc7   : > { %1571 = vmatpush1.msra.mxu0 %v4818_v26 }
  0xc8   : > { %1572 = vmatprep.subr.mxu0 %v6472_v30 }
  0xc9   : > { %4148 = vset.pattern.permute.xlu1 %v6466_v0  ;;  %v466_v38 = vpop.permute.xlu0 %465  ;;  %1573 = vmatpush1.msra.mxu0 %v4825_v46  ;;  %v545_v0 = vadd.f32 %v4650_v20, %v529_v24  ;;  %v4862_v24 = vld [vmem:[%s6459_s5] sm:$0xff] }
  0xca   : > { %v528_v11 = vmul.f32 %v4643_v15, %v466_v38  ;;  %1095 = vperm.xlu1 %4148, %v1060_v45   ;;  %v4837_v10 = vpop.permute.xlu1 %1327  ;;  %1574 = vmatprep.subr.mxu0 %v6472_v30  ;;  %v4852_v45 = vld [vmem:[%s6459_s5 + $0x8] sm:$0xff]  ;;  %v951_v38 = vlaneseq }
  0xcb   : > { %1575 = vmatpush1.msra.mxu0 %v4834_v41  ;;  %1772 = vperm.xlu0 %4180, %v4841_v22  }
  0xcc   : > { %v544_v14 = vadd.f32 %v4650_v20, %v528_v11  ;;  %1576 = vmatprep.subr.mxu0 %v6472_v30 }
  0xcd   : > { %v474_v1 = vpop.permute.xlu0 %473  ;;  %1577 = vmatpush1.msra.mxu0 %v4852_v45 }
  0xce   : > { %4149 = vset.pattern.permute.xlu1 %v6475_v3  ;;  %3915 = vmatprep.mubr.msk.f32.mxu1 %vm564_vm0, %v544_v14  ;;  %v530_v11 = vmul.f32 %v4643_v15, %v474_v1  ;;  %v4867_v3 = vadd.s32 95, %v4551_v48  ;;  %v4881_v48 = vld [vmem:[%s6459_s5 + $0x90] sm:$0xff] }
  0xcf   : > { %1966 = vperm.xlu1 %4149, %v4477_v27   ;;  %v478_v63 = vpop.permute.xlu1 %477  ;;  %3916 = vmatmul.mubr.msk.f32.vlgmr.msra.gmra.mxu1 %vm564_vm0, %v545_v0  ;;  %v6505_v27 = vmov 0.0   ;;  %v4873_v0 = vshrl.u32 %v951_v38, 7 }
  0xd0   : > { %v546_v30 = vadd.f32 %v4650_v20, %v530_v11  ;;  %v531_v55 = vmul.f32 %v4643_v15, %v478_v63  ;;  %6504 = vst [vmem:[#allocation18_spill] sm:$0xff] %v4867_v3  ;;  %2190 = vmatpush1.msra.mxu1 %v4665_v23  ;;  %1578 = vmatprep.subr.mxu0 %v6505_v27  ;;  %v6506_v63 = vmov 4  }
  0xd1   : > { %v486_v1 = vpop.permute.xlu0 %485  ;;  %2191 = vmatprep.subr.mxu1 %v6505_v27  ;;  %1579 = vmatpush1.msra.mxu0 %v4862_v24  ;;  %v968_v52 = vand.u32 31, %v4873_v0  ;;  %v954_v31 = vadd.s32 16, %v4873_v0 }
  0xd2   : > { %v547_v14 = vadd.f32 %v4650_v20, %v531_v55  ;;  %3918 = vmatprep.mubr.msk.f32.mxu1 %vm564_vm0, %v546_v30  ;;  %1606 = vmatprep.subr.mxu0 %v6505_v27  ;;  %v4892_v30 = vld [vmem:[%s6459_s5 + $0x88] sm:$0xff]  ;;  %v953_v55 = vadd.s32 8, %v4873_v0 }
  0xd3   : > { %4150 = vset.pattern.permute.xlu1 %v6506_v63  ;;  %1607 = vmatpush2.msra.mxu0 %v4881_v48  ;;  %v4923_v32 = vmul.u32 2, %v968_v52  ;;  %v6509_v52 = vmov 0   ;;  %v970_v62 = vand.u32 31, %v954_v31 }
  0xd4   : > { %1351 = vperm.xlu1 %4150, %v4867_v3   ;;  %v4886_v23 = vpop.permute.xlu1 %1074  ;;  %3919 = vmatmul.mubr.msk.f32.gmra.mxu1 %vm564_vm0, %v547_v14  ;;  %v4904_v14 = vld [vmem:[%s6459_s5 + $0x80] sm:$0xff]  ;;  %v4907_v3 = vand.u32 127, %v951_v38  ;;  %v4920_v38 = vadd.s32 95, %v4562_v51  ;;  %v533_v51 = vmul.f32 %v4643_v15, %v486_v1 }
  0xd5   : > { %v4895_v11 = vpop.permute.xlu0 %497  ;;  %2192 = vmatpush1.msra.mxu1 %v4675_v17  ;;  %1608 = vmatprep.subr.mxu0 %v6505_v27  ;;  %v969_v17 = vand.u32 31, %v953_v55 }
  0xd6   : > { %2193 = vmatprep.subr.mxu1 %v6505_v27  ;;  %1609 = vmatpush2.msra.mxu0 %v4892_v30  ;;  %v4928_v55 = vadd.s32 128, %v4907_v3  ;;  %vm1019_vm1 = vcmp.eq.s32.totalorder %v4907_v3, %v4923_v32  ;;  %vm1115_vm2 = vcmp.eq.s32.totalorder %v4907_v3, %v4757_v16  ;;  %vm1117_vm7 = vcmp.eq.s32.totalorder %v4907_v3, %v4812_v49 }
  0xd7   : > { %2194 = vmatpush1.msra.mxu1 %v4687_v21  ;;  %1610 = vmatprep.subr.mxu0 %v6505_v27  ;;  %v6508_v21 = vmov 5   ;;  %v4934_v7 = vmul.u32 2, %v969_v17  ;;  %vm4978_vm9 = vmor %vm1019_vm1, %vm1115_vm2 }
  0xd8   : > { %4151 = vset.pattern.permute.xlu1 %v6507_v50  ;;  %1611 = vmatpush2.msra.mxu0 %v4904_v14  ;;  %vm1020_vm3 = vcmp.eq.s32.totalorder %v4928_v55, %v4923_v32  ;;  %vm1116_vm4 = vcmp.eq.s32.totalorder %v4928_v55, %v4757_v16  ;;  %vm1118_vm8 = vcmp.eq.s32.totalorder %v4928_v55, %v4812_v49  ;;  %v5125_v16 = vadd.s32 64, %v4601_v61 }
  0xd9   : > { %1745 = vperm.xlu1 %4151, %v4494_v33   ;;  %v4914_v35 = vpop.permute.xlu1 %1330  ;;  %v4916_v43 = vpop.permute.xlu0 %509  ;;  %2195 = vmatprep.subr.mxu1 %v6505_v27  ;;  %v955_v33 = vadd.s32 24, %v4873_v0  ;;  %vm1021_vm5 = vcmp.eq.s32.totalorder %v4907_v3, %v4934_v7  ;;  %vm1022_vm6 = vcmp.eq.s32.totalorder %v4928_v55, %v4934_v7  ;;  %vm1148_vm10 = vmor %vm1020_vm3, %vm1116_vm4  ;;  %vm1120_vm15 = vcmp.eq.s32.totalorder %v4928_v55, %v4886_v23 }
  0xda   : > { %4184 = vset.pattern.permute.xlu0 %v6508_v21  ;;  %2196 = vmatpush1.msra.mxu1 %v4699_v40  ;;  %vm5000_vm13 = vmor %vm1021_vm5, %vm1117_vm7  ;;  %vm1372_vm3 = vcmp.eq.s32.totalorder %v4928_v55, %v4785_v47  ;;  %vm1119_vm4 = vcmp.eq.s32.totalorder %v4907_v3, %v4886_v23  ;;  %v4299_v23 = vmov 1.0  }
  0xdb   : > { %1996 = vperm.xlu0 %4184, %v4920_v38   ;;  %2197 = vmatprep.subr.mxu1 %v6505_v27  ;;  %v971_v31 = vand.u32 31, %v955_v33  ;;  %vm5010_vm14 = vmor %vm1022_vm6, %vm1118_vm8  ;;  %vm1499_vm6 = vcmask 195584  }
  0xdc   : > { %2198 = vmatpush1.msra.mxu1 %v4713_v44 }
  0xdd   : > { %4152 = vset.pattern.permute.xlu1 %v6509_v52  ;;  %v4938_v8 = vpop.permute.xlu0 %521  ;;  %2199 = vmatprep.subr.mxu1 %v6505_v27 }
  0xde   : > { %1098 = vperm.xlu1 %4152, %v4841_v22   ;;  %v482_v40 = vpop.permute.xlu1 %481  ;;  %2200 = vmatpush1.msra.mxu1 %v4729_v25  ;;  %v549_v22 = vadd.f32 %v4650_v20, %v533_v51  ;;  %v4968_v25 = vmul.u32 2, %v970_v62  ;;  %v4989_v62 = vmul.u32 2, %v971_v31  ;;  %v6516_v51 = vmov 3  }
  0xdf   : > { %v532_v1 = vmul.f32 %v4643_v15, %v482_v40  ;;  %1999 = vperm.xlu0 %4184, %v4941_v59   ;;  %2201 = vmatprep.subr.mxu1 %v6505_v27 }
  0xe0   : > { %2202 = vmatpush1.msra.mxu1 %v4747_v19  ;;  %vm1024_vm2 = vcmp.eq.s32.totalorder %v4928_v55, %v4968_v25  ;;  %vm1023_vm7 = vcmp.eq.s32.totalorder %v4907_v3, %v4968_v25 }
  0xe1   : > { %v548_v44 = vadd.f32 %v4650_v20, %v532_v1  ;;  %2203 = vmatprep.subr.mxu1 %v6505_v27 }
  0xe2   : > { %4153 = vset.pattern.permute.xlu1 %v6508_v21  ;;  %v1197_v33 = vpop.permute.xlu0 %1196  ;;  %2204 = vmatpush1.msra.mxu1 %v4763_v5 }
  0xe3   : > { %vm1243_vm11 = vcmp.eq.s32.totalorder %v4907_v3, %v1197_v33  ;;  %vm1244_vm12 = vcmp.eq.s32.totalorder %v4928_v55, %v1197_v33  ;;  %1969 = vperm.xlu1 %4153, %v4499_v34   ;;  %v4991_v19 = vpop.permute.xlu1 %1077  ;;  %3921 = vmatprep.mubr.msk.f32.mxu1 %vm564_vm0, %v548_v44  ;;  %v5122_v33 = vadd.s32 64, %v4574_v54  ;;  %v5169_v34 = vadd.s32 64, %v4612_v2 }
  0xe4   : > { %3922 = vmatmul.mubr.msk.f32.gmra.mxu1 %vm564_vm0, %v549_v22  ;;  %4188 = vset.pattern.permute.xlu0 %v6516_v51  ;;  %vm1276_vm1 = vmor %vm1148_vm10, %vm1244_vm12  ;;  %vm1026_vm10 = vcmp.eq.s32.totalorder %v4928_v55, %v4989_v62  ;;  %vm1122_vm12 = vcmp.eq.s32.totalorder %v4928_v55, %v4991_v19 }
  0xe5   : > { %1890 = vperm.xlu0 %4188, %v4587_v57   ;;  %vm5030_vm5 = vmor %vm4978_vm9, %vm1243_vm11  ;;  %2205 = vmatprep.subr.mxu1 %v6505_v27  ;;  %vm1371_vm9 = vcmp.eq.s32.totalorder %v4907_v3, %v4785_v47  ;;  %v539_v47 = vmul.f32 %v4643_v15, %v4916_v43 }
  0xe6   : > { %v1200_v40 = vpop.permute.xlu0 %1199  ;;  %vm1404_vm8 = vmor %vm1276_vm1, %vm1372_vm3  ;;  %2206 = vmatpush1.msra.mxu1 %v4775_v12  ;;  %v956_v12 = vadd.s32 32, %v4873_v0 }
  0xe7   : > { %4154 = vset.pattern.permute.xlu1 %v6506_v63  ;;  %vm1246_vm11 = vcmp.eq.s32.totalorder %v4928_v55, %v1200_v40  ;;  %v3573_v57 = vsel %vm1404_vm8, 1.0, %v6505_v27  ;;  %vm5056_vm1 = vmor %vm1024_vm2, %vm1120_vm15  ;;  %2207 = vmatprep.subr.mxu1 %v6505_v27  ;;  %vm1245_vm2 = vcmp.eq.s32.totalorder %v4907_v3, %v1200_v40  ;;  %v5223_v40 = vadd.s32 95, %v4612_v2 }
  0xe8   : > { %1354 = vperm.xlu1 %4154, %v4920_v38   ;;  %v5048_v5 = vpop.permute.xlu1 %1205  ;;  %vm1403_vm3 = vmor %vm5030_vm5, %vm1371_vm9  ;;  %3604 = vmatprep.mubr.msk.f32.mxu0 %vm1499_vm6, %v3573_v57 }
  0xe9   : > { %vm5071_vm8 = vmor %vm1023_vm7, %vm1119_vm4  ;;  %2208 = vmatpush1.msra.mxu1 %v4793_v6  ;;  %3605 = vmatmul.mubr.msk.f32.vlgmr.msra.gmra.mxu0 %vm1403_vm3, %v4299_v23  ;;  %vm1374_vm4 = vcmp.eq.s32.totalorder %v4928_v55, %v4837_v10  ;;  %vm1250_vm7 = vcmp.eq.s32.totalorder %v4928_v55, %v5048_v5  ;;  %v972_v6 = vand.u32 31, %v956_v12  ;;  %v958_v12 = vadd.s32 48, %v4873_v0 }
  0xea   : > { %vm5082_vm15 = vmor %vm1026_vm10, %vm1122_vm12  ;;  %v1203_v31 = vpop.permute.xlu0 %1202  ;;  %2209 = vmatprep.subr.mxu1 %v6505_v27  ;;  %1893 = vperm.xlu0 %4188, %v4598_v60  }
  0xeb   : > { %vm1278_vm5 = vmor %vm5010_vm14, %vm1246_vm11  ;;  %2210 = vmatpush1.msra.mxu1 %v4803_v18  ;;  %vm1248_vm12 = vcmp.eq.s32.totalorder %v4928_v55, %v1203_v31  ;;  %vm1376_vm11 = vcmp.eq.s32.totalorder %v4928_v55, %v4914_v35  ;;  %vm1247_vm3 = vcmp.eq.s32.totalorder %v4907_v3, %v1203_v31  ;;  %v5146_v61 = vmul.u32 2, %v972_v6 }
  0xec   : > { %vm1406_vm10 = vmor %vm1278_vm5, %vm1374_vm4  ;;  %4155 = vset.pattern.permute.xlu1 %v6507_v50  ;;  %2211 = vmatprep.subr.mxu1 %v6505_v27  ;;  %vm1121_vm5 = vcmp.eq.s32.totalorder %v4907_v3, %v4991_v19  ;;  %v5280_v31 = vadd.s32 95, %v4583_v56  ;;  %v974_v6 = vand.u32 31, %v958_v12 }
  0xed   : > { %vm5106_vm14 = vmor %vm5000_vm13, %vm1245_vm2  ;;  %v3575_v18 = vsel %vm1406_vm10, 1.0, %v6505_v27  ;;  %1748 = vperm.xlu1 %4155, %v4508_v36   ;;  %v490_v60 = vpop.permute.xlu1 %489  ;;  %2212 = vmatpush1.msra.mxu1 %v4818_v26  ;;  %vm1378_vm13 = vcmp.eq.s32.totalorder %v4928_v55, %v4626_v9  ;;  %vm1373_vm2 = vcmp.eq.s32.totalorder %v4907_v3, %v4837_v10  ;;  %v536_v36 = vmul.f32 %v4643_v15, %v4895_v11 }
  0xee   : > { %vm5115_vm9 = vmor %vm5082_vm15, %vm1250_vm7  ;;  %3606 = vmatprep.mubr.msk.f32.mxu0 %vm1499_vm6, %v3575_v18  ;;  %v534_v17 = vmul.f32 %v4643_v15, %v490_v60  ;;  %2213 = vmatprep.subr.mxu1 %v6505_v27  ;;  %v555_v18 = vadd.f32 %v4650_v20, %v539_v47  ;;  %v5289_v60 = vmul.u32 2, %v974_v6  ;;  %v4229_v47 = vld [vmem:[%s4402_s20 + $0x70] sm:$0xff]  ;;  %s6327_s20 = scalar_lea.vmem [#allocation2], %s3532_s23 }
  0xef   : > { %vm1280_vm15 = vmor %vm5056_vm1, %vm1248_vm12  ;;  %2214 = vmatpush1.msra.mxu1 %v4825_v46  ;;  %4192 = vset.pattern.permute.xlu0 %v6507_v50  ;;  %vm1025_vm1 = vcmp.eq.s32.totalorder %v4907_v3, %v4989_v62  ;;  %vm1249_vm12 = vcmp.eq.s32.totalorder %v4907_v3, %v5048_v5  ;;  %v5258_v5 = vadd.s32 64, %v4583_v56  ;;  %s3454_s13 = sshll.u32 %s6327_s20, 4  ;;  %s6405_s13 = int_to_ptr.vmem [resolvable:$true] %s3454_s13 }
  0xf0   : > { %vm1408_vm4 = vmor %vm1280_vm15, %vm1376_vm11  ;;  %v550_v54 = vadd.f32 %v4650_v20, %v534_v17  ;;  %2215 = vmatprep.subr.mxu1 %v6505_v27  ;;  %1784 = vperm.xlu0 %4192, %v5125_v16   ;;  %vm1377_vm15 = vcmp.eq.s32.totalorder %v4907_v3, %v4626_v9  ;;  %v5304_v17 = vadd.s32 64, %v4591_v58  ;;  %s4230_s17 = scalar_lea.vmem %s6405_s13, 2048  ;;  %p4237_p0 = scmp.lt.s32.totalorder %s6405_s13, %s4235_s21 }
  0xf1   : > { %vm1405_vm7 = vmor %vm5106_vm14, %vm1373_vm2  ;;  %v3577_v10 = vsel %vm1408_vm4, 1.0, %v6505_v27  ;;  %4156 = vset.pattern.permute.xlu1 %v6509_v52  ;;  %v494_v26 = vpop.permute.xlu1 %493  ;;  %2216 = vmatpush1.msra.mxu1 %v4834_v41  ;;  %v552_v41 = vadd.f32 %v4650_v20, %v536_v36  ;;  %vm1375_vm14 = vcmp.eq.s32.totalorder %v4907_v3, %v4914_v35  ;;  %vm1027_vm4 = vcmp.eq.s32.totalorder %v4907_v3, %v5146_v61  ;;  %p4231_p11 = scmp.ne.s32.totalorder %s6405_s13, %s4230_s17  ;;  %p4238_p1 = scmp.lt.s32.totalorder %s4236_s22, %s4230_s17 }
  0xf2   : > { %vm5161_vm10 = vmor %vm5071_vm8, %vm1247_vm3  ;;  %3607 = vmatmul.mubr.msk.f32.gmra.mxu0 %vm1405_vm7, %v4299_v23  ;;  %v535_v11 = vmul.f32 %v4643_v15, %v494_v26  ;;  %1101 = vperm.xlu1 %4156, %v5122_v33  }
  0xf3   : > { %3608 = vmatprep.mubr.msk.f32.mxu0 %vm1499_vm6, %v3577_v10  ;;  %vm1410_vm8 = vmor %vm5115_vm9, %vm1378_vm13  ;;  %3924 = vmatprep.mubr.msk.f32.mxu1 %vm564_vm0, %v550_v54  ;;  %vm1028_vm9 = vcmp.eq.s32.totalorder %v4928_v55, %v5146_v61  ;;  %vm1124_vm13 = vcmp.eq.s32.totalorder %v4928_v55, %v4787_v29  ;;  %v959_v54 = vadd.s32 56, %v4873_v0  ;;  %p4232_p12 = pnand %p4231_p11, %p4381_p5  ;;  %p4239_p2 = por %p4238_p1, %p4237_p0 }
  0xf4   : > { %vm1153_vm11 = vmor %vm1025_vm1, %vm1121_vm5  ;;  %v551_v49 = vadd.f32 %v4650_v20, %v535_v11  ;;  %2217 = vmatprep.subr.mxu1 %v6505_v27  ;;  %1787 = vperm.xlu0 %4192, %v5169_v34   ;;  %v3579_v35 = vsel %vm1410_vm8, 1.0, %v6505_v27  ;;  %vm1123_vm1 = vcmp.eq.s32.totalorder %v4907_v3, %v4787_v29 }
  0xf5   : > { %vm1407_vm3 = vmor %vm5161_vm10, %vm1375_vm14  ;;  %2218 = vmatpush1.msra.mxu1 %v4852_v45  ;;  %v957_v45 = vadd.s32 40, %v4873_v0  ;;  %v975_v46 = vand.u32 31, %v959_v54  ;;  %p4233_p13 = pneg %p4232_p12 }
  0xf6   : > { %3609 = vmatmul.mubr.msk.f32.gmra.mxu0 %vm1407_vm3, %v4299_v23  ;;  %vm1281_vm2 = vmor %vm1153_vm11, %vm1249_vm12  ;;  %4157 = vset.pattern.permute.xlu1 %v6508_v21  ;;  %v1209_v19 = vpop.permute.xlu1 %1208 }
  0xf7   : > { %3610 = vmatprep.mubr.msk.f32.mxu0 %vm1499_vm6, %v3579_v35  ;;  %3925 = vmatmul.mubr.msk.f32.gmra.mxu1 %vm564_vm0, %v551_v49  ;;  %vm5213_vm5 = vmor %vm1028_vm9, %vm1124_vm13  ;;  %vm1252_vm10 = vcmp.eq.s32.totalorder %v4928_v55, %v1209_v19  ;;  %vm1251_vm8 = vcmp.eq.s32.totalorder %v4907_v3, %v1209_v19  ;;  %v973_v2 = vand.u32 31, %v957_v45  ;;  %v5329_v35 = vadd.s32 95, %v4591_v58  ;;  %p4240_p3 = pnand %p4239_p2, %p4233_p13 }
  0xf8   : > { %1972 = vperm.xlu1 %4157, %v4513_v37   ;;  %3927 = vmatprep.mubr.msk.f32.mxu1 %vm564_vm0, %v552_v41  ;;  %vm1409_vm7 = vmor %vm1281_vm2, %vm1377_vm15  ;;  %v5331_v9 = vmul.u32 2, %v975_v46  ;;  %v2341_v46 = vld [vmem:[%s6460_s6 + $0x38] sm:$0xff] }
  0xf9   : > { %2219 = vmatprep.subr.mxu1 %v6505_v27  ;;  %4196 = vset.pattern.permute.xlu0 %v6508_v21  ;;  %vm5228_vm12 = vmor %vm1027_vm4, %vm1123_vm1 }
  0xfa   : > { %3611 = vmatmul.mubr.msk.f32.gmra.mxu0 %vm1409_vm7, %v4299_v23  ;;  %2220 = vmatpush1.msra.mxu1 %v4862_v24  ;;  %vm1284_vm14 = vmor %vm5213_vm5, %vm1252_vm10 }
  0xfb   : > { %v1337_v29 = vpop.permute.xlu1 %1336  ;;  %2247 = vmatprep.subr.mxu1 %v6505_v27  ;;  %2011 = vperm.xlu0 %4196, %v5223_v40   ;;  %vm1283_vm3 = vmor %vm5228_vm12, %vm1251_vm8 }
  0xfc   : > { %4158 = vset.pattern.permute.xlu1 %v6506_v63  ;;  %vm1379_vm11 = vcmp.eq.s32.totalorder %v4907_v3, %v1337_v29  ;;  %vm1380_vm9 = vcmp.eq.s32.totalorder %v4928_v55, %v1337_v29  ;;  %2248 = vmatpush2.msra.mxu1 %v4881_v48  ;;  %v5253_v48 = vmul.u32 2, %v973_v2  ;;  %v6535_v29 = vld [vmem:[#allocation10_spill] sm:$0xff]  ;;  %v960_v2 = vadd.s32 64, %v4873_v0 }
  0xfd   : > { %1357 = vperm.xlu1 %4158, %v4941_v59   ;;  %vm1412_vm13 = vmor %vm1284_vm14, %vm1380_vm9  ;;  %2249 = vmatprep.subr.mxu1 %v6505_v27 }
  0xfe   : > { %v3581_v24 = vsel %vm1412_vm13, 1.0, %v6505_v27  ;;  %2250 = vmatpush2.msra.mxu1 %v4892_v30  ;;  %vm1411_vm15 = vmor %vm1283_vm3, %vm1379_vm11  ;;  %vm1030_vm2 = vcmp.eq.s32.totalorder %v4928_v55, %v5253_v48  ;;  %vm1029_vm5 = vcmp.eq.s32.totalorder %v4907_v3, %v5253_v48  ;;  %3939 = vmatprep.subr.mxu0 %v2341_v46 }
  0xff   : > { %3612 = vmatprep.mubr.msk.f32.mxu0 %vm1499_vm6, %v3581_v24  ;;  %2251 = vmatprep.subr.mxu1 %v6505_v27 }
 0x100   : > { %v502_v57 = vpop.permute.xlu1 %501  ;;  %3613 = vmatmul.mubr.msk.f32.gmra.mxu0 %vm1411_vm15, %v4299_v23  ;;  %2252 = vmatpush2.msra.mxu1 %v4904_v14  ;;  %v1212_v14 = vpop.permute.xlu0 %1211 }
 0x101   : > { %4159 = vset.pattern.permute.xlu1 %v6507_v50  ;;  %v537_v59 = vmul.f32 %v4643_v15, %v502_v57  ;;  %vm1254_vm10 = vcmp.eq.s32.totalorder %v4928_v55, %v1212_v14  ;;  %vm1253_vm8 = vcmp.eq.s32.totalorder %v4907_v3, %v1212_v14  ;;  %3940 = vmatpush3.msra.mxu0 %v2341_v46 }
 0x102   : > { %1751 = vperm.xlu1 %4159, %v4521_v39  }
 0x103   : > { %v553_v30 = vadd.f32 %v4650_v20, %v537_v59 }
 0x104   : > { %v5292_v44 = vpop.permute.xlu0 %1220 }
 0x105   : > { %v1084_v1 = vpop.permute.xlu1 %1083  ;;  %3928 = vmatmul.mubr.msk.f32.gmra.mxu1 %vm564_vm0, %v553_v30 }
 0x106   : > { %4160 = vset.pattern.permute.xlu1 %v6509_v52  ;;  %vm1126_vm4 = vcmp.eq.s32.totalorder %v4928_v55, %v1084_v1  ;;  %vm1125_vm1 = vcmp.eq.s32.totalorder %v4907_v3, %v1084_v1 }
 0x107   : > { %1104 = vperm.xlu1 %4160, %v5258_v5   ;;  %vm1158_vm7 = vmor %vm1030_vm2, %vm1126_vm4  ;;  %vm1031_vm2 = vcmp.eq.s32.totalorder %v4907_v3, %v5289_v60 }
 0x108   : > { %vm1157_vm12 = vmor %vm1029_vm5, %vm1125_vm1  ;;  %vm1032_vm1 = vcmp.eq.s32.totalorder %v4928_v55, %v5289_v60 }
 0x109   : > { %vm1286_vm14 = vmor %vm1158_vm7, %vm1254_vm10  ;;  %vm1384_vm7 = vcmp.eq.s32.totalorder %v4928_v55, %v4635_v13 }
 0x10a   : > { %v1340_v39 = vpop.permute.xlu1 %1339  ;;  %vm1285_vm3 = vmor %vm1157_vm12, %vm1253_vm8 }
 0x10b   : > { %4161 = vset.pattern.permute.xlu1 %v6508_v21  ;;  %vm1381_vm11 = vcmp.eq.s32.totalorder %v4907_v3, %v1340_v39  ;;  %vm1382_vm9 = vcmp.eq.s32.totalorder %v4928_v55, %v1340_v39 }
 0x10c   : > { %1975 = vperm.xlu1 %4161, %v4412_v4   ;;  %vm1414_vm13 = vmor %vm1286_vm14, %vm1382_vm9 }
 0x10d   : > { %v3583_v38 = vsel %vm1414_vm13, 1.0, %v6505_v27  ;;  %vm1413_vm15 = vmor %vm1285_vm3, %vm1381_vm11  ;;  %vm1383_vm11 = vcmp.eq.s32.totalorder %v4907_v3, %v4635_v13  ;;  %v542_v13 = vmul.f32 %v4643_v15, %v4938_v8 }
 0x10e   : > { %3614 = vmatprep.mubr.msk.f32.mxu0 %vm1499_vm6, %v3583_v38  ;;  %v5374_v38 = vadd.s32 95, %v4229_v47 }
 0x10f   : > { %v506_v22 = vpop.permute.xlu1 %505  ;;  %3615 = vmatmul.mubr.msk.f32.gmra.mxu0 %vm1413_vm15, %v4299_v23  ;;  %v558_v37 = vadd.f32 %v4650_v20, %v542_v13 }
 0x110   : > { %4162 = vset.pattern.permute.xlu1 %v6506_v63  ;;  %v538_v4 = vmul.f32 %v4643_v15, %v506_v22  ;;  %v961_v22 = vadd.s32 72, %v4873_v0 }
 0x111   : > { %1360 = vperm.xlu1 %4162, %v5280_v31  }
 0x112   : > { %v554_v43 = vadd.f32 %v4650_v20, %v538_v4  ;;  %v6537_v4 = vld [vmem:[#allocation14_spill] sm:$0xff] }
 0x114   : > { %v1087_v56 = vpop.permute.xlu1 %1086  ;;  %3930 = vmatprep.mubr.msk.f32.mxu1 %vm564_vm0, %v554_v43 }
 0x115   : > { %4163 = vset.pattern.permute.xlu1 %v6507_v50  ;;  %3931 = vmatmul.mubr.msk.f32.gmra.mxu1 %vm564_vm0, %v555_v18  ;;  %vm1127_vm4 = vcmp.eq.s32.totalorder %v4907_v3, %v1087_v56  ;;  %vm1128_vm5 = vcmp.eq.s32.totalorder %v4928_v55, %v1087_v56 }
 0x116   : > { %1754 = vperm.xlu1 %4163, %v4480_v28   ;;  %vm1159_vm10 = vmor %vm1031_vm2, %vm1127_vm4  ;;  %v5311_v28 = vpop.permute.xlu0 %1223  ;;  %vm1034_vm2 = vcmp.eq.s32.totalorder %v4928_v55, %v5331_v9  ;;  %vm1130_vm4 = vcmp.eq.s32.totalorder %v4928_v55, %v4807_v42 }
 0x117   : > { %vm1160_vm12 = vmor %vm1032_vm1, %vm1128_vm5  ;;  %vm1033_vm1 = vcmp.eq.s32.totalorder %v4907_v3, %v5331_v9  ;;  %vm1129_vm5 = vcmp.eq.s32.totalorder %v4907_v3, %v4807_v42  ;;  %v976_v42 = vand.u32 31, %v960_v2  ;;  %v1694_v2 = vadd.s32 1, %v4934_v7  ;;  %v6547_v7 = vld [vmem:[#allocation16_spill] sm:$0xff] }
 0x119   : > { %v1215_v36 = vpop.permute.xlu1 %1214  ;;  %v5368_v39 = vmul.u32 2, %v976_v42 }
 0x11a   : > { %4164 = vset.pattern.permute.xlu1 %v6509_v52  ;;  %vm1255_vm8 = vcmp.eq.s32.totalorder %v4907_v3, %v1215_v36  ;;  %vm1256_vm14 = vcmp.eq.s32.totalorder %v4928_v55, %v1215_v36  ;;  %v5325_v41 = vpop.permute.xlu0 %1226  ;;  %v977_v36 = vand.u32 31, %v961_v22 }
 0x11b   : > { %vm1288_vm9 = vmor %vm1160_vm12, %vm1256_vm14  ;;  %1107 = vperm.xlu1 %4164, %v5304_v17  }
 0x11c   : > { %vm1416_vm13 = vmor %vm1288_vm9, %vm1384_vm7 }
 0x11d   : > { %v3585_v10 = vsel %vm1416_vm13, 1.0, %v6505_v27  ;;  %vm1287_vm3 = vmor %vm1159_vm10, %vm1255_vm8 }
 0x11e   : > { %v514_v26 = vpop.permute.xlu1 %513  ;;  %3616 = vmatprep.mubr.msk.f32.mxu0 %vm1499_vm6, %v3585_v10  ;;  %vm1415_vm15 = vmor %vm1287_vm3, %vm1383_vm11  ;;  %v5339_v8 = vpop.permute.xlu0 %1229  ;;  %v5408_v10 = vmul.u32 2, %v977_v36 }
 0x11f   : > { %4165 = vset.pattern.permute.xlu1 %v6508_v21  ;;  %v540_v11 = vmul.f32 %v4643_v15, %v514_v26  ;;  %3617 = vmatmul.mubr.msk.f32.gmra.mxu0 %vm1415_vm15, %v4299_v23  ;;  %vm1162_vm7 = vmor %vm1034_vm2, %vm1130_vm4  ;;  %vm1036_vm2 = vcmp.eq.s32.totalorder %v4928_v55, %v5368_v39 }
 0x120   : > { %1978 = vperm.xlu1 %4165, %v4571_v53   ;;  %vm1161_vm12 = vmor %vm1033_vm1, %vm1129_vm5  ;;  %vm1035_vm1 = vcmp.eq.s32.totalorder %v4907_v3, %v5368_v39 }
 0x121   : > { %v556_v49 = vadd.f32 %v4650_v20, %v540_v11  ;;  %v2340_v11 = vld [vmem:[%s6460_s6 + $0x30] sm:$0xff] }
 0x122   : > { %v518_v19 = vpop.permute.xlu1 %517  ;;  %v5356_v57 = vpop.permute.xlu0 %1232  ;;  %3941 = vmatprep.subr.mxu0 %v2340_v11 }
 0x123   : > { %v541_v45 = vmul.f32 %v4643_v15, %v518_v19  ;;  %3933 = vmatprep.mubr.msk.f32.mxu1 %vm564_vm0, %v556_v49  ;;  %3942 = vmatpush3.msra.mxu0 %v2340_v11 }
 0x124   : > { %4166 = vset.pattern.permute.xlu1 %v6506_v63 }
 0x125   : > { %v557_v53 = vadd.f32 %v4650_v20, %v541_v45  ;;  %1363 = vperm.xlu1 %4166, %v5329_v35   ;;  %v2338_v45 = vld [vmem:[%s6460_s6 + $0x20] sm:$0xff] }
 0x126   : > { %v5366_v14 = vpop.permute.xlu0 %1235 }
 0x127   : > { %v1218_v58 = vpop.permute.xlu1 %1217  ;;  %3934 = vmatmul.mubr.msk.f32.gmra.mxu1 %vm564_vm0, %v557_v53 }
 0x128   : > { %3936 = vmatprep.mubr.msk.f32.mxu1 %vm564_vm0, %v558_v37  ;;  %vm1258_vm10 = vcmp.eq.s32.totalorder %v4928_v55, %v1218_v58  ;;  %vm1257_vm8 = vcmp.eq.s32.totalorder %v4907_v3, %v1218_v58  ;;  %v6545_v37 = vld [vmem:[#allocation6_spill] sm:$0xff]  ;;  %v962_v58 = vadd.s32 80, %v4873_v0 }
 0x129   : > { %4167 = vset.pattern.permute.xlu1 %v6507_v50  ;;  %vm1290_vm14 = vmor %vm1162_vm7, %vm1258_vm10  ;;  %vm1260_vm7 = vcmp.eq.s32.totalorder %v4928_v55, %v5292_v44 }
 0x12a   : > { %1757 = vperm.xlu1 %4167, %v6535_v29   ;;  %vm1289_vm3 = vmor %vm1161_vm12, %vm1257_vm8 }
 0x12c   : > { %v1346_v24 = vpop.permute.xlu1 %1345 }
 0x12d   : > { %vm1385_vm11 = vcmp.eq.s32.totalorder %v4907_v3, %v1346_v24  ;;  %vm1386_vm9 = vcmp.eq.s32.totalorder %v4928_v55, %v1346_v24  ;;  %v6546_v24 = vld [vmem:[#allocation15_spill] sm:$0xff] }
 0x12e   : > { %4168 = vset.pattern.permute.xlu1 %v6509_v52  ;;  %vm1418_vm13 = vmor %vm1290_vm14, %vm1386_vm9 }
 0x12f   : > { %1110 = vperm.xlu1 %4168, %v5125_v16   ;;  %v3587_v59 = vsel %vm1418_vm13, 1.0, %v6505_v27  ;;  %vm1417_vm15 = vmor %vm1289_vm3, %vm1385_vm11  ;;  %v6536_v16 = vld [vmem:[#allocation11_spill] sm:$0xff] }
 0x130   : > { %3618 = vmatprep.mubr.msk.f32.mxu0 %vm1499_vm6, %v3587_v59 }
 0x131   : > { %v526_v30 = vpop.permute.xlu1 %525  ;;  %3619 = vmatmul.mubr.msk.f32.gmra.mxu0 %vm1417_vm15, %v4299_v23 }
 0x132   : > { %v543_v1 = vmul.f32 %v4643_v15, %v526_v30  ;;  %v5384_v15 = vpop.permute.xlu0 %1238 }
 0x133   : > { %4169 = vset.pattern.permute.xlu1 %v6508_v21 }
 0x134   : > { %v559_v12 = vadd.f32 %v4650_v20, %v543_v1  ;;  %1981 = vperm.xlu1 %4169, %v6536_v16   ;;  %v6550_v16 = vld [vmem:[#allocation17_spill] sm:$0xff] }
 0x136   : > { %v1093_v6 = vpop.permute.xlu1 %1092  ;;  %3937 = vmatmul.mubr.msk.f32.gmra.mxu1 %vm564_vm0, %v559_v12  ;;  %vm1259_vm0 = vcmp.eq.s32.totalorder %v4907_v3, %v5292_v44  ;;  %v5396_v18 = vpop.permute.xlu0 %1241  ;;  %v1693_v44 = vadd.s32 1, %v4923_v32  ;;  %v6538_v32 = vld [vmem:[#allocation5_spill] sm:$0xff] }
 0x137   : > { %vm1132_vm4 = vcmp.eq.s32.totalorder %v4928_v55, %v1093_v6  ;;  %vm1131_vm5 = vcmp.eq.s32.totalorder %v4907_v3, %v1093_v6 }
 0x138   : > { %4170 = vset.pattern.permute.xlu1 %v6506_v63  ;;  %vm1164_vm10 = vmor %vm1036_vm2, %vm1132_vm4  ;;  %vm1709_vm2 = vcmp.eq.s32.totalorder %v4907_v3, %v1693_v44 }
 0x139   : > { %1366 = vperm.xlu1 %4170, %v5374_v38   ;;  %vm1163_vm12 = vmor %vm1035_vm1, %vm1131_vm5  ;;  %vm1710_vm1 = vcmp.eq.s32.totalorder %v4928_v55, %v1693_v44 }
 0x13a   : > { %vm1292_vm11 = vmor %vm1164_vm10, %vm1260_vm7  ;;  %v1855_v54 = vpop.permute.xlu0 %1854 }
 0x13b   : > { %v1349_v20 = vpop.permute.xlu1 %1348  ;;  %vm1291_vm13 = vmor %vm1163_vm12, %vm1259_vm0  ;;  %vm1901_vm7 = vcmp.eq.s32.totalorder %v4907_v3, %v1855_v54  ;;  %vm1902_vm0 = vcmp.eq.s32.totalorder %v4928_v55, %v1855_v54  ;;  %vm1038_vm12 = vcmp.eq.s32.totalorder %v4928_v55, %v5408_v10 }
 0x13c   : > { %vm1387_vm8 = vcmp.eq.s32.totalorder %v4907_v3, %v1349_v20  ;;  %vm1388_vm14 = vcmp.eq.s32.totalorder %v4928_v55, %v1349_v20  ;;  %v6551_v20 = vld [vmem:[#allocation7_spill] sm:$0xff] }
 0x13d   : > { %4171 = vset.pattern.permute.xlu1 %v6507_v50  ;;  %vm1420_vm9 = vmor %vm1292_vm11, %vm1388_vm14 }
 0x13e   : > { %1760 = vperm.xlu1 %4171, %v6537_v4   ;;  %v3589_v43 = vsel %vm1420_vm9, 1.0, %v6505_v27  ;;  %vm1419_vm3 = vmor %vm1291_vm13, %vm1387_vm8  ;;  %vm1037_vm9 = vcmp.eq.s32.totalorder %v4907_v3, %v5408_v10  ;;  %v1858_v42 = vpop.permute.xlu0 %1857 }
 0x13f   : > { %3620 = vmatprep.mubr.msk.f32.mxu0 %vm1499_vm6, %v3589_v43  ;;  %v1695_v43 = vadd.s32 1, %v4968_v25 }
 0x140   : > { %v1743_v56 = vpop.permute.xlu1 %1742  ;;  %3621 = vmatmul.mubr.msk.f32.gmra.mxu0 %vm1419_vm3, %v4299_v23 }
 0x141   : > { %vm1789_vm15 = vcmp.eq.s32.totalorder %v4907_v3, %v1743_v56  ;;  %vm1790_vm4 = vcmp.eq.s32.totalorder %v4928_v55, %v1743_v56  ;;  %v6552_v56 = vld [vmem:[#allocation18_spill] sm:$0xff] }
 0x142   : > { %4172 = vset.pattern.permute.xlu1 %v6509_v52  ;;  %vm1821_vm5 = vmor %vm1709_vm2, %vm1789_vm15  ;;  %v1861_v54 = vpop.permute.xlu0 %1860  ;;  %v6553_v52 = vld [vmem:[#allocation8_spill] sm:$0xff] }
 0x143   : > { %1113 = vperm.xlu1 %4172, %v5169_v34   ;;  %vm1822_vm10 = vmor %vm1710_vm1, %vm1790_vm4  ;;  %vm1262_vm4 = vcmp.eq.s32.totalorder %v4928_v55, %v5311_v28 }
 0x144   : > { %vm5417_vm14 = vmor %vm1821_vm5, %vm1901_vm7  ;;  %vm1261_vm7 = vcmp.eq.s32.totalorder %v4907_v3, %v5311_v28  ;;  %v978_v28 = vand.u32 31, %v962_v58 }
 0x145   : > { %v1096_v26 = vpop.permute.xlu1 %1095  ;;  %vm1934_vm11 = vmor %vm1822_vm10, %vm1902_vm0 }
 0x146   : > { %vm1134_vm8 = vcmp.eq.s32.totalorder %v4928_v55, %v1096_v26  ;;  %vm1133_vm13 = vcmp.eq.s32.totalorder %v4907_v3, %v1096_v26  ;;  %v5484_v30 = vmul.u32 2, %v978_v28 }
 0x147   : > { %4173 = vset.pattern.permute.xlu1 %v6508_v21  ;;  %vm5431_vm15 = vmor %vm1038_vm12, %vm1134_vm8 }
 0x148   : > { %1984 = vperm.xlu1 %4173, %v6538_v32   ;;  %vm5440_vm5 = vmor %vm1037_vm9, %vm1133_vm13 }
 0x149   : > { %vm1294_vm8 = vmor %vm5431_vm15, %vm1262_vm4 }
 0x14a   : > { %v1967_v34 = vpop.permute.xlu1 %1966 }
 0x14b   : > { %vm2014_vm3 = vcmp.eq.s32.totalorder %v4928_v55, %v1967_v34  ;;  %vm2013_vm2 = vcmp.eq.s32.totalorder %v4907_v3, %v1967_v34 }
 0x14c   : > { %4175 = vset.pattern.permute.xlu1 %v6506_v63  ;;  %vm2046_vm1 = vmor %vm1934_vm11, %vm2014_vm3  ;;  %vm1711_vm3 = vcmp.eq.s32.totalorder %v4907_v3, %v1694_v2 }
 0x14d   : > { %1369 = vperm.xlu1 %4175, %v5223_v40   ;;  %v3637_v19 = vsel %vm2046_vm1, 1.0, %v6505_v27  ;;  %vm2045_vm10 = vmor %vm5417_vm14, %vm2013_vm2  ;;  %v2339_v40 = vld [vmem:[%s6460_s6 + $0x28] sm:$0xff]  ;;  %vm1712_vm2 = vcmp.eq.s32.totalorder %v4928_v55, %v1694_v2  ;;  %vm1903_vm1 = vcmp.eq.s32.totalorder %v4907_v3, %v1858_v42 }
 0x14e   : > { %3668 = vmatprep.mubr.msk.f32.mxu1 %vm1499_vm6, %v3637_v19  ;;  %3943 = vmatprep.subr.mxu0 %v2339_v40  ;;  %vm1293_vm11 = vmor %vm5440_vm5, %vm1261_vm7  ;;  %vm1904_vm7 = vcmp.eq.s32.totalorder %v4928_v55, %v1858_v42  ;;  %v6556_v19 = vld [vmem:[#allocation9_spill] sm:$0xff] }
 0x14f   : > { %v1352_v63 = vpop.permute.xlu1 %1351  ;;  %3669 = vmatmul.mubr.msk.f32.vlgmr.msra.gmra.mxu1 %vm2045_vm10, %v4299_v23  ;;  %3944 = vmatpush3.msra.mxu0 %v2339_v40 }
 0x150   : > { %vm1389_vm0 = vcmp.eq.s32.totalorder %v4907_v3, %v1352_v63  ;;  %vm1390_vm12 = vcmp.eq.s32.totalorder %v4928_v55, %v1352_v63  ;;  %3945 = vmatprep.subr.mxu0 %v2338_v45 }
 0x151   : > { %4176 = vset.pattern.permute.xlu1 %v6507_v50  ;;  %vm1422_vm14 = vmor %vm1294_vm8, %vm1390_vm12  ;;  %3946 = vmatpush3.msra.mxu0 %v2338_v45  ;;  %v964_v45 = vadd.s32 96, %v4873_v0 }
 0x152   : > { %1763 = vperm.xlu1 %4176, %v6545_v37   ;;  %v3591_v53 = vsel %vm1422_vm14, 1.0, %v6505_v27  ;;  %vm1421_vm9 = vmor %vm1293_vm11, %vm1389_vm0  ;;  %vm1040_vm0 = vcmp.eq.s32.totalorder %v4928_v55, %v5484_v30  ;;  %v1696_v37 = vadd.s32 1, %v4989_v62 }
 0x153   : > { %3622 = vmatprep.mubr.msk.f32.mxu0 %vm1499_vm6, %v3591_v53  ;;  %v980_v58 = vand.u32 31, %v964_v45 }
 0x154   : > { %v1746_v29 = vpop.permute.xlu1 %1745  ;;  %3623 = vmatmul.mubr.msk.f32.gmra.mxu0 %vm1421_vm9, %v4299_v23  ;;  %vm1039_vm9 = vcmp.eq.s32.totalorder %v4907_v3, %v5484_v30 }
 0x155   : > { %vm1791_vm13 = vcmp.eq.s32.totalorder %v4907_v3, %v1746_v29  ;;  %vm1792_vm15 = vcmp.eq.s32.totalorder %v4928_v55, %v1746_v29  ;;  %v1864_v29 = vpop.permute.xlu0 %1863  ;;  %v5587_v28 = vmul.u32 2, %v980_v58 }
 0x156   : > { %4177 = vset.pattern.permute.xlu1 %v6508_v21  ;;  %vm1823_vm4 = vmor %vm1711_vm3, %vm1791_vm13 }
 0x157   : > { %1987 = vperm.xlu1 %4177, %v6546_v24   ;;  %vm1824_vm5 = vmor %vm1712_vm2, %vm1792_vm15  ;;  %vm1264_vm15 = vcmp.eq.s32.totalorder %v4928_v55, %v5325_v41 }
 0x158   : > { %vm5490_vm10 = vmor %vm1823_vm4, %vm1903_vm1  ;;  %vm1263_vm1 = vcmp.eq.s32.totalorder %v4907_v3, %v5325_v41  ;;  %v963_v41 = vadd.s32 88, %v4873_v0 }
 0x159   : > { %v1099_v59 = vpop.permute.xlu1 %1098  ;;  %vm1936_vm8 = vmor %vm1824_vm5, %vm1904_vm7 }
 0x15a   : > { %vm1136_vm12 = vcmp.eq.s32.totalorder %v4928_v55, %v1099_v59  ;;  %vm1135_vm13 = vcmp.eq.s32.totalorder %v4907_v3, %v1099_v59  ;;  %v979_v44 = vand.u32 31, %v963_v41 }
 0x15b   : > { %4178 = vset.pattern.permute.xlu1 %v6507_v50  ;;  %vm1168_vm2 = vmor %vm1040_vm0, %vm1136_vm12 }
 0x15c   : > { %1766 = vperm.xlu1 %4178, %v6547_v7   ;;  %vm1167_vm5 = vmor %vm1039_vm9, %vm1135_vm13  ;;  %vm1713_vm9 = vcmp.eq.s32.totalorder %v4907_v3, %v1695_v43  ;;  %v5530_v32 = vmul.u32 2, %v979_v44 }
 0x15d   : > { %vm1296_vm12 = vmor %vm1168_vm2, %vm1264_vm15  ;;  %vm1905_vm2 = vcmp.eq.s32.totalorder %v4907_v3, %v1861_v54 }
 0x15e   : > { %v1970_v12 = vpop.permute.xlu1 %1969 }
 0x15f   : > { %vm2015_vm14 = vcmp.eq.s32.totalorder %v4907_v3, %v1970_v12  ;;  %vm2016_vm11 = vcmp.eq.s32.totalorder %v4928_v55, %v1970_v12  ;;  %v1697_v12 = vadd.s32 1, %v5146_v61 }
 0x160   : > { %4179 = vset.pattern.permute.xlu1 %v6508_v21  ;;  %vm2048_vm3 = vmor %vm1936_vm8, %vm2016_vm11 }
 0x161   : > { %1990 = vperm.xlu1 %4179, %v6550_v16   ;;  %v3639_v47 = vsel %vm2048_vm3, 1.0, %v6505_v27  ;;  %vm2047_vm4 = vmor %vm5490_vm10, %vm2015_vm14  ;;  %vm1714_vm3 = vcmp.eq.s32.totalorder %v4928_v55, %v1695_v43  ;;  %v6559_v16 = vld [vmem:[#allocation12_spill] sm:$0xff] }
 0x162   : > { %3670 = vmatprep.mubr.msk.f32.mxu1 %vm1499_vm6, %v3639_v47  ;;  %vm1295_vm10 = vmor %vm1167_vm5, %vm1263_vm1  ;;  %vm1906_vm1 = vcmp.eq.s32.totalorder %v4928_v55, %v1861_v54 }
 0x163   : > { %v1355_v6 = vpop.permute.xlu1 %1354  ;;  %3671 = vmatmul.mubr.msk.f32.gmra.mxu1 %vm2047_vm4, %v4299_v23 }
 0x164   : > { %vm1391_vm7 = vcmp.eq.s32.totalorder %v4907_v3, %v1355_v6  ;;  %vm1392_vm0 = vcmp.eq.s32.totalorder %v4928_v55, %v1355_v6  ;;  %v1867_v6 = vpop.permute.xlu0 %1866 }
 0x165   : > { %4181 = vset.pattern.permute.xlu1 %v6516_v51  ;;  %vm1424_vm8 = vmor %vm1296_vm12, %vm1392_vm0 }
 0x166   : > { %1881 = vperm.xlu1 %4181, %v6551_v20   ;;  %v3593_v22 = vsel %vm1424_vm8, 1.0, %v6505_v27  ;;  %vm1423_vm14 = vmor %vm1295_vm10, %vm1391_vm7  ;;  %vm1042_vm7 = vcmp.eq.s32.totalorder %v4928_v55, %v5530_v32 }
 0x167   : > { %3624 = vmatprep.mubr.msk.f32.mxu0 %vm1499_vm6, %v3593_v22 }
 0x168   : > { %v1749_v4 = vpop.permute.xlu1 %1748  ;;  %3625 = vmatmul.mubr.msk.f32.gmra.mxu0 %vm1423_vm14, %v4299_v23  ;;  %v1870_v45 = vpop.permute.xlu0 %1869 }
 0x169   : > { %v5524_v36 = vpop.f32.mrf.mxu0  ;;  %vm1793_vm11 = vcmp.eq.s32.totalorder %v4907_v3, %v1749_v4  ;;  %vm1794_vm13 = vcmp.eq.s32.totalorder %v4928_v55, %v1749_v4 }
 0x16a   : > { %4182 = vset.pattern.permute.xlu1 %v6508_v21  ;;  %vm1825_vm15 = vmor %vm1713_vm9, %vm1793_vm11  ;;  %vm1041_vm11 = vcmp.eq.s32.totalorder %v4907_v3, %v5530_v32 }
 0x16b   : > { %1993 = vperm.xlu1 %4182, %v6552_v56   ;;  %v5534_v25 = vpop.f32.mrf.mxu0  ;;  %vm1826_vm4 = vmor %vm1714_vm3, %vm1794_vm13  ;;  %vm1266_vm3 = vcmp.eq.s32.totalorder %v4928_v55, %v5339_v8  ;;  %v2336_v56 = vld [vmem:[%s6460_s6 + $0x10] sm:$0xff] }
 0x16c   : > { %vm5538_vm5 = vmor %vm1825_vm15, %vm1905_vm2  ;;  %vm1265_vm2 = vcmp.eq.s32.totalorder %v4907_v3, %v5339_v8 }
 0x16d   : > { %v1102_v26 = vpop.permute.xlu1 %1101  ;;  %vm1938_vm12 = vmor %vm1826_vm4, %vm1906_vm1  ;;  %v5545_v11 = vpop.f32.mrf.mxu0 }
 0x16e   : > { %vm1138_vm0 = vcmp.eq.s32.totalorder %v4928_v55, %v1102_v26  ;;  %vm1137_vm9 = vcmp.eq.s32.totalorder %v4907_v3, %v1102_v26  ;;  %v2335_v26 = vld [vmem:[%s6460_s6 + $0x8] sm:$0xff] }
 0x16f   : > { %4183 = vset.pattern.permute.xlu1 %v6516_v51  ;;  %vm1170_vm13 = vmor %vm1042_vm7, %vm1138_vm0  ;;  %v5560_v49 = vpop.f32.mrf.mxu0 }
 0x170   : > { %1884 = vperm.xlu1 %4183, %v6553_v52   ;;  %vm1169_vm4 = vmor %vm1041_vm11, %vm1137_vm9  ;;  %vm1716_vm11 = vcmp.eq.s32.totalorder %v4928_v55, %v1696_v37  ;;  %v2334_v52 = vld [vmem:[%s6460_s6] sm:$0xff] }
 0x171   : > { %vm1298_vm7 = vmor %vm1170_vm13, %vm1266_vm3  ;;  %v5569_v63 = vpop.f32.mrf.mxu0  ;;  %vm1907_vm3 = vcmp.eq.s32.totalorder %v4907_v3, %v1864_v29 }
 0x173   : > { %v1973_v46 = vpop.permute.xlu1 %1972  ;;  %v5578_v53 = vpop.f32.mrf.mxu0 }
 0x174   : > { %vm2017_vm8 = vcmp.eq.s32.totalorder %v4907_v3, %v1973_v46  ;;  %vm2018_vm10 = vcmp.eq.s32.totalorder %v4928_v55, %v1973_v46  ;;  %4185 = vset.pattern.permute.xlu1 %v6507_v50  ;;  %v966_v46 = vadd.s32 112, %v4873_v0 }
 0x175   : > { %1775 = vperm.xlu1 %4185, %v5122_v33   ;;  %vm2050_vm14 = vmor %vm1938_vm12, %vm2018_vm10  ;;  %vm1715_vm10 = vcmp.eq.s32.totalorder %v4907_v3, %v1696_v37  ;;  %v5585_v62 = vpop.f32.mrf.mxu0 }
 0x176   : > { %v3641_v13 = vsel %vm2050_vm14, 1.0, %v6505_v27  ;;  %vm2049_vm15 = vmor %vm5538_vm5, %vm2017_vm8 }
 0x177   : > { %3672 = vmatprep.mubr.msk.f32.mxu1 %vm1499_vm6, %v3641_v13  ;;  %vm1297_vm5 = vmor %vm1169_vm4, %vm1265_vm2  ;;  %vm1908_vm2 = vcmp.eq.s32.totalorder %v4928_v55, %v1864_v29  ;;  %v5592_v24 = vpop.f32.mrf.mxu0 }
 0x178   : > { %v1358_v33 = vpop.permute.xlu1 %1357  ;;  %3673 = vmatmul.mubr.msk.f32.gmra.mxu1 %vm2049_vm15, %v4299_v23 }
 0x179   : > { %vm1394_vm1 = vcmp.eq.s32.totalorder %v4928_v55, %v1358_v33  ;;  %4186 = vset.pattern.permute.xlu1 %v6516_v51  ;;  %vm1393_vm0 = vcmp.eq.s32.totalorder %v4907_v3, %v1358_v33  ;;  %v5611_v59 = vpop.f32.mrf.mxu0  ;;  %v1698_v33 = vadd.s32 1, %v5253_v48 }
 0x17a   : > { %1887 = vperm.xlu1 %4186, %v6556_v19   ;;  %vm1426_vm12 = vmor %vm1298_vm7, %vm1394_vm1  ;;  %vm1044_vm1 = vcmp.eq.s32.totalorder %v4928_v55, %v5587_v28 }
 0x17b   : > { %v3595_v40 = vsel %vm1426_vm12, 1.0, %v6505_v27  ;;  %vm1425_vm8 = vmor %vm1297_vm5, %vm1393_vm0 }
 0x17c   : > { %3626 = vmatprep.mubr.msk.f32.mxu0 %vm1499_vm6, %v3595_v40  ;;  %v982_v40 = vand.u32 31, %v966_v46 }
 0x17d   : > { %v1752_v8 = vpop.permute.xlu1 %1751  ;;  %3627 = vmatmul.mubr.msk.f32.gmra.mxu0 %vm1425_vm8, %v4299_v23  ;;  %vm1043_vm8 = vcmp.eq.s32.totalorder %v4907_v3, %v5587_v28 }
 0x17e   : > { %4187 = vset.pattern.permute.xlu1 %v6507_v50  ;;  %vm1795_vm14 = vcmp.eq.s32.totalorder %v4907_v3, %v1752_v8  ;;  %vm1796_vm9 = vcmp.eq.s32.totalorder %v4928_v55, %v1752_v8  ;;  %v5705_v58 = vmul.u32 2, %v982_v40 }
 0x17f   : > { %1778 = vperm.xlu1 %4187, %v5258_v5   ;;  %vm1827_vm13 = vmor %vm1715_vm10, %vm1795_vm14 }
 0x180   : > { %vm1828_vm15 = vmor %vm1716_vm11, %vm1796_vm9  ;;  %vm1268_vm11 = vcmp.eq.s32.totalorder %v4928_v55, %v5356_v57 }
 0x181   : > { %vm5594_vm4 = vmor %vm1827_vm13, %vm1907_vm3  ;;  %vm1267_vm3 = vcmp.eq.s32.totalorder %v4907_v3, %v5356_v57  ;;  %v965_v57 = vadd.s32 104, %v4873_v0 }
 0x182   : > { %v1105_v2 = vpop.permute.xlu1 %1104  ;;  %vm1940_vm12 = vmor %vm1828_vm15, %vm1908_vm2 }
 0x183   : > { %4189 = vset.pattern.permute.xlu1 %v6508_v21  ;;  %vm1140_vm7 = vcmp.eq.s32.totalorder %v4928_v55, %v1105_v2  ;;  %vm1139_vm10 = vcmp.eq.s32.totalorder %v4907_v3, %v1105_v2  ;;  %v981_v47 = vand.u32 31, %v965_v57 }
 0x184   : > { %2002 = vperm.xlu1 %4189, %v5280_v31   ;;  %vm1172_vm9 = vmor %vm1044_vm1, %vm1140_vm7 }
 0x185   : > { %vm1171_vm15 = vmor %vm1043_vm8, %vm1139_vm10  ;;  %vm1718_vm10 = vcmp.eq.s32.totalorder %v4928_v55, %v1697_v12  ;;  %v5641_v22 = vmul.u32 2, %v981_v47  ;;  %v1699_v47 = vadd.s32 1, %v5289_v60 }
 0x186   : > { %vm1300_vm1 = vmor %vm1172_vm9, %vm1268_vm11  ;;  %vm1909_vm9 = vcmp.eq.s32.totalorder %v4907_v3, %v1867_v6 }
 0x187   : > { %v1976_v5 = vpop.permute.xlu1 %1975 }
 0x188   : > { %vm2020_vm0 = vcmp.eq.s32.totalorder %v4928_v55, %v1976_v5  ;;  %4190 = vset.pattern.permute.xlu1 %v6507_v50  ;;  %vm2019_vm5 = vcmp.eq.s32.totalorder %v4907_v3, %v1976_v5 }
 0x189   : > { %1781 = vperm.xlu1 %4190, %v5304_v17   ;;  %vm2052_vm14 = vmor %vm1940_vm12, %vm2020_vm0  ;;  %v5623_v17 = vpop.f32.mrf.mxu0 }
 0x18a   : > { %v3643_v31 = vsel %vm2052_vm14, 1.0, %v6505_v27  ;;  %vm2051_vm13 = vmor %vm5594_vm4, %vm2019_vm5  ;;  %vm1717_vm5 = vcmp.eq.s32.totalorder %v4907_v3, %v1697_v12 }
 0x18b   : > { %3674 = vmatprep.mubr.msk.f32.mxu1 %vm1499_vm6, %v3643_v31  ;;  %vm1299_vm4 = vmor %vm1171_vm15, %vm1267_vm3  ;;  %vm1910_vm3 = vcmp.eq.s32.totalorder %v4928_v55, %v1867_v6 }
 0x18c   : > { %v1361_v50 = vpop.permute.xlu1 %1360  ;;  %3675 = vmatmul.mubr.msk.f32.gmra.mxu1 %vm2051_vm13, %v4299_v23 }
 0x18d   : > { %vm1396_vm2 = vcmp.eq.s32.totalorder %v4928_v55, %v1361_v50  ;;  %4191 = vset.pattern.permute.xlu1 %v6508_v21  ;;  %vm1395_vm7 = vcmp.eq.s32.totalorder %v4907_v3, %v1361_v50 }
 0x18e   : > { %2005 = vperm.xlu1 %4191, %v5329_v35   ;;  %vm1428_vm0 = vmor %vm1300_vm1, %vm1396_vm2  ;;  %v5632_v35 = vpop.f32.mrf.mxu0  ;;  %vm1046_vm2 = vcmp.eq.s32.totalorder %v4928_v55, %v5641_v22 }
 0x18f   : > { %v3597_v7 = vsel %vm1428_vm0, 1.0, %v6505_v27  ;;  %vm1427_vm12 = vmor %vm1299_vm4, %vm1395_vm7 }
 0x190   : > { %3628 = vmatprep.mubr.msk.f32.mxu0 %vm1499_vm6, %v3597_v7  ;;  %v5639_v61 = vpop.f32.mrf.mxu0 }
 0x191   : > { %v1755_v1 = vpop.permute.xlu1 %1754  ;;  %3629 = vmatmul.mubr.msk.f32.gmra.mxu0 %vm1427_vm12, %v4299_v23  ;;  %vm1045_vm12 = vcmp.eq.s32.totalorder %v4907_v3, %v5641_v22 }
 0x192   : > { %4193 = vset.pattern.permute.xlu1 %v6516_v51  ;;  %vm1797_vm8 = vcmp.eq.s32.totalorder %v4907_v3, %v1755_v1  ;;  %vm1798_vm14 = vcmp.eq.s32.totalorder %v4928_v55, %v1755_v1  ;;  %v5646_v4 = vpop.f32.mrf.mxu0  ;;  %v967_v1 = vadd.s32 120, %v4873_v0  ;;  %v1873_v0 = vpop.permute.xlu0 %1872 }
 0x193   : > { %1896 = vperm.xlu1 %4193, %v6559_v16   ;;  %vm1829_vm11 = vmor %vm1717_vm5, %vm1797_vm8 }
 0x194   : > { %vm1830_vm13 = vmor %vm1718_vm10, %vm1798_vm14  ;;  %vm1270_vm10 = vcmp.eq.s32.totalorder %v4928_v55, %v5366_v14  ;;  %v5671_v44 = vpop.f32.mrf.mxu0 }
 0x195   : > { %vm5648_vm15 = vmor %vm1829_vm11, %vm1909_vm9  ;;  %vm1269_vm9 = vcmp.eq.s32.totalorder %v4907_v3, %v5366_v14 }
 0x196   : > { %v1108_v20 = vpop.permute.xlu1 %1107  ;;  %vm1942_vm0 = vmor %vm1830_vm13, %vm1910_vm3  ;;  %v5690_v34 = vpop.f32.mrf.mxu0 }
 0x197   : > { %4194 = vset.pattern.permute.xlu1 %v6508_v21  ;;  %vm1142_vm1 = vcmp.eq.s32.totalorder %v4928_v55, %v1108_v20  ;;  %v6562_v21 = vld [vmem:[#allocation13_spill] sm:$0xff]  ;;  %vm1141_vm5 = vcmp.eq.s32.totalorder %v4907_v3, %v1108_v20  ;;  %v983_v20 = vand.u32 31, %v967_v1 }
 0x198   : > { %2008 = vperm.xlu1 %4194, %v5374_v38   ;;  %v2337_v38 = vld [vmem:[%s6460_s6 + $0x18] sm:$0xff]  ;;  %vm1174_vm14 = vmor %vm1046_vm2, %vm1142_vm1  ;;  %v5697_v19 = vpop.f32.mrf.mxu0 }
 0x199   : > { %3971 = vmatprep.subr.mxu1 %v2337_v38  ;;  %vm1173_vm13 = vmor %vm1045_vm12, %vm1141_vm5  ;;  %vm1720_vm5 = vcmp.eq.s32.totalorder %v4928_v55, %v1698_v33  ;;  %v5747_v60 = vmul.u32 2, %v983_v20 }
 0x19a   : > { %3972 = vmatpush3.msra.mxu1 %v2337_v38 }
 0x19b   : > { %v1979_v41 = vpop.permute.xlu1 %1978  ;;  %3973 = vmatprep.subr.mxu1 %v2336_v56 }
 0x19c   : > { %vm2022_vm7 = vcmp.eq.s32.totalorder %v4928_v55, %v1979_v41  ;;  %4195 = vset.pattern.permute.xlu1 %v6516_v51  ;;  %vm2021_vm4 = vcmp.eq.s32.totalorder %v4907_v3, %v1979_v41  ;;  %3974 = vmatpush3.msra.mxu1 %v2336_v56 }
 0x19d   : > { %1899 = vperm.xlu1 %4195, %v6562_v21   ;;  %vm2054_vm8 = vmor %vm1942_vm0, %vm2022_vm7  ;;  %3975 = vmatprep.subr.mxu1 %v2335_v26 }
 0x19e   : > { %v3645_v51 = vsel %vm2054_vm8, 1.0, %v6505_v27  ;;  %vm2053_vm11 = vmor %vm5648_vm15, %vm2021_vm4  ;;  %3976 = vmatpush3.msra.mxu1 %v2335_v26  ;;  %vm1719_vm4 = vcmp.eq.s32.totalorder %v4907_v3, %v1698_v33 }
 0x19f   : > { %3676 = vmatprep.mubr.msk.f32.mxu1 %vm1499_vm6, %v3645_v51  ;;  %vm1302_vm15 = vmor %vm1174_vm14, %vm1270_vm10  ;;  %3977 = vmatprep.subr.mxu1 %v2334_v52  ;;  %vm1911_vm14 = vcmp.eq.s32.totalorder %v4907_v3, %v1870_v45 }
 0x1a0   : > { %v1364_v54 = vpop.permute.xlu1 %1363  ;;  %3677 = vmatmul.mubr.msk.f32.gmra.mxu1 %vm2053_vm11, %v4299_v23  ;;  %vm1301_vm7 = vmor %vm1173_vm13, %vm1269_vm9  ;;  %vm1912_vm9 = vcmp.eq.s32.totalorder %v4928_v55, %v1870_v45 }
 0x1a1   : > { %vm1398_vm3 = vcmp.eq.s32.totalorder %v4928_v55, %v1364_v54  ;;  %vm1397_vm2 = vcmp.eq.s32.totalorder %v4907_v3, %v1364_v54  ;;  %3978 = vmatpush3.msra.mxu1 %v2334_v52  ;;  %v1700_v54 = vadd.s32 1, %v5331_v9 }
 0x1a2   : > { %vm1430_vm1 = vmor %vm1302_vm15, %vm1398_vm3  ;;  %vm1048_vm3 = vcmp.eq.s32.totalorder %v4928_v55, %v5705_v58 }
 0x1a3   : > { %v3599_v14 = vsel %vm1430_vm1, 1.0, %v6505_v27  ;;  %vm1429_vm0 = vmor %vm1301_vm7, %vm1397_vm2 }
 0x1a4   : > { %3630 = vmatprep.mubr.msk.f32.mxu0 %vm1499_vm6, %v3599_v14 }
 0x1a5   : > { %v1758_v13 = vpop.permute.xlu1 %1757  ;;  %3631 = vmatmul.mubr.msk.f32.gmra.mxu0 %vm1429_vm0, %v4299_v23  ;;  %vm1047_vm0 = vcmp.eq.s32.totalorder %v4907_v3, %v5705_v58 }
 0x1a6   : > { %vm1799_vm12 = vcmp.eq.s32.totalorder %v4907_v3, %v1758_v13  ;;  %vm1800_vm8 = vcmp.eq.s32.totalorder %v4928_v55, %v1758_v13  ;;  %v1701_v13 = vadd.s32 1, %v5368_v39  ;;  %v5795_v39 = vpop.f32.mrf.mxu1 }
 0x1a7   : > { %vm1831_vm10 = vmor %vm1719_vm4, %vm1799_vm12 }
 0x1a8   : > { %vm1832_vm11 = vmor %vm1720_vm5, %vm1800_vm8 }
 0x1a9   : > { %v5701_v8 = vpop.f32.mrf.mxu0  ;;  %vm1943_vm13 = vmor %vm1831_vm10, %vm1911_vm14  ;;  %vm1272_vm10 = vcmp.eq.s32.totalorder %v4928_v55, %v5384_v15 }
 0x1aa   : > { %v1111_v37 = vpop.permute.xlu1 %1110  ;;  %vm1944_vm1 = vmor %vm1832_vm11, %vm1912_vm9 }
 0x1ab   : > { %v1616_v48 = vpop.f32.mrf.mxu0  ;;  %vm1144_vm15 = vcmp.eq.s32.totalorder %v4928_v55, %v1111_v37  ;;  %vm1143_vm4 = vcmp.eq.s32.totalorder %v4907_v3, %v1111_v37  ;;  %v5802_v37 = vpop.f32.mrf.mxu1 }
 0x1ac   : > { %vm1176_vm5 = vmor %vm1048_vm3, %vm1144_vm15  ;;  %v1702_v48 = vadd.s32 1, %v5408_v10 }
 0x1ad   : > { %vm1175_vm14 = vmor %vm1047_vm0, %vm1143_vm4  ;;  %vm1722_vm4 = vcmp.eq.s32.totalorder %v4928_v55, %v1699_v47 }
 0x1ae   : > { %vm1304_vm9 = vmor %vm1176_vm5, %vm1272_vm10 }
 0x1af   : > { %v1982_v29 = vpop.permute.xlu1 %1981 }
 0x1b0   : > { %vm2024_vm2 = vcmp.eq.s32.totalorder %v4928_v55, %v1982_v29  ;;  %vm2023_vm7 = vcmp.eq.s32.totalorder %v4907_v3, %v1982_v29 }
 0x1b1   : > { %vm2056_vm12 = vmor %vm1944_vm1, %vm2024_vm2 }
 0x1b2   : > { %v5717_v2 = vpop.f32.mrf.mxu0  ;;  %v3647_v5 = vsel %vm2056_vm12, 1.0, %v6505_v27  ;;  %vm2055_vm8 = vmor %vm1943_vm13, %vm2023_vm7  ;;  %vm1271_vm13 = vcmp.eq.s32.totalorder %v4907_v3, %v5384_v15  ;;  %v5740_v15 = vld [vmem:[%s6460_s6 + $0x78] sm:$0xff]  ;;  %vm1721_vm7 = vcmp.eq.s32.totalorder %v4907_v3, %v1699_v47 }
 0x1b3   : > { %3678 = vmatprep.mubr.msk.f32.mxu1 %vm1499_vm6, %v3647_v5  ;;  %vm1303_vm2 = vmor %vm1175_vm14, %vm1271_vm13  ;;  %4035 = vmatprep.subr.mxu1 %v5740_v15  ;;  %vm1914_vm14 = vcmp.eq.s32.totalorder %v4928_v55, %v1873_v0 }
 0x1b4   : > { %v1621_v42 = vpop.f32.mrf.mxu0  ;;  %v1367_v31 = vpop.permute.xlu1 %1366  ;;  %3679 = vmatmul.mubr.msk.f32.gmra.mxu1 %vm2055_vm8, %v4299_v23  ;;  %vm1913_vm8 = vcmp.eq.s32.totalorder %v4907_v3, %v1873_v0  ;;  %v1704_v0 = vadd.s32 1, %v5530_v32 }
 0x1b5   : > { %vm1400_vm11 = vcmp.eq.s32.totalorder %v4928_v55, %v1367_v31  ;;  %vm1399_vm3 = vcmp.eq.s32.totalorder %v4907_v3, %v1367_v31  ;;  %v1703_v42 = vadd.s32 1, %v5484_v30 }
 0x1b6   : > { %v5725_v50 = vpop.f32.mrf.mxu0  ;;  %vm1432_vm15 = vmor %vm1304_vm9, %vm1400_vm11  ;;  %vm1050_vm9 = vcmp.eq.s32.totalorder %v4928_v55, %v5747_v60 }
 0x1b7   : > { %v3601_v57 = vsel %vm1432_vm15, 1.0, %v6505_v27  ;;  %vm1431_vm1 = vmor %vm1303_vm2, %vm1399_vm3 }
 0x1b8   : > { %v1626_v7 = vpop.f32.mrf.mxu0  ;;  %3632 = vmatprep.mubr.msk.f32.mxu0 %vm1499_vm6, %v3601_v57 }
 0x1b9   : > { %v1761_v12 = vpop.permute.xlu1 %1760  ;;  %3633 = vmatmul.mubr.msk.f32.gmra.mxu0 %vm1431_vm1, %v4299_v23  ;;  %vm1049_vm1 = vcmp.eq.s32.totalorder %v4907_v3, %v5747_v60  ;;  %v5811_v7 = vpop.f32.mrf.mxu1 }
 0x1ba   : > { %v5733_v16 = vpop.f32.mrf.mxu0  ;;  %vm1801_vm0 = vcmp.eq.s32.totalorder %v4907_v3, %v1761_v12  ;;  %vm1802_vm12 = vcmp.eq.s32.totalorder %v4928_v55, %v1761_v12 }
 0x1bb   : > { %vm1833_vm5 = vmor %vm1721_vm7, %vm1801_vm0  ;;  %v5821_v30 = vpop.f32.mrf.mxu1 }
 0x1bc   : > { %v1631_v6 = vpop.f32.mrf.mxu0  ;;  %vm1834_vm10 = vmor %vm1722_vm4, %vm1802_vm12 }
 0x1bd   : > { %vm1945_vm11 = vmor %vm1833_vm5, %vm1913_vm8  ;;  %vm1274_vm5 = vcmp.eq.s32.totalorder %v4928_v55, %v5396_v18  ;;  %v5829_v12 = vpop.f32.mrf.mxu1 }
 0x1be   : > { %v1114_v41 = vpop.permute.xlu1 %1113  ;;  %vm1946_vm15 = vmor %vm1834_vm10, %vm1914_vm14 }
 0x1bf   : > { %vm1146_vm3 = vcmp.eq.s32.totalorder %v4928_v55, %v1114_v41  ;;  %vm1145_vm7 = vcmp.eq.s32.totalorder %v4907_v3, %v1114_v41  ;;  %v5836_v20 = vpop.f32.mrf.mxu1 }
 0x1c0   : > { %v1634_v43 = vpop.f32.mrf.mxu0  ;;  %vm1178_vm4 = vmor %vm1050_vm9, %vm1146_vm3  ;;  %vm1273_vm9 = vcmp.eq.s32.totalorder %v4907_v3, %v5396_v18  ;;  %v1876_v18 = vpop.permute.xlu0 %1875 }
 0x1c1   : > { %vm1177_vm8 = vmor %vm1049_vm1, %vm1145_vm7  ;;  %vm1724_vm1 = vcmp.eq.s32.totalorder %v4928_v55, %v1700_v54  ;;  %v5846_v41 = vpop.f32.mrf.mxu1 }
 0x1c2   : > { %v1636_v21 = vpop.f32.mrf.mxu0  ;;  %vm1306_vm14 = vmor %vm1178_vm4, %vm1274_vm5 }
 0x1c3   : > { %v1985_v38 = vpop.permute.xlu1 %1984  ;;  %vm1305_vm3 = vmor %vm1177_vm8, %vm1273_vm9  ;;  %vm1915_vm8 = vcmp.eq.s32.totalorder %v4907_v3, %v1876_v18  ;;  %v5854_v32 = vpop.f32.mrf.mxu1 }
 0x1c4   : > { %vm2026_vm13 = vcmp.eq.s32.totalorder %v4928_v55, %v1985_v38  ;;  %vm2025_vm2 = vcmp.eq.s32.totalorder %v4907_v3, %v1985_v38  ;;  %v1879_v45 = vpop.permute.xlu0 %1878 }
 0x1c5   : > { %vm2058_vm0 = vmor %vm1946_vm15, %vm2026_vm13  ;;  %vm6488_vm15 = vcmask 261120  }
 0x1c6   : > { %v3649_v56 = vsel %vm2058_vm0, 1.0, %v6505_v27  ;;  %vm2057_vm12 = vmor %vm1945_vm11, %vm2025_vm2  ;;  %vm1723_vm0 = vcmp.eq.s32.totalorder %v4907_v3, %v1700_v54 }
 0x1c7   : > { %3680 = vmatprep.mubr.msk.f32.mxu1 %vm1499_vm6, %v3649_v56 }
 0x1c8   : > { %v1370_v51 = vpop.permute.xlu1 %1369  ;;  %3681 = vmatmul.mubr.msk.f32.gmra.mxu1 %vm2057_vm12, %v4299_v23  ;;  %vm1916_vm12 = vcmp.eq.s32.totalorder %v4928_v55, %v1876_v18 }
 0x1c9   : > { %vm1402_vm10 = vcmp.eq.s32.totalorder %v4928_v55, %v1370_v51  ;;  %vm1401_vm13 = vcmp.eq.s32.totalorder %v4907_v3, %v1370_v51 }
 0x1ca   : > { %vm1434_vm11 = vmor %vm1306_vm14, %vm1402_vm10 }
 0x1cb   : > { %v3603_v26 = vsel %vm1434_vm11, 1.0, %v6505_v27  ;;  %vm1433_vm2 = vmor %vm1305_vm3, %vm1401_vm13 }
 0x1cc   : > { %3634 = vmatprep.mubr.msk.f32.mxu0 %vm1499_vm6, %v3603_v26  ;;  %v5858_v26 = vpop.f32.mrf.mxu1 }
 0x1cd   : > { %v1764_v52 = vpop.permute.xlu1 %1763  ;;  %3635 = vmatmul.mubr.msk.f32.gmra.mxu0 %vm1433_vm2, %v4299_v23 }
 0x1ce   : > { %vm1804_vm7 = vcmp.eq.s32.totalorder %v4928_v55, %v1764_v52  ;;  %3947 = vmatprep.mubr.msk.f32.mxu0 %vm6488_vm15, %v5701_v8  ;;  %vm1803_vm4 = vcmp.eq.s32.totalorder %v4907_v3, %v1764_v52  ;;  %v1705_v52 = vadd.s32 1, %v5587_v28 }
 0x1cf   : > { %v1639_v9 = vpop.f32.mrf.mxu0  ;;  %vm1836_vm5 = vmor %vm1724_vm1, %vm1804_vm7  ;;  %vm1726_vm1 = vcmp.eq.s32.totalorder %v4928_v55, %v1701_v13 }
 0x1d0   : > { %vm1835_vm10 = vmor %vm1723_vm0, %vm1803_vm4  ;;  %vm1725_vm0 = vcmp.eq.s32.totalorder %v4907_v3, %v1701_v13 }
 0x1d1   : > { %v1641_v14 = vpop.f32.mrf.mxu0  ;;  %3948 = vmatmul.mubr.msk.f32.vlgmr.msra.gmra.mxu0 %vm6488_vm15, %v5717_v2  ;;  %vm1948_vm13 = vmor %vm1836_vm5, %vm1916_vm12  ;;  %vm1918_vm5 = vcmp.eq.s32.totalorder %v4928_v55, %v1879_v45  ;;  %v1770_v2 = vpop.permute.xlu0 %1769 }
 0x1d2   : > { %v1988_v46 = vpop.permute.xlu1 %1987  ;;  %3950 = vmatprep.mubr.msk.f32.mxu0 %vm6488_vm15, %v5725_v50  ;;  %vm1947_vm3 = vmor %vm1835_vm10, %vm1915_vm8 }
 0x1d3   : > { %vm2028_vm14 = vcmp.eq.s32.totalorder %v4928_v55, %v1988_v46  ;;  %vm2027_vm9 = vcmp.eq.s32.totalorder %v4907_v3, %v1988_v46 }
 0x1d4   : > { %vm2060_vm11 = vmor %vm1948_vm13, %vm2028_vm14 }
 0x1d5   : > { %3951 = vmatmul.mubr.msk.f32.gmra.mxu0 %vm6488_vm15, %v5733_v16  ;;  %v3651_v33 = vsel %vm2060_vm11, 1.0, %v6505_v27  ;;  %vm2059_vm2 = vmor %vm1947_vm3, %vm2027_vm9  ;;  %vm1917_vm9 = vcmp.eq.s32.totalorder %v4907_v3, %v1879_v45  ;;  %v1773_v10 = vpop.permute.xlu0 %1772  ;;  %v1706_v45 = vadd.s32 1, %v5641_v22 }
 0x1d6   : > { %3682 = vmatprep.mubr.msk.f32.mxu1 %vm1499_vm6, %v3651_v33  ;;  %3953 = vmatprep.mubr.msk.f32.mxu0 %vm6488_vm15, %v1634_v43 }
 0x1d7   : > { %v1767_v40 = vpop.permute.xlu1 %1766  ;;  %3683 = vmatmul.mubr.msk.f32.gmra.mxu1 %vm2059_vm2, %v4299_v23 }
 0x1d8   : > { %vm1806_vm7 = vcmp.eq.s32.totalorder %v4928_v55, %v1767_v40  ;;  %vm1805_vm4 = vcmp.eq.s32.totalorder %v4907_v3, %v1767_v40 }
 0x1d9   : > { %3954 = vmatmul.mubr.msk.f32.gmra.mxu0 %vm6488_vm15, %v1639_v9  ;;  %vm1838_vm12 = vmor %vm1726_vm1, %vm1806_vm7  ;;  %vm1728_vm1 = vcmp.eq.s32.totalorder %v4928_v55, %v1702_v48  ;;  %vm1808_vm7 = vcmp.eq.s32.totalorder %v4928_v55, %v1770_v2  ;;  %v1997_v47 = vpop.permute.xlu0 %1996  ;;  %v5865_v9 = vpop.f32.mrf.mxu1 }
 0x1da   : > { %vm1837_vm8 = vmor %vm1725_vm0, %vm1805_vm4  ;;  %vm1727_vm0 = vcmp.eq.s32.totalorder %v4907_v3, %v1702_v48  ;;  %vm1807_vm4 = vcmp.eq.s32.totalorder %v4907_v3, %v1770_v2 }
 0x1db   : > { %vm1950_vm14 = vmor %vm1838_vm12, %vm1918_vm5  ;;  %vm1730_vm12 = vcmp.eq.s32.totalorder %v4928_v55, %v1703_v42  ;;  %vm1810_vm5 = vcmp.eq.s32.totalorder %v4928_v55, %v1773_v10  ;;  %v5870_v13 = vpop.f32.mrf.mxu1 }
 0x1dc   : > { %v1991_v8 = vpop.permute.xlu1 %1990  ;;  %vm1949_vm3 = vmor %vm1837_vm8, %vm1917_vm9 }
 0x1dd   : > { %vm2030_vm10 = vcmp.eq.s32.totalorder %v4928_v55, %v1991_v8  ;;  %vm2029_vm13 = vcmp.eq.s32.totalorder %v4907_v3, %v1991_v8  ;;  %vm1840_vm8 = vmor %vm1728_vm1, %vm1808_vm7  ;;  %vm1729_vm7 = vcmp.eq.s32.totalorder %v4907_v3, %v1703_v42  ;;  %v2000_v51 = vpop.permute.xlu0 %1999  ;;  %v5877_v33 = vpop.f32.mrf.mxu1 }
 0x1de   : > { %vm2062_vm11 = vmor %vm1950_vm14, %vm2030_vm10 }
 0x1df   : > { %v1644_v29 = vpop.f32.mrf.mxu0  ;;  %v3653_v5 = vsel %vm2062_vm11, 1.0, %v6505_v27  ;;  %vm2061_vm2 = vmor %vm1949_vm3, %vm2029_vm13 }
 0x1e0   : > { %3956 = vmatprep.mubr.msk.f32.mxu0 %vm6488_vm15, %v1644_v29  ;;  %3684 = vmatprep.mubr.msk.f32.mxu1 %vm1499_vm6, %v3653_v5  ;;  %vm1839_vm14 = vmor %vm1727_vm0, %vm1807_vm4  ;;  %vm1809_vm15 = vcmp.eq.s32.totalorder %v4907_v3, %v1773_v10  ;;  %v2732_v10 = vld [vmem:[%s6460_s6 + $0x58] sm:$0xff] }
 0x1e1   : > { %v1882_v31 = vpop.permute.xlu1 %1881  ;;  %v1646_v50 = vpop.f32.mrf.mxu0  ;;  %3685 = vmatmul.mubr.msk.f32.gmra.mxu1 %vm2061_vm2, %v4299_v23  ;;  %vm5825_vm11 = vmor %vm1730_vm12, %vm1810_vm5  ;;  %4003 = vmatprep.subr.mxu0 %v2732_v10 }
 0x1e2   : > { %vm1920_vm10 = vcmp.eq.s32.totalorder %v4928_v55, %v1882_v31  ;;  %vm1919_vm13 = vcmp.eq.s32.totalorder %v4907_v3, %v1882_v31  ;;  %vm1841_vm12 = vmor %vm1729_vm7, %vm1809_vm15  ;;  %vm1732_vm7 = vcmp.eq.s32.totalorder %v4928_v55, %v1704_v0  ;;  %v1891_v46 = vpop.permute.xlu0 %1890  ;;  %v1707_v50 = vadd.s32 1, %v5705_v58  ;;  %4004 = vmatpush3.msra.mxu0 %v2732_v10 }
 0x1e3   : > { %vm1952_vm3 = vmor %vm1840_vm8, %vm1920_vm10  ;;  %vm2034_vm10 = vcmp.eq.s32.totalorder %v4928_v55, %v1997_v47 }
 0x1e4   : > { %vm1951_vm0 = vmor %vm1839_vm14, %vm1919_vm13 }
 0x1e6   : > { %v1994_v57 = vpop.permute.xlu1 %1993  ;;  %v1894_v5 = vpop.permute.xlu0 %1893 }
 0x1e7   : > { %vm2032_vm9 = vcmp.eq.s32.totalorder %v4928_v55, %v1994_v57  ;;  %vm2031_vm2 = vcmp.eq.s32.totalorder %v4907_v3, %v1994_v57  ;;  %v5885_v29 = vpop.f32.mrf.mxu1  ;;  %v2731_v57 = vld [vmem:[%s6460_s6 + $0x50] sm:$0xff] }
 0x1e8   : > { %vm2064_vm1 = vmor %vm1952_vm3, %vm2032_vm9  ;;  %vm2033_vm9 = vcmp.eq.s32.totalorder %v4907_v3, %v1997_v47  ;;  %4005 = vmatprep.subr.mxu0 %v2731_v57 }
 0x1e9   : > { %v3655_v16 = vsel %vm2064_vm1, 1.0, %v6505_v27  ;;  %vm2063_vm4 = vmor %vm1951_vm0, %vm2031_vm2  ;;  %vm6565_vm2 = vcmask 261120   ;;  %vm1731_vm1 = vcmp.eq.s32.totalorder %v4907_v3, %v1704_v0  ;;  %v5893_v22 = vpop.f32.mrf.mxu1  ;;  %4006 = vmatpush3.msra.mxu0 %v2731_v57 }
 0x1ea   : > { %3686 = vmatprep.mubr.msk.f32.mxu1 %vm1499_vm6, %v3655_v16  ;;  %v1785_v1 = vpop.permute.xlu0 %1784 }
 0x1eb   : > { %v1885_v6 = vpop.permute.xlu1 %1884  ;;  %3687 = vmatmul.mubr.msk.f32.gmra.mxu1 %vm2063_vm4, %v4299_v23 }
 0x1ec   : > { %vm1921_vm5 = vcmp.eq.s32.totalorder %v4907_v3, %v1885_v6  ;;  %vm1922_vm8 = vcmp.eq.s32.totalorder %v4928_v55, %v1885_v6  ;;  %v2730_v6 = vld [vmem:[%s6460_s6 + $0x48] sm:$0xff] }
 0x1ed   : > { %vm1954_vm14 = vmor %vm5825_vm11, %vm1922_vm8  ;;  %4007 = vmatprep.subr.mxu0 %v2730_v6 }
 0x1ee   : > { %vm1953_vm13 = vmor %vm1841_vm12, %vm1921_vm5  ;;  %4008 = vmatpush3.msra.mxu0 %v2730_v6 }
 0x1ef   : > { %vm2066_vm3 = vmor %vm1954_vm14, %vm2034_vm10  ;;  %vm2036_vm10 = vcmp.eq.s32.totalorder %v4928_v55, %v2000_v51 }
 0x1f0   : > { %v1776_v43 = vpop.permute.xlu1 %1775  ;;  %v3657_v21 = vsel %vm2066_vm3, 1.0, %v6505_v27  ;;  %vm2065_vm15 = vmor %vm1953_vm13, %vm2033_vm9  ;;  %vm2035_vm9 = vcmp.eq.s32.totalorder %v4907_v3, %v2000_v51 }
 0x1f1   : > { %v1649_v38 = vpop.f32.mrf.mxu0  ;;  %3688 = vmatprep.mubr.msk.f32.mxu1 %vm1499_vm6, %v3657_v21  ;;  %vm1811_vm11 = vcmp.eq.s32.totalorder %v4907_v3, %v1776_v43  ;;  %vm1812_vm0 = vcmp.eq.s32.totalorder %v4928_v55, %v1776_v43  ;;  %v2729_v43 = vld [vmem:[%s6460_s6 + $0x40] sm:$0xff]  ;;  %v1708_v21 = vadd.s32 1, %v5747_v60 }
 0x1f2   : > { %3957 = vmatmul.mubr.msk.f32.gmra.mxu0 %vm6565_vm2, %v1649_v38  ;;  %3689 = vmatmul.mubr.msk.f32.gmra.mxu1 %vm2065_vm15, %v4299_v23  ;;  %vm1843_vm4 = vmor %vm1731_vm1, %vm1811_vm11  ;;  %vm1734_vm15 = vcmp.eq.s32.totalorder %v4928_v55, %v1705_v52  ;;  %vm1733_vm11 = vcmp.eq.s32.totalorder %v4907_v3, %v1705_v52 }
 0x1f3   : > { %v1651_v56 = vpop.f32.mrf.mxu0  ;;  %vm1844_vm8 = vmor %vm1732_vm7, %vm1812_vm0  ;;  %4009 = vmatprep.subr.mxu0 %v2729_v43 }
 0x1f4   : > { %v1788_v56 = vpop.permute.xlu0 %1787  ;;  %4010 = vmatpush3.msra.mxu0 %v2729_v43 }
 0x1f5   : > { %v1888_v54 = vpop.permute.xlu1 %1887 }
 0x1f6   : > { %vm1923_vm12 = vcmp.eq.s32.totalorder %v4907_v3, %v1888_v54  ;;  %vm1924_vm5 = vcmp.eq.s32.totalorder %v4928_v55, %v1888_v54  ;;  %v5896_v31 = vpop.f32.mrf.mxu1 }
 0x1f7   : > { %vm1956_vm14 = vmor %vm1844_vm8, %vm1924_vm5  ;;  %vm1925_vm5 = vcmp.eq.s32.totalorder %v4907_v3, %v1891_v46 }
 0x1f8   : > { %vm1955_vm13 = vmor %vm1843_vm4, %vm1923_vm12  ;;  %vm1926_vm4 = vcmp.eq.s32.totalorder %v4928_v55, %v1891_v46  ;;  %v5909_v47 = vpop.f32.mrf.mxu1  ;;  %v5944_v46 = vld [vmem:[%s6458_s4] ss:$0 sm:$0xff] }
 0x1f9   : > { %vm2068_vm3 = vmor %vm1956_vm14, %vm2036_vm10 }
 0x1fa   : > { %v1779_v18 = vpop.permute.xlu1 %1778  ;;  %v3659_v14 = vsel %vm2068_vm3, 1.0, %v6505_v27  ;;  %vm2067_vm1 = vmor %vm1955_vm13, %vm2035_vm9  ;;  %vm6566_vm13 = vcmask 261120  }
 0x1fb   : > { %vm1814_vm2 = vcmp.eq.s32.totalorder %v4928_v55, %v1779_v18  ;;  %3690 = vmatprep.mubr.msk.f32.mxu1 %vm1499_vm6, %v3659_v14  ;;  %vm1813_vm7 = vcmp.eq.s32.totalorder %v4907_v3, %v1779_v18  ;;  %v2012_v18 = vpop.permute.xlu0 %2011 }
 0x1fc   : > { %3691 = vmatmul.mubr.msk.f32.gmra.mxu1 %vm2067_vm1, %v4299_v23  ;;  %vm1846_vm0 = vmor %vm1734_vm15, %vm1814_vm2  ;;  %vm1736_vm2 = vcmp.eq.s32.totalorder %v4928_v55, %v1706_v45 }
 0x1fd   : > { %vm1845_vm12 = vmor %vm1733_vm11, %vm1813_vm7  ;;  %vm1735_vm11 = vcmp.eq.s32.totalorder %v4907_v3, %v1706_v45  ;;  %v690_v45 = vadd.f32 %v5944_v46, %v5560_v49  ;;  %v700_v49 = vadd.f32 %v5944_v46, %v5578_v53  ;;  %v710_v53 = vadd.f32 %v5944_v46, %v5592_v24 }
 0x1fe   : > { %vm1958_vm10 = vmor %vm1846_vm0, %vm1926_vm4  ;;  %vm1928_vm4 = vcmp.eq.s32.totalorder %v4928_v55, %v1894_v5  ;;  %v730_v24 = vadd.f32 %v5944_v46, %v5639_v61  ;;  %v750_v61 = vadd.f32 %v5944_v46, %v5697_v19 }
 0x1ff   : > { %v2003_v28 = vpop.permute.xlu1 %2002  ;;  %vm1957_vm3 = vmor %vm1845_vm12, %vm1925_vm5  ;;  %vm1927_vm5 = vcmp.eq.s32.totalorder %v4907_v3, %v1894_v5  ;;  %v720_v5 = vadd.f32 %v5944_v46, %v5623_v17  ;;  %v740_v17 = vadd.f32 %v5944_v46, %v5671_v44 }
 0x200   : > { %vm2038_vm8 = vcmp.eq.s32.totalorder %v4928_v55, %v2003_v28  ;;  %v1654_v40 = vpop.f32.mrf.mxu0  ;;  %vm2037_vm14 = vcmp.eq.s32.totalorder %v4907_v3, %v2003_v28  ;;  %v680_v28 = vadd.f32 %v5944_v46, %v5534_v25  ;;  %v2944_v25 = vld [vmem:[%s6460_s6 + $0x70] sm:$0xff] }
 0x201   : > { %3959 = vmatprep.mubr.msk.f32.mxu0 %vm6566_vm13, %v1654_v40  ;;  %vm2070_vm9 = vmor %vm1958_vm10, %vm2038_vm8 }
 0x202   : > { %v1656_v8 = vpop.f32.mrf.mxu0  ;;  %v3661_v48 = vsel %vm2070_vm9, 1.0, %v6505_v27  ;;  %vm2069_vm15 = vmor %vm1957_vm3, %vm2037_vm14 }
 0x203   : > { %3692 = vmatprep.mubr.msk.f32.mxu1 %vm1499_vm6, %v3661_v48 }
 0x204   : > { %v1782_v2 = vpop.permute.xlu1 %1781  ;;  %3693 = vmatmul.mubr.msk.f32.gmra.mxu1 %vm2069_vm15, %v4299_v23  ;;  %vm1738_vm15 = vcmp.eq.s32.totalorder %v4928_v55, %v1707_v50 }
 0x205   : > { %vm1816_vm1 = vcmp.eq.s32.totalorder %v4928_v55, %v1782_v2  ;;  %vm1815_vm7 = vcmp.eq.s32.totalorder %v4907_v3, %v1782_v2  ;;  %v715_v2 = vadd.f32 %v5585_v62, %v5944_v46  ;;  %v735_v62 = vadd.f32 %v5632_v35, %v5944_v46 }
 0x206   : > { %vm1848_vm0 = vmor %vm1736_vm2, %vm1816_vm1  ;;  %vm1818_vm2 = vcmp.eq.s32.totalorder %v4928_v55, %v1785_v1  ;;  %vm1737_vm1 = vcmp.eq.s32.totalorder %v4907_v3, %v1707_v50  ;;  %v755_v35 = vadd.f32 %v5690_v34, %v5944_v46 }
 0x207   : > { %vm1847_vm12 = vmor %vm1735_vm11, %vm1815_vm7  ;;  %vm1817_vm11 = vcmp.eq.s32.totalorder %v4907_v3, %v1785_v1 }
 0x208   : > { %vm1960_vm10 = vmor %vm1848_vm0, %vm1928_vm4 }
 0x209   : > { %v2006_v42 = vpop.permute.xlu1 %2005  ;;  %vm1959_vm9 = vmor %vm1847_vm12, %vm1927_vm5 }
 0x20a   : > { %vm2040_vm8 = vcmp.eq.s32.totalorder %v4928_v55, %v2006_v42  ;;  %vm2039_vm14 = vcmp.eq.s32.totalorder %v4907_v3, %v2006_v42  ;;  %vm1850_vm7 = vmor %vm1738_vm15, %vm1818_vm2  ;;  %vm1740_vm2 = vcmp.eq.s32.totalorder %v4928_v55, %v1708_v21 }
 0x20b   : > { %vm2072_vm13 = vmor %vm1960_vm10, %vm2040_vm8 }
 0x20c   : > { %v3663_v16 = vsel %vm2072_vm13, 1.0, %v6505_v27  ;;  %vm2071_vm3 = vmor %vm1959_vm9, %vm2039_vm14  ;;  %vm6567_vm14 = vcmask 261120   ;;  %vm1739_vm13 = vcmp.eq.s32.totalorder %v4907_v3, %v1708_v21  ;;  %vm1819_vm9 = vcmp.eq.s32.totalorder %v4907_v3, %v1788_v56 }
 0x20d   : > { %3694 = vmatprep.mubr.msk.f32.mxu1 %vm1499_vm6, %v3663_v16  ;;  %vm1849_vm4 = vmor %vm1737_vm1, %vm1817_vm11  ;;  %vm1820_vm1 = vcmp.eq.s32.totalorder %v4928_v55, %v1788_v56 }
 0x20e   : > { %v1897_v58 = vpop.permute.xlu1 %1896  ;;  %3695 = vmatmul.mubr.msk.f32.gmra.mxu1 %vm2071_vm3, %v4299_v23 }
 0x20f   : > { %v5918_v0 = vpop.f32.mrf.mxu1  ;;  %vm1930_vm0 = vcmp.eq.s32.totalorder %v4928_v55, %v1897_v58  ;;  %vm1929_vm12 = vcmp.eq.s32.totalorder %v4907_v3, %v1897_v58 }
 0x210   : > { %vm1962_vm8 = vmor %vm1850_vm7, %vm1930_vm0 }
 0x211   : > { %v2257_v38 = vpop.f32.mrf.mxu1  ;;  %vm1961_vm15 = vmor %vm1849_vm4, %vm1929_vm12  ;;  %vm2044_vm4 = vcmp.eq.s32.totalorder %v4928_v55, %v2012_v18 }
 0x212   : > { %vm1851_vm7 = vmor %vm1739_vm13, %vm1819_vm9 }
 0x213   : > { %v2009_v51 = vpop.permute.xlu1 %2008 }
 0x214   : > { %vm2042_vm5 = vcmp.eq.s32.totalorder %v4928_v55, %v2009_v51  ;;  %v1659_v54 = vpop.f32.mrf.mxu0  ;;  %vm2041_vm10 = vcmp.eq.s32.totalorder %v4907_v3, %v2009_v51 }
 0x215   : > { %3960 = vmatmul.mubr.msk.f32.gmra.mxu0 %vm6567_vm14, %v1659_v54  ;;  %vm2074_vm3 = vmor %vm1962_vm8, %vm2042_vm5  ;;  %v873_v54 = vadd.f32 %v5944_v46, %v5802_v37  ;;  %v893_v37 = vadd.f32 %v5944_v46, %v5836_v20  ;;  %v913_v20 = vadd.f32 %v5944_v46, %v5865_v9  ;;  %v933_v9 = vadd.f32 %v5944_v46, %v5893_v22 }
 0x216   : > { %v1661_v60 = vpop.f32.mrf.mxu0  ;;  %v3665_v52 = vsel %vm2074_vm3, 1.0, %v6505_v27  ;;  %vm2073_vm11 = vmor %vm1961_vm15, %vm2041_vm10  ;;  %vm2043_vm10 = vcmp.eq.s32.totalorder %v4907_v3, %v2012_v18  ;;  %vm6568_vm3 = vcmask 261120   ;;  %v878_v18 = vadd.f32 %v5795_v39, %v5944_v46 }
 0x217   : > { %3696 = vmatprep.mubr.msk.f32.mxu1 %vm1499_vm6, %v3665_v52  ;;  %vm1852_vm5 = vmor %vm1740_vm2, %vm1820_vm1  ;;  %v898_v39 = vadd.f32 %v5829_v12, %v5944_v46  ;;  %v918_v12 = vadd.f32 %v5858_v26, %v5944_v46  ;;  %v938_v26 = vadd.f32 %v5885_v29, %v5944_v46 }
 0x218   : > { %v1900_v14 = vpop.permute.xlu1 %1899  ;;  %3697 = vmatmul.mubr.msk.f32.gmra.mxu1 %vm2073_vm11, %v4299_v23  ;;  %vm6569_vm15 = vmmov %vm6568_vm3 }
 0x219   : > { %vm1931_vm0 = vcmp.eq.s32.totalorder %v4907_v3, %v1900_v14  ;;  %vm1932_vm14 = vcmp.eq.s32.totalorder %v4928_v55, %v1900_v14  ;;  %v685_v55 = vadd.f32 %v5524_v36, %v5944_v46  ;;  %vm6570_vm2 = vmmov %vm6568_vm3  ;;  %v695_v36 = vadd.f32 %v5545_v11, %v5944_v46 }
 0x21a   : > { %vm1964_vm12 = vmor %vm1852_vm5, %vm1932_vm14  ;;  %v705_v11 = vadd.f32 %v5569_v63, %v5944_v46  ;;  %v725_v63 = vadd.f32 %v5611_v59, %v5944_v46  ;;  %v745_v59 = vadd.f32 %v5646_v4, %v5944_v46  ;;  %v883_v14 = vadd.f32 %v5944_v46, %v5821_v30 }
 0x21b   : > { %vm1963_vm8 = vmor %vm1851_vm7, %vm1931_vm0  ;;  %v903_v30 = vadd.f32 %v5944_v46, %v5854_v32  ;;  %v923_v32 = vadd.f32 %v5944_v46, %v5877_v33  ;;  %v943_v33 = vadd.f32 %v5944_v46, %v5909_v47 }
 0x21c   : > { %vm2076_vm13 = vmor %vm1964_vm12, %vm2044_vm4 }
 0x21d   : > { %v3667_v40 = vsel %vm2076_vm13, 1.0, %v6505_v27  ;;  %vm2075_vm9 = vmor %vm1963_vm8, %vm2043_vm10 }
 0x21e   : > { %3698 = vmatprep.mubr.msk.f32.mxu1 %vm1499_vm6, %v3667_v40  ;;  %vm6571_vm6 = vmmov %vm6570_vm2 }
 0x21f   : > { %3699 = vmatmul.mubr.msk.f32.gmra.mxu1 %vm2075_vm9, %v4299_v23  ;;  %v2943_v23 = vld [vmem:[%s6460_s6 + $0x68] sm:$0xff]  ;;  %vm6572_vm1 = vmmov %vm6570_vm2 }
 0x220   : > { %3979 = vmatprep.mubr.msk.f32.mxu1 %vm6568_vm3, %v680_v28  ;;  %vm6573_vm11 = vmmov %vm6572_vm1  ;;  %v888_v28 = vadd.f32 %v5811_v7, %v5944_v46  ;;  %v908_v7 = vadd.f32 %v5846_v41, %v5944_v46  ;;  %v928_v41 = vadd.f32 %v5870_v13, %v5944_v46  ;;  %v948_v13 = vadd.f32 %v5896_v31, %v5944_v46 }
 0x221   : > { %vm6574_vm7 = vmmov %vm6572_vm1 }
 0x222   : > { %vm6575_vm0 = vmmov %vm6572_vm1 }
 0x223   : > { %v2260_v3 = vpop.f32.mrf.mxu1  ;;  %3980 = vmatmul.mubr.msk.f32.vlgmr.msra.gmra.mxu1 %vm6569_vm15, %v685_v55  ;;  %vm6576_vm14 = vmmov %vm6575_vm0 }
 0x224   : > { %3982 = vmatprep.mubr.msk.f32.mxu1 %vm6570_vm2, %v690_v45  ;;  %4036 = vmatpush3.msra.mxu1 %v5740_v15  ;;  %v2942_v15 = vld [vmem:[%s6460_s6 + $0x60] sm:$0xff]  ;;  %vm6577_vm5 = vmmov %vm6575_vm0 }
 0x225   : > { %v2262_v27 = vpop.f32.mrf.mxu1  ;;  %4037 = vmatprep.subr.mxu1 %v2944_v25  ;;  %vm6578_vm4 = vmmov %vm6575_vm0 }
 0x226   : > { %4038 = vmatpush3.msra.mxu1 %v2944_v25  ;;  %vm6579_vm12 = vmmov %vm6575_vm0 }
 0x227   : > { %3983 = vmatmul.mubr.msk.f32.gmra.mxu1 %vm6571_vm6, %v695_v36  ;;  %4039 = vmatprep.subr.mxu1 %v2943_v23  ;;  %vm6580_vm8 = vmmov %vm6575_vm0 }
 0x228   : > { %v1664_v8 = vpop.f32.mrf.mxu0  ;;  %3985 = vmatprep.mubr.msk.f32.mxu1 %vm6572_vm1, %v700_v49  ;;  %4040 = vmatpush3.msra.mxu1 %v2943_v23  ;;  %vm6581_vm10 = vmmov %vm6575_vm0 }
 0x229   : > { %3962 = vmatprep.mubr.msk.f32.mxu0 %vm6573_vm11, %v1664_v8  ;;  %4041 = vmatprep.subr.mxu1 %v2942_v15  ;;  %vm6582_vm13 = vmmov %vm6575_vm0 }
 0x22a   : > { %v1666_v48 = vpop.f32.mrf.mxu0  ;;  %4042 = vmatpush3.msra.mxu1 %v2942_v15  ;;  %vm6583_vm9 = vmmov %vm6575_vm0 }
 0x22b   : > { %3986 = vmatmul.mubr.msk.f32.gmra.mxu1 %vm6574_vm7, %v705_v11  ;;  %vm6584_vm3 = vmmov %vm6575_vm0 }
 0x22c   : > { %3988 = vmatprep.mubr.msk.f32.mxu1 %vm6575_vm0, %v710_v53  ;;  %vm6585_vm15 = vmmov %vm6575_vm0 }
 0x22d   : > { %vm6586_vm2 = vmmov %vm6575_vm0 }
 0x22e   : > { %vm6587_vm6 = vmmov %vm6575_vm0 }
 0x22f   : > { %3989 = vmatmul.mubr.msk.f32.gmra.mxu1 %vm6576_vm14, %v715_v2  ;;  %vm6588_vm1 = vmmov %vm6575_vm0 }
 0x230   : > { %3991 = vmatprep.mubr.msk.f32.mxu1 %vm6577_vm5, %v720_v5  ;;  %vm6589_vm11 = vmmov %vm6575_vm0 }
 0x231   : > { %vm6590_vm7 = vmmov %vm6575_vm0 }
 0x232   : > { %vm6591_vm14 = vmmov %vm6575_vm0 }
 0x233   : > { %3992 = vmatmul.mubr.msk.f32.gmra.mxu1 %vm6578_vm4, %v725_v63  ;;  %vm6592_vm5 = vmmov %vm6575_vm0 }
 0x234   : > { %3994 = vmatprep.mubr.msk.f32.mxu1 %vm6579_vm12, %v730_v24  ;;  %vm6593_vm4 = vmmov %vm6575_vm0 }
 0x235   : > { %vm6594_vm12 = vmmov %vm6575_vm0 }
 0x237   : > { %3995 = vmatmul.mubr.msk.f32.gmra.mxu1 %vm6580_vm8, %v735_v62  ;;  %vm6595_vm8 = vmmov %vm6575_vm0 }
 0x238   : > { %v2265_v42 = vpop.f32.mrf.mxu1  ;;  %3997 = vmatprep.mubr.msk.f32.mxu1 %vm6581_vm10, %v740_v17  ;;  %vm6596_vm10 = vmmov %vm6575_vm0 }
 0x23a   : > { %v2267_v50 = vpop.f32.mrf.mxu1 }
 0x23b   : > { %3998 = vmatmul.mubr.msk.f32.gmra.mxu1 %vm6582_vm13, %v745_v59  ;;  %vm6597_vm13 = vmmov %vm6575_vm0 }
 0x23c   : > { %4000 = vmatprep.mubr.msk.f32.mxu1 %vm6583_vm9, %v750_v61  ;;  %vm6598_vm9 = vmmov %vm6575_vm0 }
 0x23d   : > { %v1669_v44 = vpop.f32.mrf.mxu0 }
 0x23e   : > { %3963 = vmatmul.mubr.msk.f32.gmra.mxu0 %vm6584_vm3, %v1669_v44  ;;  %vm6599_vm3 = vmmov %vm6575_vm0 }
 0x23f   : > { %4001 = vmatmul.mubr.msk.f32.gmra.mxu1 %vm6585_vm15, %v755_v35  ;;  %v1671_v10 = vpop.f32.mrf.mxu0  ;;  %vm6600_vm15 = vmmov %vm6575_vm0 }
 0x240   : > { %4043 = vmatprep.mubr.msk.f32.mxu1 %vm6586_vm2, %v5918_v0  ;;  %vm6601_vm2 = vmmov %vm6575_vm0 }
 0x243   : > { %4044 = vmatmul.mubr.msk.f32.vlgmr.msra.gmra.mxu1 %vm6587_vm6, %v2260_v3  ;;  %vm6602_vm6 = vmmov %vm6575_vm0 }
 0x244   : > { %4046 = vmatprep.mubr.msk.f32.mxu1 %vm6588_vm1, %v2265_v42  ;;  %vm6603_vm1 = vmmov %vm6575_vm0 }
 0x24c   : > { %v2270_v4 = vpop.f32.mrf.mxu1 }
 0x24d   : > { %4047 = vmatmul.mubr.msk.f32.gmra.mxu1 %vm6589_vm11, %v2270_v4  ;;  %vm6604_vm11 = vmmov %vm6575_vm0 }
 0x24e   : > { %v2272_v19 = vpop.f32.mrf.mxu1 }
 0x251   : > { %v1674_v57 = vpop.f32.mrf.mxu0 }
 0x252   : > { %3965 = vmatprep.mubr.msk.f32.mxu0 %vm6590_vm7, %v1674_v57  ;;  %vm6605_vm7 = vmmov %vm6575_vm0 }
 0x253   : > { %v1676_v34 = vpop.f32.mrf.mxu0 }
 0x260   : > { %v2275_v1 = vpop.f32.mrf.mxu1 }
 0x261   : > { %4049 = vmatprep.mubr.msk.f32.mxu1 %vm6575_vm0, %v2275_v1 }
 0x262   : > { %v2277_v16 = vpop.f32.mrf.mxu1 }
 0x265   : > { %v1679_v58 = vpop.f32.mrf.mxu0 }
 0x266   : > { %3966 = vmatmul.mubr.msk.f32.gmra.mxu0 %vm6591_vm14, %v1679_v58  ;;  %vm6606_vm14 = vmmov %vm6575_vm0 }
 0x267   : > { %v1681_v6 = vpop.f32.mrf.mxu0 }
 0x274   : > { %v2280_v0 = vpop.f32.mrf.mxu1 }
 0x275   : > { %4050 = vmatmul.mubr.msk.f32.gmra.mxu1 %vm6592_vm5, %v2280_v0  ;;  %vm6607_vm5 = vmmov %vm6575_vm0 }
 0x276   : > { %v2282_v43 = vpop.f32.mrf.mxu1 }
 0x279   : > { %v1684_v21 = vpop.f32.mrf.mxu0 }
 0x27a   : > { %3968 = vmatprep.mubr.msk.f32.mxu0 %vm6593_vm4, %v1684_v21  ;;  %vm6608_vm4 = vmmov %vm6575_vm0 }
 0x27b   : > { %v1686_v38 = vpop.f32.mrf.mxu0 }
 0x288   : > { %v2285_v56 = vpop.f32.mrf.mxu1 }
 0x289   : > { %4052 = vmatprep.mubr.msk.f32.mxu1 %vm6594_vm12, %v2285_v56  ;;  %vm6609_vm12 = vmmov %vm6575_vm0 }
 0x28a   : > { %v2287_v51 = vpop.f32.mrf.mxu1 }
 0x28d   : > { %v1689_v60 = vpop.f32.mrf.mxu0 }
 0x28e   : > { %3969 = vmatmul.mubr.msk.f32.gmra.mxu0 %vm6595_vm8, %v1689_v60  ;;  %vm6610_vm8 = vmmov %vm6575_vm0 }
 0x28f   : > { %v1691_v52 = vpop.f32.mrf.mxu0  ;;  %4011 = vmatprep.mubr.msk.f32.mxu0 %vm6596_vm10, %v873_v54  ;;  %vm6611_vm10 = vmmov %vm6575_vm0 }
 0x291   : > { %v3949_v62 = vpop.f32.mrf.mxu0 }
 0x292   : > { %4012 = vmatmul.mubr.msk.f32.vlgmr.msra.gmra.mxu0 %vm6597_vm13, %v878_v18  ;;  %vm6612_vm13 = vmmov %vm6575_vm0 }
 0x293   : > { %4014 = vmatprep.mubr.msk.f32.mxu0 %vm6598_vm9, %v883_v14  ;;  %vm6613_vm9 = vmmov %vm6575_vm0  ;;  %v2457_v42 = vpop.f32.mrf.mxu0 }
 0x295   : > { %v3952_v50 = vpop.f32.mrf.mxu0 }
 0x296   : > { %4015 = vmatmul.mubr.msk.f32.gmra.mxu0 %vm6599_vm3, %v888_v28  ;;  %vm6614_vm3 = vmmov %vm6575_vm0 }
 0x297   : > { %v2290_v40 = vpop.f32.mrf.mxu1  ;;  %4017 = vmatprep.mubr.msk.f32.mxu0 %vm6600_vm15, %v893_v37  ;;  %vm6615_vm15 = vmmov %vm6575_vm0  ;;  %v2467_v35 = vpop.f32.mrf.mxu0 }
 0x298   : > { %4053 = vmatmul.mubr.msk.f32.gmra.mxu1 %vm6601_vm2, %v2290_v40  ;;  %vm6616_vm2 = vmmov %vm6575_vm0 }
 0x299   : > { %v2292_v55 = vpop.f32.mrf.mxu1  ;;  %v3955_v10 = vpop.f32.mrf.mxu0 }
 0x29a   : > { %4018 = vmatmul.mubr.msk.f32.gmra.mxu0 %vm6602_vm6, %v898_v39  ;;  %vm6617_vm6 = vmmov %vm6575_vm0 }
 0x29b   : > { %4020 = vmatprep.mubr.msk.f32.mxu0 %vm6603_vm1, %v903_v30  ;;  %vm6618_vm1 = vmmov %vm6575_vm0  ;;  %v2477_v19 = vpop.f32.mrf.mxu0 }
 0x29e   : > { %4021 = vmatmul.mubr.msk.f32.gmra.mxu0 %vm6604_vm11, %v908_v7  ;;  %vm6619_vm11 = vmmov %vm6575_vm0 }
 0x29f   : > { %4023 = vmatprep.mubr.msk.f32.mxu0 %vm6605_vm7, %v913_v20  ;;  %v6114_v20 = vld [vmem:[%s6458_s4 + $0x1] ss:$0 sm:$0xff]  ;;  %vm6620_vm7 = vmmov %vm6575_vm0 }
 0x2a1   : > { %v2295_v45 = vpop.f32.mrf.mxu1 }
 0x2a2   : > { %4024 = vmatmul.mubr.msk.f32.gmra.mxu0 %vm6575_vm0, %v918_v12  ;;  %4055 = vmatprep.mubr.msk.f32.mxu1 %vm6606_vm14, %v2295_v45  ;;  %vm6621_vm14 = vmmov %vm6575_vm0 }
 0x2a3   : > { %v2297_v3 = vpop.f32.mrf.mxu1  ;;  %4026 = vmatprep.mubr.msk.f32.mxu0 %vm6607_vm5, %v923_v32  ;;  %vm6622_vm5 = vmmov %vm6575_vm0 }
 0x2a6   : > { %4027 = vmatmul.mubr.msk.f32.gmra.mxu0 %vm6608_vm4, %v928_v41  ;;  %vm6623_vm4 = vmmov %vm6575_vm0 }
 0x2a7   : > { %4029 = vmatprep.mubr.msk.f32.mxu0 %vm6609_vm12, %v933_v9  ;;  %vm6624_vm12 = vmmov %vm6575_vm0 }
 0x2aa   : > { %4030 = vmatmul.mubr.msk.f32.gmra.mxu0 %vm6610_vm8, %v938_v26  ;;  %vm6625_vm8 = vmmov %vm6575_vm0 }
 0x2ab   : > { %v2300_v25 = vpop.f32.mrf.mxu1  ;;  %4032 = vmatprep.mubr.msk.f32.mxu0 %vm6611_vm10, %v943_v33  ;;  %vm6626_vm10 = vmmov %vm6575_vm0 }
 0x2ac   : > { %4056 = vmatmul.mubr.msk.f32.gmra.mxu1 %vm6612_vm13, %v2300_v25  ;;  %vm6627_vm13 = vmmov %vm6575_vm0 }
 0x2ad   : > { %v2302_v22 = vpop.f32.mrf.mxu1 }
 0x2ae   : > { %4033 = vmatmul.mubr.msk.f32.gmra.mxu0 %vm6613_vm9, %v948_v13  ;;  %vm6628_vm9 = vmmov %vm6575_vm0 }
 0x2b2   : > { %v2305_v27 = vpop.f32.mrf.mxu1  ;;  %v3958_v34 = vpop.f32.mrf.mxu0 }
 0x2b3   : > { %4058 = vmatprep.mubr.msk.f32.mxu1 %vm6614_vm3, %v2305_v27  ;;  %vm6629_vm3 = vmmov %vm6575_vm0 }
 0x2b4   : > { %v2307_v29 = vpop.f32.mrf.mxu1  ;;  %v2487_v16 = vpop.f32.mrf.mxu0 }
 0x2bc   : > { %v2310_v23 = vpop.f32.mrf.mxu1 }
 0x2bd   : > { %4059 = vmatmul.mubr.msk.f32.gmra.mxu1 %vm6615_vm15, %v2310_v23  ;;  %vm6630_vm15 = vmmov %vm6575_vm0 }
 0x2be   : > { %v2312_v47 = vpop.f32.mrf.mxu1 }
 0x2c4   : > { %v2315_v36 = vpop.f32.mrf.mxu1 }
 0x2c5   : > { %4061 = vmatprep.mubr.msk.f32.mxu1 %vm6616_vm2, %v2315_v36  ;;  %vm6631_vm2 = vmmov %vm6575_vm0 }
 0x2c6   : > { %v2317_v49 = vpop.f32.mrf.mxu1 }
 0x2ce   : > { %v2320_v8 = vpop.f32.mrf.mxu1 }
 0x2cf   : > { %4062 = vmatmul.mubr.msk.f32.gmra.mxu1 %vm6617_vm6, %v2320_v8  ;;  %vm6632_vm6 = vmmov %vm6575_vm0 }
 0x2d0   : > { %v2322_v31 = vpop.f32.mrf.mxu1 }
 0x2d5   : > { %v6087_v58 = vpop.f32.mrf.mxu0 }
 0x2d7   : > { %v6091_v0 = vpop.f32.mrf.mxu0 }
 0x2d8   : > { %v2325_v46 = vpop.f32.mrf.mxu1 }
 0x2d9   : > { %4064 = vmatprep.mubr.msk.f32.mxu1 %vm6618_vm1, %v2325_v46  ;;  %vm6633_vm1 = vmmov %vm6575_vm0 }
 0x2da   : > { %v2327_v15 = vpop.f32.mrf.mxu1 }
 0x2df   : > { %v2330_v11 = vpop.f32.mrf.mxu1 }
 0x2e0   : > { %4065 = vmatmul.mubr.msk.f32.gmra.mxu1 %vm6619_vm11, %v2330_v11  ;;  %vm6634_vm11 = vmmov %vm6575_vm0 }
 0x2e1   : > { %v2332_v48 = vpop.f32.mrf.mxu1 }
 0x2e3   : > { %v3981_v53 = vpop.f32.mrf.mxu1 }
 0x2e4   : > { %v2656_v37 = vadd.f32 %v3981_v53, %v3949_v62 }
 0x2e5   : > { %v2650_v2 = vpop.f32.mrf.mxu1 }
 0x2e6   : > { %v2651_v30 = vadd.f32 %v2650_v2, %v2457_v42 }
 0x2e7   : > { %v3984_v5 = vpop.f32.mrf.mxu1 }
 0x2e8   : > { %v2666_v12 = vadd.f32 %v3984_v5, %v3952_v50 }
 0x2e9   : > { %v2660_v63 = vpop.f32.mrf.mxu1 }
 0x2ea   : > { %v2661_v9 = vadd.f32 %v2660_v63, %v2467_v35 }
 0x2eb   : > { %v3987_v24 = vpop.f32.mrf.mxu1 }
 0x2ec   : > { %v2676_v13 = vadd.f32 %v3987_v24, %v3955_v10 }
 0x2ed   : > { %v2670_v17 = vpop.f32.mrf.mxu1 }
 0x2ee   : > { %v2671_v49 = vadd.f32 %v2670_v17, %v2477_v19 }
 0x2ef   : > { %v3990_v59 = vpop.f32.mrf.mxu1 }
 0x2f0   : > { %v2686_v48 = vadd.f32 %v3990_v59, %v3958_v34 }
 0x2f1   : > { %v2680_v61 = vpop.f32.mrf.mxu1 }
 0x2f2   : > { %v2681_v17 = vadd.f32 %v2680_v61, %v2487_v16 }
 0x2f3   : > { %v6079_v44 = vpop.f32.mrf.mxu1 }
 0x2f5   : > { %v6081_v4 = vpop.f32.mrf.mxu1 }
 0x2f7   : > { %v6083_v57 = vpop.f32.mrf.mxu1 }
 0x2f9   : > { %v6085_v1 = vpop.f32.mrf.mxu1 }
 0x2fb   : > { %v6089_v6 = vpop.f32.mrf.mxu1 }
 0x2fd   : > { %v6093_v43 = vpop.f32.mrf.mxu1 }
 0x2fe   : > { %v6095_v21 = vpop.f32.mrf.mxu0 }
 0x2ff   : > { %v6097_v38 = vpop.f32.mrf.mxu1 }
 0x300   : > { %v6099_v56 = vpop.f32.mrf.mxu0 }
 0x301   : > { %v6101_v51 = vpop.f32.mrf.mxu1 }
 0x303   : > { %v4045_v60 = vpop.f32.mrf.mxu1 }
 0x305   : > { %v3060_v14 = vpop.f32.mrf.mxu1 }
 0x30d   : > { %v4048_v40 = vpop.f32.mrf.mxu1 }
 0x30f   : > { %v3070_v3 = vpop.f32.mrf.mxu1 }
 0x326   : > { %v6103_v54 = vpop.f32.mrf.mxu0 }
 0x328   : > { %v6105_v52 = vpop.f32.mrf.mxu0 }
 0x335   : > { %v4051_v22 = vpop.f32.mrf.mxu1 }
 0x337   : > { %v3080_v53 = vpop.f32.mrf.mxu1 }
 0x34e   : > { %v6107_v18 = vpop.f32.mrf.mxu0 }
 0x350   : > { %v6109_v28 = vpop.f32.mrf.mxu0 }
 0x352   : > { %v4013_v39 = vpop.f32.mrf.mxu0 }
 0x353   : > { %v2927_v55 = vadd.f32 %v4013_v39, %v2656_v37 }
 0x354   : > { %v2847_v7 = vpop.f32.mrf.mxu0 }
 0x355   : > { %v3140_v32 = vadd.f32 %v4045_v60, %v2927_v55  ;;  %v2926_v45 = vadd.f32 %v2847_v7, %v2651_v30 }
 0x356   : > { %v4016_v41 = vpop.f32.mrf.mxu0 }
 0x357   : > { %v3139_v26 = vadd.f32 %v3060_v14, %v2926_v45  ;;  %v2929_v33 = vadd.f32 %v4016_v41, %v2666_v12  ;;  %v6117_v25 = vadd.f32 %v6114_v20, %v3140_v32  ;;  %v2696_v45 = vadd.f32 %v6079_v44, %v6087_v58 }
 0x358   : > { %v2857_v27 = vpop.f32.mrf.mxu0  ;;  %v4054_v42 = vpop.f32.mrf.mxu1  ;;  %v2691_v41 = vadd.f32 %v6081_v4, %v6091_v0  ;;  %v2706_v58 = vadd.f32 %v6083_v57, %v6095_v21  ;;  %v2716_v21 = vadd.f32 %v6089_v6, %v6103_v54  ;;  %v2726_v54 = vadd.f32 %v6097_v38, %v6107_v18 }
 0x359   : > { %v3142_v29 = vadd.f32 %v4048_v40, %v2929_v33  ;;  %v2928_v23 = vadd.f32 %v2857_v27, %v2661_v9  ;;  %v3178_v47 = vsel %vm6620_vm7, %v6117_v25, 0.0  ;;  %v6122_v36 = vadd.f32 %v6114_v20, %v3139_v26  ;;  %vm6635_vm7 = vmmov %vm6575_vm0 }
 0x35a   : > { %v4019_v8 = vpop.f32.mrf.mxu0  ;;  %3179 = vadd.xlane.f32.xlu0 %v3178_v47  ;;  %v3090_v16 = vpop.f32.mrf.mxu1 }
 0x35b   : > { %v3141_v31 = vadd.f32 %v3070_v3, %v2928_v23  ;;  %v2931_v46 = vadd.f32 %v4019_v8, %v2676_v13  ;;  %v3175_v15 = vsel %vm6575_vm0, %v6122_v36, 0.0  ;;  %v6127_v11 = vadd.f32 %v6114_v20, %v3142_v29 }
 0x35c   : > { %v2867_v2 = vpop.f32.mrf.mxu0  ;;  %3176 = vadd.xlane.f32.xlu1 %v3175_v15 }
 0x35d   : > { %v3144_v5 = vadd.f32 %v4051_v22, %v2931_v46  ;;  %v2930_v63 = vadd.f32 %v2867_v2, %v2671_v49  ;;  %v3184_v24 = vsel %vm6621_vm14, %v6127_v11, 0.0  ;;  %v6132_v62 = vadd.f32 %v6114_v20, %v3141_v31  ;;  %vm6636_vm14 = vmmov %vm6575_vm0 }
 0x35e   : > { %v4022_v50 = vpop.f32.mrf.mxu0  ;;  %3185 = vadd.xlane.f32.xlu0 %v3184_v24  ;;  %v2701_v49 = vadd.f32 %v6085_v1, %v6099_v56  ;;  %v2711_v24 = vadd.f32 %v6093_v43, %v6105_v52 }
 0x35f   : > { %v3143_v35 = vadd.f32 %v3080_v53, %v2930_v63  ;;  %v2933_v10 = vadd.f32 %v4022_v50, %v2686_v48  ;;  %v3181_v59 = vsel %vm6622_vm5, %v6132_v62, 0.0  ;;  %v6137_v19 = vadd.f32 %v6114_v20, %v3144_v5  ;;  %vm6637_vm5 = vmmov %vm6575_vm0 }
 0x360   : > { %v2877_v34 = vpop.f32.mrf.mxu0  ;;  %3182 = vadd.xlane.f32.xlu1 %v3181_v59 }
 0x361   : > { %v3146_v60 = vadd.f32 %v4054_v42, %v2933_v10  ;;  %v2932_v14 = vadd.f32 %v2877_v34, %v2681_v17  ;;  %v3190_v37 = vsel %vm6623_vm4, %v6137_v19, 0.0  ;;  %v6142_v61 = vadd.f32 %v6114_v20, %v3143_v35  ;;  %vm6638_vm4 = vmmov %vm6575_vm0 }
 0x362   : > { %3191 = vadd.xlane.f32.xlu0 %v3190_v37  ;;  %v4025_v12 = vpop.f32.mrf.mxu0  ;;  %v2721_v37 = vadd.f32 %v6101_v51, %v6109_v28 }
 0x363   : > { %v3145_v40 = vadd.f32 %v3090_v16, %v2932_v14  ;;  %v3187_v39 = vsel %vm6624_vm12, %v6142_v61, 0.0  ;;  %v6147_v30 = vadd.f32 %v6114_v20, %v3146_v60  ;;  %v2935_v9 = vadd.f32 %v4025_v12, %v2696_v45  ;;  %vm6639_vm12 = vmmov %vm6575_vm0 }
 0x364   : > { %3188 = vadd.xlane.f32.xlu1 %v3187_v39  ;;  %v2887_v3 = vpop.f32.mrf.mxu0 }
 0x365   : > { %v3196_v55 = vsel %vm6625_vm8, %v6147_v30, 0.0  ;;  %v6152_v7 = vadd.f32 %v6114_v20, %v3145_v40  ;;  %v2934_v33 = vadd.f32 %v2887_v3, %v2691_v41  ;;  %vm6640_vm8 = vmmov %vm6575_vm0 }
 0x366   : > { %3197 = vadd.xlane.f32.xlu0 %v3196_v55  ;;  %v4028_v4 = vpop.f32.mrf.mxu0 }
 0x367   : > { %v3193_v32 = vsel %vm6626_vm10, %v6152_v7, 0.0  ;;  %v2937_v8 = vadd.f32 %v4028_v4, %v2706_v58  ;;  %vm6641_vm10 = vmmov %vm6575_vm0 }
 0x368   : > { %3194 = vadd.xlane.f32.xlu1 %v3193_v32  ;;  %v2897_v0 = vpop.f32.mrf.mxu0 }
 0x369   : > { %v2936_v46 = vadd.f32 %v2897_v0, %v2701_v49 }
 0x36a   : > { %v4031_v1 = vpop.f32.mrf.mxu0 }
 0x36b   : > { %v2939_v17 = vadd.f32 %v4031_v1, %v2716_v21 }
 0x36c   : > { %v4057_v26 = vpop.f32.mrf.mxu1  ;;  %v2907_v56 = vpop.f32.mrf.mxu0 }
 0x36d   : > { %v3148_v13 = vadd.f32 %v4057_v26, %v2935_v9  ;;  %v2938_v50 = vadd.f32 %v2907_v56, %v2711_v24 }
 0x36e   : > { %v3100_v22 = vpop.f32.mrf.mxu1  ;;  %v4034_v43 = vpop.f32.mrf.mxu0 }
 0x36f   : > { %v6161_v27 = vadd.f32 %v6114_v20, %v3148_v13  ;;  %v3147_v29 = vadd.f32 %v3100_v22, %v2934_v33  ;;  %v2941_v16 = vadd.f32 %v4034_v43, %v2726_v54 }
 0x370   : > { %v2917_v52 = vpop.f32.mrf.mxu0 }
 0x371   : > { %v6164_v23 = vadd.f32 %v6114_v20, %v3147_v29  ;;  %v3202_v47 = vsel %vm6627_vm13, %v6161_v27, 0.0  ;;  %v2940_v39 = vadd.f32 %v2917_v52, %v2721_v37  ;;  %vm6642_vm13 = vmmov %vm6575_vm0 }
 0x372   : > { %3203 = vadd.xlane.f32.xlu0 %v3202_v47 }
 0x373   : > { %v3199_v44 = vsel %vm6628_vm9, %v6164_v23, 0.0  ;;  %vm6643_vm9 = vmmov %vm6575_vm0 }
 0x374   : > { %3200 = vadd.xlane.f32.xlu1 %v3199_v44 }
 0x37d   : > { %v4060_v31 = vpop.f32.mrf.mxu1 }
 0x37e   : > { %v3150_v15 = vadd.f32 %v4060_v31, %v2937_v8 }
 0x37f   : > { %v3110_v48 = vpop.f32.mrf.mxu1 }
 0x380   : > { %v6175_v53 = vadd.f32 %v6114_v20, %v3150_v15  ;;  %v3149_v2 = vadd.f32 %v3110_v48, %v2936_v46 }
 0x382   : > { %v6178_v5 = vadd.f32 %v6114_v20, %v3149_v2  ;;  %v3208_v63 = vsel %vm6629_vm3, %v6175_v53, 0.0  ;;  %vm6644_vm3 = vmmov %vm6575_vm0 }
 0x383   : > { %3209 = vadd.xlane.f32.xlu0 %v3208_v63 }
 0x384   : > { %v3205_v57 = vsel %vm6630_vm15, %v6178_v5, 0.0  ;;  %vm6645_vm15 = vmmov %vm6575_vm0 }
 0x385   : > { %3206 = vadd.xlane.f32.xlu1 %v3205_v57 }
 0x38f   : > { %v4063_v42 = vpop.f32.mrf.mxu1 }
 0x390   : > { %v3152_v35 = vadd.f32 %v4063_v42, %v2939_v17 }
 0x391   : > { %v3120_v10 = vpop.f32.mrf.mxu1 }
 0x392   : > { %v6189_v59 = vadd.f32 %v6114_v20, %v3152_v35  ;;  %v3151_v34 = vadd.f32 %v3120_v10, %v2938_v50 }
 0x394   : > { %v6192_v60 = vadd.f32 %v6114_v20, %v3151_v34  ;;  %v3214_v14 = vsel %vm6631_vm2, %v6189_v59, 0.0  ;;  %vm6646_vm2 = vmmov %vm6575_vm0 }
 0x395   : > { %3215 = vadd.xlane.f32.xlu0 %v3214_v14 }
 0x396   : > { %v3211_v6 = vsel %vm6632_vm6, %v6192_v60, 0.0  ;;  %vm6647_vm6 = vmmov %vm6575_vm0 }
 0x397   : > { %3212 = vadd.xlane.f32.xlu1 %v3211_v6 }
 0x3a0   : > { %v4066_v40 = vpop.f32.mrf.mxu1 }
 0x3a1   : > { %v3154_v55 = vadd.f32 %v4066_v40, %v2941_v16 }
 0x3a2   : > { %v3130_v12 = vpop.f32.mrf.mxu1 }
 0x3a3   : > { %v6203_v32 = vadd.f32 %v6114_v20, %v3154_v55  ;;  %v3153_v45 = vadd.f32 %v3130_v12, %v2940_v39 }
 0x3a5   : > { %v6206_v3 = vadd.f32 %v6114_v20, %v3153_v45  ;;  %v3220_v41 = vsel %vm6633_vm1, %v6203_v32, 0.0  ;;  %vm6648_vm1 = vmmov %vm6575_vm0 }
 0x3a6   : > { %3221 = vadd.xlane.f32.xlu0 %v3220_v41 }
 0x3a7   : > { %v3217_v38 = vsel %vm6634_vm11, %v6206_v3, 0.0  ;;  %vm6649_vm11 = vmmov %vm6575_vm0 }
 0x3a8   : > { %3218 = vadd.xlane.f32.xlu1 %v3217_v38 }
 0x3e3   : > { %v3180_v51 = vpop.xlane.xlu0 %3179 }
 0x3e4   : > { %v3225_v18 = vmul.f32 0.03125, %v3180_v51 }
 0x3e5   : > { %v3177_v28 = vpop.xlane.xlu1 %3176 }
 0x3e6   : > { %v6213_v9 = vsub.f32 %v6117_v25, %v3225_v18  ;;  %v3224_v26 = vmul.f32 0.03125, %v3177_v28 }
 0x3e7   : > { %v3186_v33 = vpop.xlane.xlu0 %3185 }
 0x3e8   : > { %v6216_v13 = vsub.f32 %v6122_v36, %v3224_v26  ;;  %v3227_v20 = vmul.f32 0.03125, %v3186_v33  ;;  %v3257_v22 = vmul.f32 %v6213_v9, %v6213_v9 }
 0x3e9   : > { %v3183_v29 = vpop.xlane.xlu1 %3182 }
 0x3ea   : > { %v6221_v47 = vsub.f32 %v6127_v11, %v3227_v20  ;;  %v3226_v44 = vmul.f32 0.03125, %v3183_v29  ;;  %v3275_v4 = vsel %vm6635_vm7, %v3257_v22, 0.0  ;;  %v3256_v25 = vmul.f32 %v6216_v13, %v6216_v13  ;;  %vm6650_vm7 = vmmov %vm6575_vm0 }
 0x3eb   : > { %v3192_v58 = vpop.xlane.xlu0 %3191  ;;  %3276 = vadd.xlane.f32.xlu0 %v3275_v4 }
 0x3ec   : > { %v6227_v0 = vsub.f32 %v6132_v62, %v3226_v44  ;;  %v3229_v36 = vmul.f32 0.03125, %v3192_v58  ;;  %v3272_v49 = vsel %vm6575_vm0, %v3256_v25, 0.0  ;;  %v3259_v8 = vmul.f32 %v6221_v47, %v6221_v47 }
 0x3ed   : > { %3273 = vadd.xlane.f32.xlu1 %v3272_v49  ;;  %v3189_v11 = vpop.xlane.xlu1 %3188 }
 0x3ee   : > { %v6233_v31 = vsub.f32 %v6137_v19, %v3229_v36  ;;  %v3228_v46 = vmul.f32 0.03125, %v3189_v11  ;;  %v3281_v15 = vsel %vm6636_vm14, %v3259_v8, 0.0  ;;  %v3258_v48 = vmul.f32 %v6227_v0, %v6227_v0  ;;  %vm6651_vm14 = vmmov %vm6575_vm0 }
 0x3ef   : > { %v3198_v2 = vpop.xlane.xlu0 %3197  ;;  %3282 = vadd.xlane.f32.xlu0 %v3281_v15 }
 0x3f0   : > { %v6239_v62 = vsub.f32 %v6142_v61, %v3228_v46  ;;  %v3231_v63 = vmul.f32 0.03125, %v3198_v2  ;;  %v3278_v57 = vsel %vm6637_vm5, %v3258_v48, 0.0  ;;  %v3261_v1 = vmul.f32 %v6233_v31, %v6233_v31  ;;  %vm6652_vm5 = vmmov %vm6575_vm0 }
 0x3f1   : > { %3279 = vadd.xlane.f32.xlu1 %v3278_v57  ;;  %v3195_v19 = vpop.xlane.xlu1 %3194 }
 0x3f2   : > { %v6245_v21 = vsub.f32 %v6147_v30, %v3231_v63  ;;  %v3230_v56 = vmul.f32 0.03125, %v3195_v19  ;;  %v3287_v24 = vsel %vm6638_vm4, %v3261_v1, 0.0  ;;  %v3260_v17 = vmul.f32 %v6239_v62, %v6239_v62  ;;  %vm6653_vm4 = vmmov %vm6575_vm0 }
 0x3f3   : > { %3288 = vadd.xlane.f32.xlu0 %v3287_v24 }
 0x3f4   : > { %v6251_v61 = vsub.f32 %v6152_v7, %v3230_v56  ;;  %v3284_v42 = vsel %vm6639_vm12, %v3260_v17, 0.0  ;;  %v3263_v50 = vmul.f32 %v6245_v21, %v6245_v21  ;;  %vm6654_vm12 = vmmov %vm6575_vm0 }
 0x3f5   : > { %3285 = vadd.xlane.f32.xlu1 %v3284_v42 }
 0x3f6   : > { %v3293_v35 = vsel %vm6640_vm8, %v3263_v50, 0.0  ;;  %v3262_v30 = vmul.f32 %v6251_v61, %v6251_v61  ;;  %vm6655_vm8 = vmmov %vm6575_vm0 }
 0x3f7   : > { %3294 = vadd.xlane.f32.xlu0 %v3293_v35 }
 0x3f8   : > { %v3290_v10 = vsel %vm6641_vm10, %v3262_v30, 0.0  ;;  %vm6656_vm10 = vmmov %vm6575_vm0 }
 0x3f9   : > { %3291 = vadd.xlane.f32.xlu1 %v3290_v10 }
 0x3fb   : > { %v3204_v34 = vpop.xlane.xlu0 %3203 }
 0x3fc   : > { %v3233_v14 = vmul.f32 0.03125, %v3204_v34 }
 0x3fd   : > { %v3201_v6 = vpop.xlane.xlu1 %3200 }
 0x3fe   : > { %v6261_v7 = vsub.f32 %v6161_v27, %v3233_v14  ;;  %v3232_v43 = vmul.f32 0.03125, %v3201_v6 }
 0x400   : > { %v6264_v54 = vsub.f32 %v6164_v23, %v3232_v43  ;;  %v3265_v52 = vmul.f32 %v6261_v7, %v6261_v7 }
 0x402   : > { %v3299_v37 = vsel %vm6642_vm13, %v3265_v52, 0.0  ;;  %v3264_v16 = vmul.f32 %v6264_v54, %v6264_v54  ;;  %vm6657_vm13 = vmmov %vm6575_vm0 }
 0x403   : > { %3300 = vadd.xlane.f32.xlu0 %v3299_v37 }
 0x404   : > { %v3296_v40 = vsel %vm6643_vm9, %v3264_v16, 0.0  ;;  %vm6658_vm9 = vmmov %vm6575_vm0 }
 0x405   : > { %3297 = vadd.xlane.f32.xlu1 %v3296_v40 }
 0x40c   : > { %v3210_v39 = vpop.xlane.xlu0 %3209 }
 0x40d   : > { %v3235_v55 = vmul.f32 0.03125, %v3210_v39 }
 0x40e   : > { %v3207_v27 = vpop.xlane.xlu1 %3206 }
 0x40f   : > { %v6273_v12 = vsub.f32 %v6175_v53, %v3235_v55  ;;  %v3234_v23 = vmul.f32 0.03125, %v3207_v27  ;;  %v6312_v55 = vld [vmem:[%s6458_s4 + $0x2] ss:$0 sm:$0xff] }
 0x411   : > { %v6276_v45 = vsub.f32 %v6178_v5, %v3234_v23  ;;  %v3267_v41 = vmul.f32 %v6273_v12, %v6273_v12 }
 0x413   : > { %v3305_v38 = vsel %vm6644_vm3, %v3267_v41, 0.0  ;;  %v3266_v51 = vmul.f32 %v6276_v45, %v6276_v45  ;;  %v6320_v41 = vld [vmem:[%s6458_s4 + $0x3] ss:$0 sm:$0xff]  ;;  %vm6659_vm3 = vmmov %vm6575_vm0 }
 0x414   : > { %3306 = vadd.xlane.f32.xlu0 %v3305_v38 }
 0x415   : > { %v3302_v18 = vsel %vm6645_vm15, %v3266_v51, 0.0  ;;  %vm6660_vm15 = vmmov %vm6575_vm0 }
 0x416   : > { %3303 = vadd.xlane.f32.xlu1 %v3302_v18 }
 0x41e   : > { %v3216_v28 = vpop.xlane.xlu0 %3215 }
 0x41f   : > { %v3237_v26 = vmul.f32 0.03125, %v3216_v28 }
 0x420   : > { %v3213_v53 = vpop.xlane.xlu1 %3212 }
 0x421   : > { %v6285_v33 = vsub.f32 %v6189_v59, %v3237_v26  ;;  %v3236_v5 = vmul.f32 0.03125, %v3213_v53 }
 0x423   : > { %v6288_v20 = vsub.f32 %v6192_v60, %v3236_v5  ;;  %v3269_v22 = vmul.f32 %v6285_v33, %v6285_v33 }
 0x425   : > { %v3311_v29 = vsel %vm6646_vm2, %v3269_v22, 0.0  ;;  %v3268_v44 = vmul.f32 %v6288_v20, %v6288_v20  ;;  %vm6661_vm2 = vmmov %vm6575_vm0 }
 0x426   : > { %3312 = vadd.xlane.f32.xlu0 %v3311_v29 }
 0x427   : > { %v3308_v4 = vsel %vm6647_vm6, %v3268_v44, 0.0  ;;  %vm6662_vm6 = vmmov %vm6575_vm0 }
 0x428   : > { %3309 = vadd.xlane.f32.xlu1 %v3308_v4 }
 0x42f   : > { %v3222_v25 = vpop.xlane.xlu0 %3221 }
 0x430   : > { %v3239_v58 = vmul.f32 0.03125, %v3222_v25 }
 0x431   : > { %v3219_v59 = vpop.xlane.xlu1 %3218 }
 0x432   : > { %v6297_v36 = vsub.f32 %v6203_v32, %v3239_v58  ;;  %v3238_v60 = vmul.f32 0.03125, %v3219_v59 }
 0x434   : > { %v6300_v49 = vsub.f32 %v6206_v3, %v3238_v60  ;;  %v3271_v8 = vmul.f32 %v6297_v36, %v6297_v36 }
 0x436   : > { %v3317_v11 = vsel %vm6648_vm1, %v3271_v8, 0.0  ;;  %v3270_v46 = vmul.f32 %v6300_v49, %v6300_v49  ;;  %vm6663_vm1 = vmmov %vm6575_vm0 }
 0x437   : > { %3318 = vadd.xlane.f32.xlu0 %v3317_v11 }
 0x438   : > { %v3314_v15 = vsel %vm6649_vm11, %v3270_v46, 0.0  ;;  %vm6664_vm11 = vmmov %vm6575_vm0 }
 0x439   : > { %3315 = vadd.xlane.f32.xlu1 %v3314_v15 }
 0x474   : > { %v3277_v48 = vpop.xlane.xlu0 %3276 }
 0x475   : > { %v3321_v2 = vmul.f32 0.03125, %v3277_v48 }
 0x476   : > { %v3274_v32 = vpop.xlane.xlu1 %3273 }
 0x477   : > { %v3337_v63 = vadd.f32 1e-05, %v3321_v2  ;;  %v3320_v57 = vmul.f32 0.03125, %v3274_v32 }
 0x478   : > { %v3283_v1 = vpop.xlane.xlu0 %3282 }
 0x479   : > { %4197 = vrsqrt.f32 %v3337_v63  ;;  %v3336_v3 = vadd.f32 1e-05, %v3320_v57  ;;  %v3323_v19 = vmul.f32 0.03125, %v3283_v1 }
 0x47a   : > { %v3280_v56 = vpop.xlane.xlu1 %3279 }
 0x47b   : > { %4199 = vrsqrt.f32 %v3336_v3  ;;  %v3339_v24 = vadd.f32 1e-05, %v3323_v19  ;;  %v3322_v17 = vmul.f32 0.03125, %v3280_v56 }
 0x47c   : > { %v3289_v42 = vpop.xlane.xlu0 %3288 }
 0x47d   : > { %4201 = vrsqrt.f32 %v3339_v24  ;;  %v3338_v50 = vadd.f32 1e-05, %v3322_v17  ;;  %v3325_v35 = vmul.f32 0.03125, %v3289_v42 }
 0x47e   : > { %v3286_v30 = vpop.xlane.xlu1 %3285 }
 0x47f   : > { %4203 = vrsqrt.f32 %v3338_v50  ;;  %v3341_v10 = vadd.f32 1e-05, %v3325_v35  ;;  %v3324_v34 = vmul.f32 0.03125, %v3286_v30 }
 0x480   : > { %v3295_v14 = vpop.xlane.xlu0 %3294 }
 0x481   : > { %4205 = vrsqrt.f32 %v3341_v10  ;;  %v3340_v6 = vadd.f32 1e-05, %v3324_v34  ;;  %v3327_v43 = vmul.f32 0.03125, %v3295_v14 }
 0x482   : > { %v3292_v52 = vpop.xlane.xlu1 %3291 }
 0x483   : > { %4207 = vrsqrt.f32 %v3340_v6  ;;  %v3343_v37 = vadd.f32 1e-05, %v3327_v43  ;;  %v3326_v16 = vmul.f32 0.03125, %v3292_v52 }
 0x485   : > { %4209 = vrsqrt.f32 %v3343_v37  ;;  %v3342_v40 = vadd.f32 1e-05, %v3326_v16 }
 0x486   : > { %v4198_v39 = vpop.eup %4197 }
 0x487   : > { %v3369_v27 = vmul.f32 %v4198_v39, %v6213_v9  ;;  %4211 = vrsqrt.f32 %v3342_v40 }
 0x488   : > { %v4200_v23 = vpop.eup %4199 }
 0x489   : > { %v3389_v38 = vmul.f32 %v6312_v55, %v3369_v27  ;;  %v3368_v51 = vmul.f32 %v4200_v23, %v6216_v13 }
 0x48a   : > { %v4202_v18 = vpop.eup %4201 }
 0x48b   : > { %v3409_v28 = vadd.f32 %v6320_v41, %v3389_v38  ;;  %v3388_v26 = vmul.f32 %v6312_v55, %v3368_v51  ;;  %v3371_v53 = vmul.f32 %v4202_v18, %v6221_v47 }
 0x48c   : > { %v4204_v5 = vpop.eup %4203  ;;  %v3301_v9 = vpop.xlane.xlu0 %3300 }
 0x48d   : > { %3425 = vst.msk [vmem:[%s6327_s20 + $0x8] sm:$0xff] %vm6650_vm7, %v3409_v28  ;;  %v3408_v22 = vadd.f32 %v6320_v41, %v3388_v26  ;;  %v3391_v13 = vmul.f32 %v6312_v55, %v3371_v53  ;;  %v3370_v29 = vmul.f32 %v4204_v5, %v6227_v0  ;;  %v3329_v44 = vmul.f32 0.03125, %v3301_v9 }
 0x48e   : > { %v4206_v4 = vpop.eup %4205  ;;  %v3298_v25 = vpop.xlane.xlu1 %3297 }
 0x48f   : > { %3424 = vst.msk [vmem:[%s6327_s20] sm:$0xff] %vm6575_vm0, %v3408_v22  ;;  %v3411_v47 = vadd.f32 %v6320_v41, %v3391_v13  ;;  %v3390_v58 = vmul.f32 %v6312_v55, %v3370_v29  ;;  %v3373_v59 = vmul.f32 %v4206_v4, %v6233_v31  ;;  %v3345_v60 = vadd.f32 1e-05, %v3329_v44 }
 0x490   : > { %v4208_v8 = vpop.eup %4207  ;;  %v3328_v11 = vmul.f32 0.03125, %v3298_v25 }
 0x491   : > { %3427 = vst.msk [vmem:[%s6327_s20 + $0x18] sm:$0xff] %vm6651_vm14, %v3411_v47  ;;  %v3410_v0 = vadd.f32 %v6320_v41, %v3390_v58  ;;  %v3393_v46 = vmul.f32 %v6312_v55, %v3373_v59  ;;  %v3372_v15 = vmul.f32 %v4208_v8, %v6239_v62  ;;  %4213 = vrsqrt.f32 %v3345_v60 }
 0x492   : > { %v4210_v48 = vpop.eup %4209  ;;  %v3344_v2 = vadd.f32 1e-05, %v3328_v11 }
 0x493   : > { %3426 = vst.msk [vmem:[%s6327_s20 + $0x10] sm:$0xff] %vm6652_vm5, %v3410_v0  ;;  %v3413_v31 = vadd.f32 %v6320_v41, %v3393_v46  ;;  %v3392_v32 = vmul.f32 %v6312_v55, %v3372_v15  ;;  %v3375_v63 = vmul.f32 %v4210_v48, %v6245_v21 }
 0x494   : > { %v4212_v57 = vpop.eup %4211  ;;  %4215 = vrsqrt.f32 %v3344_v2 }
 0x495   : > { %3429 = vst.msk [vmem:[%s6327_s20 + $0x28] sm:$0xff] %vm6653_vm4, %v3413_v31  ;;  %v3412_v1 = vadd.f32 %v6320_v41, %v3392_v32  ;;  %v3395_v62 = vmul.f32 %v6312_v55, %v3375_v63  ;;  %v3374_v3 = vmul.f32 %v4212_v57, %v6251_v61 }
 0x497   : > { %3428 = vst.msk [vmem:[%s6327_s20 + $0x20] sm:$0xff] %vm6654_vm12, %v3412_v1  ;;  %v3415_v19 = vadd.f32 %v6320_v41, %v3395_v62  ;;  %v3394_v56 = vmul.f32 %v6312_v55, %v3374_v3 }
 0x499   : > { %3431 = vst.msk [vmem:[%s6327_s20 + $0x38] sm:$0xff] %vm6655_vm8, %v3415_v19  ;;  %v3414_v21 = vadd.f32 %v6320_v41, %v3394_v56 }
 0x49b   : > { %3430 = vst.msk [vmem:[%s6327_s20 + $0x30] sm:$0xff] %vm6656_vm10, %v3414_v21 }
 0x49d   : > { %v3307_v24 = vpop.xlane.xlu0 %3306 }
 0x49e   : > { %v4214_v17 = vpop.eup %4213  ;;  %v3331_v42 = vmul.f32 0.03125, %v3307_v24 }
 0x49f   : > { %v3377_v50 = vmul.f32 %v4214_v17, %v6261_v7  ;;  %v3304_v61 = vpop.xlane.xlu1 %3303 }
 0x4a0   : > { %v3347_v35 = vadd.f32 1e-05, %v3331_v42  ;;  %v3330_v30 = vmul.f32 0.03125, %v3304_v61 }
 0x4a1   : > { %v4216_v10 = vpop.eup %4215  ;;  %v3397_v34 = vmul.f32 %v6312_v55, %v3377_v50 }
 0x4a2   : > { %v3376_v14 = vmul.f32 %v4216_v10, %v6264_v54  ;;  %4217 = vrsqrt.f32 %v3347_v35  ;;  %v3346_v6 = vadd.f32 1e-05, %v3330_v30 }
 0x4a3   : > { %v3417_v43 = vadd.f32 %v6320_v41, %v3397_v34 }
 0x4a4   : > { %v3396_v52 = vmul.f32 %v6312_v55, %v3376_v14  ;;  %4219 = vrsqrt.f32 %v3346_v6 }
 0x4a5   : > { %3433 = vst.msk [vmem:[%s6327_s20 + $0x48] sm:$0xff] %vm6657_vm13, %v3417_v43 }
 0x4a6   : > { %v3416_v37 = vadd.f32 %v6320_v41, %v3396_v52 }
 0x4a8   : > { %3432 = vst.msk [vmem:[%s6327_s20 + $0x40] sm:$0xff] %vm6658_vm9, %v3416_v37 }
 0x4af   : > { %v4218_v7 = vpop.eup %4217  ;;  %v3313_v16 = vpop.xlane.xlu0 %3312 }
 0x4b0   : > { %v3379_v40 = vmul.f32 %v4218_v7, %v6273_v12  ;;  %v3333_v54 = vmul.f32 0.03125, %v3313_v16 }
 0x4b1   : > { %v4220_v39 = vpop.eup %4219  ;;  %v3310_v27 = vpop.xlane.xlu1 %3309 }
 0x4b2   : > { %v3399_v23 = vmul.f32 %v6312_v55, %v3379_v40  ;;  %v3378_v38 = vmul.f32 %v4220_v39, %v6276_v45  ;;  %v3349_v51 = vadd.f32 1e-05, %v3333_v54  ;;  %v3332_v18 = vmul.f32 0.03125, %v3310_v27 }
 0x4b4   : > { %v3419_v28 = vadd.f32 %v6320_v41, %v3399_v23  ;;  %v3398_v26 = vmul.f32 %v6312_v55, %v3378_v38  ;;  %4221 = vrsqrt.f32 %v3349_v51  ;;  %v3348_v53 = vadd.f32 1e-05, %v3332_v18 }
 0x4b6   : > { %3435 = vst.msk [vmem:[%s6327_s20 + $0x58] sm:$0xff] %vm6659_vm3, %v3419_v28  ;;  %v3418_v5 = vadd.f32 %v6320_v41, %v3398_v26  ;;  %4223 = vrsqrt.f32 %v3348_v53 }
 0x4b8   : > { %3434 = vst.msk [vmem:[%s6327_s20 + $0x50] sm:$0xff] %vm6660_vm15, %v3418_v5 }
 0x4c0   : > { %v3319_v12 = vpop.xlane.xlu0 %3318 }
 0x4c1   : > { %v4222_v9 = vpop.eup %4221  ;;  %v3335_v45 = vmul.f32 0.03125, %v3319_v12 }
 0x4c2   : > { %v3381_v22 = vmul.f32 %v4222_v9, %v6285_v33  ;;  %v3316_v13 = vpop.xlane.xlu1 %3315 }
 0x4c3   : > { %v4224_v29 = vpop.eup %4223  ;;  %v3351_v44 = vadd.f32 1e-05, %v3335_v45  ;;  %v3334_v4 = vmul.f32 0.03125, %v3316_v13 }
 0x4c4   : > { %v3401_v25 = vmul.f32 %v6312_v55, %v3381_v22  ;;  %v3380_v47 = vmul.f32 %v4224_v29, %v6288_v20 }
 0x4c5   : > { %4225 = vrsqrt.f32 %v3351_v44  ;;  %v3350_v58 = vadd.f32 1e-05, %v3334_v4 }
 0x4c6   : > { %v3421_v59 = vadd.f32 %v6320_v41, %v3401_v25  ;;  %v3400_v60 = vmul.f32 %v6312_v55, %v3380_v47 }
 0x4c7   : > { %4227 = vrsqrt.f32 %v3350_v58 }
 0x4c8   : > { %3437 = vst.msk [vmem:[%s6327_s20 + $0x68] sm:$0xff] %vm6661_vm2, %v3421_v59  ;;  %v3420_v33 = vadd.f32 %v6320_v41, %v3400_v60 }
 0x4ca   : > { %3436 = vst.msk [vmem:[%s6327_s20 + $0x60] sm:$0xff] %vm6662_vm6, %v3420_v33 }
 0x4d2   : > { %v4226_v8 = vpop.eup %4225 }
 0x4d3   : > { %v3383_v11 = vmul.f32 %v4226_v8, %v6297_v36 }
 0x4d4   : > { %v4228_v20 = vpop.eup %4227 }
 0x4d5   : > { %v3403_v0 = vmul.f32 %v6312_v55, %v3383_v11  ;;  %v3382_v46 = vmul.f32 %v4228_v20, %v6300_v49 }
 0x4d7   : > { %v3423_v15 = vadd.f32 %v6320_v41, %v3403_v0  ;;  %v3402_v48 = vmul.f32 %v6312_v55, %v3382_v46 }
 0x4d9   : > { %3439 = vst.msk [vmem:[%s6327_s20 + $0x78] sm:$0xff] %vm6663_vm1, %v3423_v15  ;;  %v3422_v36 = vadd.f32 %v6320_v41, %v3402_v48 }
 0x4db   : > { %3438 = vst.msk [vmem:[%s6327_s20 + $0x70] sm:$0xff] %vm6664_vm11, %v3422_v36 }
 0x4dc   : > { %4243 = shalt.err (!%p4240_p3)
}
 0x4dd   : > { %s4244_s19 = scalar_lea.hbm %s6403_s16, 2048  ;;  %s4248_s8 = scalar_lea.hbm %s6461_s7, 4096 }
 0x4de   : > { %p4245_p4 = scmp.ne.s32.totalorder %s6403_s16, %s4244_s19  ;;  %p4249_p9 = scmp.lt.s32.totalorder %s6403_s16, %s6461_s7 }
 0x4df   : > { %p4250_p10 = scmp.lt.s32.totalorder %s4248_s8, %s4244_s19 }
 0x4e0   : > { %p4246_p7 = pnand %p4245_p4, %p4381_p5 }
 0x4e1   : > { %p4251_p11 = por %p4250_p10, %p4249_p9 }
 0x4e2   : > { %p4247_p8 = pneg %p4246_p7 }
 0x4e4   : > { %p4252_p12 = pnand %p4251_p11, %p4247_p8 }
 0x4e6   : > { %4255 = shalt.err (!%p4252_p12)
}
 0x4e7   : > { %s4301_s14 = smov 128   ;;  %s4302_s15 = smov 8  }
 0x4e8   : > { %4067 = dma.vmem_to_hbm [thread:$0]  (%p4381_p5), %s6405_s13, 2048, %s6403_s16, %s6414_s28, %s4301_s14, %s4301_s14, %s4302_s15  }
 0x4e9 PF: > { %p4073_p13 = scmp.ge.s32.totalorder %s4290_s27, 2  ;;  %s3469_s17 = sand.u32 1, %s4278_s24  }
 0x4ea   : > { %s3470_s18 = scalar_lea.sflag [#allocation3], %s3469_s17 }
 0x4eb   : > { %p4070_p0 = pnand %p4073_p13, %p4385_p6 }
 0x4ed   : > { %p4071_p1 = pneg %p4070_p0 }
 0x4ef   : > { %4273 = dma.done.wait (%p4071_p1), %s3470_s18, 2048  }
 0x4f0   : > { %4275 = vsyncadd (%p4071_p1), %s3470_s18, 4294965248  ;;  %p17_p2 = scmp.ge.s32.totalorder %s4368_s30, 4   ;;  %s6665_s24 = smov %s4282_s25 }
 0x4f1   : > { %s6666_s25 = smov %s4286_s26  ;;  %s6667_s26 = smov %s4379_s10 }
 0x4f2   : > { %s6668_s27 = smov %s4368_s30  ;;  %19 = sbr.rel (!%p17_p2) target bundleno = 3 (0x3), region = 86 }
 0x4f7   :  { %3475 = vsyncpa [#allocation3], 1 }
 0x4f8   :  { %3477 = vsyncpa [#allocation3 + $0x1], 1 }

</bundles_post_ra>
